<compile_context>
chip_gen: v7x
topology: tpu7x:2x2x1
jax: 0.10.0
libtpu: 0.0.40
codegen_flags: <defaults>
</compile_context>

<pallas_src>
import functools
import math

import jax
import jax.numpy as jnp
from jax.experimental import pallas as pl
from jax.experimental.pallas import tpu as pltpu

_ACT_DTYPE = jnp.bfloat16            # prenorm residual stream dtype in HBM
_LN_EPS = 1e-5                       # torch.nn.LayerNorm default
_VMEM_LIMIT = 48 * 1024 * 1024       # requested scoped VMEM (< v7x 64 MiB phys)
_VMEM_TARGET = 40 * 1024 * 1024      # tile-selection budget (leaves headroom)


# ----------------------------------------------------------------------------
# In-kernel helpers
# ----------------------------------------------------------------------------
def _layernorm_cf(v, gamma, beta):
    """LayerNorm over the channel axis (axis 0) of a (D, tl) f32 block."""
    mu = jnp.mean(v, axis=0, keepdims=True)                       # (1, tl)
    var = jnp.mean(jnp.square(v - mu), axis=0, keepdims=True)     # (1, tl)
    return (v - mu) * jax.lax.rsqrt(var + _LN_EPS) * gamma + beta


# ----------------------------------------------------------------------------
# Pallas kernel 1: initial prenorm LayerNorm  z0 = LN_0(x)
# ----------------------------------------------------------------------------
def _prenorm_kernel(x_ref, g_ref, b_ref, z_ref):
    z_ref[...] = _layernorm_cf(x_ref[...], g_ref[...], b_ref[...]).astype(z_ref.dtype)


# ----------------------------------------------------------------------------
# Pallas kernel 2: S4D layer tail
#   y = GELU(conv_out)            (conv_out already includes the D*u skip)
#   glu = GLU(W @ y + b)          (single fused (2D,D) bf16 MXU matmul)
#   xn = glu + x                  (residual)
#   prenorm : xo = xn            ; zo = LN_next(xn)   (zo only if a layer follows)
#   postnorm: xo = LN_cur(xn)    ; (no zo — wrapper reuses xo as next conv input)
# ----------------------------------------------------------------------------
def _s4_tail_kernel(h_ref, yc_ref, w_ref, b_ref, g_ref, bt_ref, xo_ref, *zo_refs,
                    prenorm: bool, emit_z: bool):
    D = h_ref.shape[0]
    # TODO(synk): torch nn.GELU() default is the exact erf form; tanh approx is
    # used for a guaranteed-clean TPU lowering (~1e-3 deviation).
    y = jax.nn.gelu(yc_ref[...], approximate=True)                # (D, tl) f32
    # nn.Dropout layers are identity in eval mode.
    p = jnp.dot(w_ref[...], y.astype(jnp.bfloat16),
                preferred_element_type=jnp.float32) + b_ref[...]  # (2D, tl) f32
    glu = p[:D, :] * jax.nn.sigmoid(p[D:, :])                     # (D, tl)
    xn = glu + h_ref[...].astype(jnp.float32)                     # residual add
    if prenorm:
        xo_ref[...] = xn.astype(xo_ref.dtype)
        if emit_z:   # LayerNorm of the NEXT layer; skipped on the last layer.
            zo_refs[0][...] = _layernorm_cf(
                xn, g_ref[...], bt_ref[...]).astype(zo_refs[0].dtype)
    else:
        xo_ref[...] = _layernorm_cf(xn, g_ref[...], bt_ref[...]).astype(xo_ref.dtype)


# ----------------------------------------------------------------------------
# Plain-JAX glue (SSM kernel + FFT conv; no Pallas FFT primitive exists)
# ----------------------------------------------------------------------------
def _s4d_ssm_kernel(p, L):
    """S4D SSM conv kernel k(D, L); the learned D*u skip is folded into k[:,0]
    (conv(u, k + D*delta) == conv(u, k) + D*u, exact)."""
    dt = jnp.exp(p["log_dt"])                                     # (D,)
    A = -jnp.exp(p["log_A_real"]) + 1j * p["A_imag"]              # (D, N/2)
    C = p["C_re"] + 1j * p["C_im"]                                # (D, N/2)
    dtA = A * dt[:, None]
    K = dtA[:, :, None] * jnp.arange(L, dtype=jnp.float32)        # (D, N/2, L)
    C_mod = C * (jnp.exp(dtA) - 1.0) / A
    k = 2.0 * jnp.einsum("hn,hnl->hl", C_mod, jnp.exp(K)).real    # (D, L)
    k = k.astype(jnp.float32).at[:, 0].add(p["d_skip"].astype(jnp.float32))
    return k


def _causal_conv_fft(z, k):
    """Depthwise causal conv over L (minor axis) via XLA TPU FFT.  Exact:
    circular conv with power-of-two n >= 2L-1 equals the linear conv on [0, L)."""
    L = z.shape[-1]
    n = 1 << (2 * L - 1).bit_length()
    zf = jnp.fft.rfft(z.astype(jnp.float32), n=n, axis=-1)        # (B, D, n/2+1)
    kf = jnp.fft.rfft(k, n=n, axis=-1)                            # (D, n/2+1)
    return jnp.fft.irfft(zf * kf[None], n=n, axis=-1)[..., :L]    # (B, D, L) f32


def _choose_seq_tile(B, D, L, h_bytes, z_bytes):
    """Largest lane-aligned L tile whose double-buffered blocks + f32 temps fit
    the VMEM budget (minus the double-buffered bf16 (2D, D) weight), while
    keeping >= 4 parallel grid steps when possible (v7x has 2 TensorCores)."""
    budget = max(_VMEM_TARGET - 8 * D * D, 2 * 1024 * 1024)
    per_col = D * (2 * (h_bytes + 4 + h_bytes + z_bytes) + 32)
    cands = sorted({L} | {t for t in (128, 256, 512, 1024, 2048, 4096)
                          if t < L and L % t == 0}, reverse=True)
    fits = [t for t in cands if t * per_col <= budget] or [cands[-1]]
    for t in fits:
        if B * (L // t) >= 4:
            return t
    return fits[0]
    # TODO(synk): ragged long L (no 128-multiple divisor) falls back to a full
    # block; padding L to the next multiple of 128 would be needed there.


# ----------------------------------------------------------------------------
# pallas_call wrappers
# ----------------------------------------------------------------------------
def _prenorm_call(x, gamma, beta, tl):
    B, D, L = x.shape
    act_spec = pl.BlockSpec((None, D, tl), lambda b, l: (b, 0, l))
    col_spec = pl.BlockSpec((D, 1), lambda b, l: (0, 0))
    return pl.pallas_call(
        _prenorm_kernel,
        out_shape=jax.ShapeDtypeStruct((B, D, L), jnp.float32),
        grid=(B, L // tl),
        in_specs=[act_spec, col_spec, col_spec],
        out_specs=act_spec,
        compiler_params=pltpu.CompilerParams(
            dimension_semantics=("parallel", "parallel"),
            vmem_limit_bytes=_VMEM_LIMIT),
    )(x, gamma[:, None].astype(jnp.float32), beta[:, None].astype(jnp.float32))


def _s4_tail_call(h, yconv, p, gamma, beta, tl, *, prenorm, emit_z, out_dtype,
                  allow_alias):
    B, D, L = h.shape
    out_dtype = jnp.dtype(out_dtype)
    w2 = p["w_out"].T.astype(jnp.bfloat16)            # (2D, D) fused GLU weight
    b2 = p["b_out"][:, None].astype(jnp.float32)      # (2D, 1)
    g2 = gamma[:, None].astype(jnp.float32)           # (D, 1)
    bt2 = beta[:, None].astype(jnp.float32)           # (D, 1)

    act_spec = pl.BlockSpec((None, D, tl), lambda b, l: (b, 0, l))
    col_d = pl.BlockSpec((D, 1), lambda b, l: (0, 0))
    col_2d = pl.BlockSpec((2 * D, 1), lambda b, l: (0, 0))
    # TODO(synk): on v7x, pipeline_mode=pl.Buffered(1) on this constant-index
    # weight spec would reclaim the redundant second weight buffer.
    w_spec = pl.BlockSpec((2 * D, D), lambda b, l: (0, 0))

    out_shape = [jax.ShapeDtypeStruct((B, D, L), out_dtype)]
    out_specs = [act_spec]
    if emit_z:
        out_shape.append(jax.ShapeDtypeStruct((B, D, L), jnp.float32))
        out_specs.append(act_spec)

    io_alias = {0: 0} if (allow_alias and h.dtype == out_dtype) else {}

    streams = h.dtype.itemsize + 4 + out_dtype.itemsize + (4 if emit_z else 0)
    cost = pl.CostEstimate(
        flops=4 * B * L * D * D + 24 * B * L * D,
        transcendentals=3 * B * L * D,
        bytes_accessed=streams * B * L * D + 4 * D * D + 12 * D)

    kernel = functools.partial(_s4_tail_kernel, prenorm=prenorm, emit_z=emit_z)
    outs = pl.pallas_call(
        kernel,
        out_shape=tuple(out_shape),
        grid=(B, L // tl),
        in_specs=[act_spec, act_spec, w_spec, col_2d, col_d, col_d],
        out_specs=tuple(out_specs),
        input_output_aliases=io_alias,
        compiler_params=pltpu.CompilerParams(
            dimension_semantics=("parallel", "parallel"),
            vmem_limit_bytes=_VMEM_LIMIT),
        cost_estimate=cost,
    )(h, yconv, w2, b2, g2, bt2)
    return outs if emit_z else outs[0]


# ----------------------------------------------------------------------------
# S4Net forward
# ----------------------------------------------------------------------------
@functools.partial(jax.jit, static_argnames=("prenorm",))
def s4net_forward(x, layer_params, *, prenorm: bool):
    """x: (B, D, L) channel-first (the layout the PyTorch S4Net receives before
    its transpose).  Returns (B, D, L) float32."""
    # TODO(synk): lengths-based masking not implemented (reference forwards
    # lengths=None straight through; the S4 conv ignores it).
    B, D, L = x.shape
    nlayers = len(layer_params)
    x = x.astype(jnp.float32)
    tl = _choose_seq_tile(B, D, L, 2 if prenorm else 4, 4)

    h = x                                       # residual stream (f32 at entry)
    if prenorm:
        z = _prenorm_call(x, layer_params[0]["ln_gamma"],
                          layer_params[0]["ln_beta"], tl)
    else:
        z = x                                   # postnorm: conv input is the stream

    for i, p in enumerate(layer_params):
        last = i == nlayers - 1
        k = _s4d_ssm_kernel(p, L)                               # (D, L)
        yconv = _causal_conv_fft(z, k)                          # (B, D, L) f32
        if prenorm:
            emit_z = not last
            out_dtype = jnp.float32 if last else _ACT_DTYPE
            ln_idx = i + 1 if emit_z else i                     # next layer's LN
        else:
            emit_z = False
            out_dtype = jnp.float32    # f32 stream feeds next FFT + residual
            ln_idx = i
        gamma = layer_params[ln_idx]["ln_gamma"]
        beta = layer_params[ln_idx]["ln_beta"]
        outs = _s4_tail_call(h, yconv, p, gamma, beta, tl,
                             prenorm=prenorm, emit_z=emit_z,
                             out_dtype=out_dtype, allow_alias=i > 0)
        if emit_z:
            h, z = outs
        else:
            h = outs
            z = h
    return h                                                   # (B, D, L) f32


# ----------------------------------------------------------------------------
# Deterministic parameter init (shapes follow the standard S4D layer)
# ----------------------------------------------------------------------------
def init_params(key, d_model, d_state, nlayers):
    dt_min, dt_max = 1e-3, 1e-1
    n2 = d_state // 2
    params = []
    for _ in range(nlayers):
        key, k_dt, k_cr, k_ci, k_d, k_w, k_b = jax.random.split(key, 7)
        log_dt = (jax.random.uniform(k_dt, (d_model,), dtype=jnp.float32)
                  * (math.log(dt_max) - math.log(dt_min)) + math.log(dt_min))
        C_re = jax.random.normal(k_cr, (d_model, n2), dtype=jnp.float32) * (0.5 ** 0.5)
        C_im = jax.random.normal(k_ci, (d_model, n2), dtype=jnp.float32) * (0.5 ** 0.5)
        log_A_real = jnp.log(0.5 * jnp.ones((d_model, n2), dtype=jnp.float32))
        A_imag = math.pi * jnp.broadcast_to(
            jnp.arange(n2, dtype=jnp.float32), (d_model, n2))
        d_skip = jax.random.normal(k_d, (d_model,), dtype=jnp.float32)
        bound = 1.0 / math.sqrt(d_model)
        w_out = jax.random.uniform(k_w, (d_model, 2 * d_model),
                                   minval=-bound, maxval=bound, dtype=jnp.float32)
        b_out = jax.random.uniform(k_b, (2 * d_model,),
                                   minval=-bound, maxval=bound, dtype=jnp.float32)
        params.append(dict(
            log_dt=log_dt, C_re=C_re, C_im=C_im,
            log_A_real=log_A_real, A_imag=A_imag,
            d_skip=d_skip, w_out=w_out, b_out=b_out,
            ln_gamma=jnp.ones((d_model,), jnp.float32),
            ln_beta=jnp.zeros((d_model,), jnp.float32),
        ))
    return params


if __name__ == "__main__":
    key = jax.random.PRNGKey(0)
    # model_dim is a lane-dense multiple of 128; seq kept small for the test.
    B, D, L = 2, 128, 16          # batch, model_dim, seq
    nlayers, d_state = 3, 64
    prenorm = True

    pkey, xkey = jax.random.split(key)
    params = init_params(pkey, D, d_state, nlayers)
    x = jax.random.normal(xkey, (B, D, L), dtype=jnp.float32)

    out = jax.block_until_ready(s4net_forward(x, params, prenorm=prenorm))
    assert out.shape == (B, D, L)
    assert bool(jnp.all(jnp.isfinite(out)))
    print("KERNEL_OK")
</pallas_src>

<mosaic_0001>
module attributes {stable_mosaic.version = 11 : i64} {
  func.func @_prenorm_kernel(%arg0: i32, %arg1: i32, %arg2: memref<1x128x16xf32, #tpu.memory_space<vmem>>, %arg3: memref<128x1xf32, #tpu.memory_space<vmem>>, %arg4: memref<128x1xf32, #tpu.memory_space<vmem>>, %arg5: memref<1x128x16xf32, #tpu.memory_space<vmem>>) attributes {dimension_semantics = [#tpu.dimension_semantics<parallel>, #tpu.dimension_semantics<parallel>], iteration_bounds = array<i64: 2, 1>, scalar_prefetch = 0 : i64, scratch_operands = 0 : i64, tpu.core_type = #tpu.core_type<tc>, window_params = [{transform_indices = @transform_0, window_bounds = array<i64: 1, 128, 16>}, {pipeline_mode = #tpu.pipeline_mode<synchronous>, transform_indices = @transform_1, window_bounds = array<i64: 128, 1>}, {pipeline_mode = #tpu.pipeline_mode<synchronous>, transform_indices = @transform_2, window_bounds = array<i64: 128, 1>}, {transform_indices = @transform_3, window_bounds = array<i64: 1, 128, 16>}]} {
    %c0 = arith.constant 0 : index
    %c0_0 = arith.constant 0 : index
    %c0_1 = arith.constant 0 : index
    %0 = vector.load %arg2[%c0, %c0_0, %c0_1] : memref<1x128x16xf32, #tpu.memory_space<vmem>>, vector<1x128x16xf32>
    %1 = vector.shape_cast %0 : vector<1x128x16xf32> to vector<128x16xf32>
    %c0_2 = arith.constant 0 : index
    %c0_3 = arith.constant 0 : index
    %2 = vector.load %arg3[%c0_2, %c0_3] : memref<128x1xf32, #tpu.memory_space<vmem>>, vector<128x1xf32>
    %c0_4 = arith.constant 0 : index
    %c0_5 = arith.constant 0 : index
    %3 = vector.load %arg4[%c0_4, %c0_5] : memref<128x1xf32, #tpu.memory_space<vmem>>, vector<128x1xf32>
    %cst = arith.constant dense<0.000000e+00> : vector<16xf32>
    %4 = vector.multi_reduction <add>, %1, %cst [0] : vector<128x16xf32> to vector<16xf32>
    %5 = vector.shape_cast %4 : vector<16xf32> to vector<1x16xf32>
    %cst_6 = arith.constant 1.280000e+02 : f32
    %6 = vector.broadcast %cst_6 : f32 to vector<1x16xf32>
    %7 = arith.divf %5, %6 : vector<1x16xf32>
    %8 = vector.broadcast %7 : vector<1x16xf32> to vector<128x16xf32>
    %9 = arith.subf %1, %8 : vector<128x16xf32>
    %10 = arith.mulf %9, %9 : vector<128x16xf32>
    %cst_7 = arith.constant dense<0.000000e+00> : vector<16xf32>
    %11 = vector.multi_reduction <add>, %10, %cst_7 [0] : vector<128x16xf32> to vector<16xf32>
    %12 = vector.shape_cast %11 : vector<16xf32> to vector<1x16xf32>
    %cst_8 = arith.constant 1.280000e+02 : f32
    %13 = vector.broadcast %cst_8 : f32 to vector<1x16xf32>
    %14 = arith.divf %12, %13 : vector<1x16xf32>
    %15 = vector.broadcast %7 : vector<1x16xf32> to vector<128x16xf32>
    %16 = arith.subf %1, %15 : vector<128x16xf32>
    %cst_9 = arith.constant 9.99999974E-6 : f32
    %17 = vector.broadcast %cst_9 : f32 to vector<1x16xf32>
    %18 = arith.addf %14, %17 : vector<1x16xf32>
    %19 = math.rsqrt %18 : vector<1x16xf32>
    %20 = vector.broadcast %19 : vector<1x16xf32> to vector<128x16xf32>
    %21 = arith.mulf %16, %20 : vector<128x16xf32>
    %22 = vector.broadcast %2 : vector<128x1xf32> to vector<128x16xf32>
    %23 = arith.mulf %21, %22 : vector<128x16xf32>
    %24 = vector.broadcast %3 : vector<128x1xf32> to vector<128x16xf32>
    %25 = arith.addf %23, %24 : vector<128x16xf32>
    %c0_10 = arith.constant 0 : index
    %c0_11 = arith.constant 0 : index
    %c0_12 = arith.constant 0 : index
    %26 = vector.load %arg5[%c0_10, %c0_11, %c0_12] : memref<1x128x16xf32, #tpu.memory_space<vmem>>, vector<1x128x16xf32>
    %27 = vector.shape_cast %26 : vector<1x128x16xf32> to vector<128x16xf32>
    %28 = vector.shape_cast %25 : vector<128x16xf32> to vector<1x128x16xf32>
    tpu.vector_store %arg5[%c0_10, %c0_11, %c0_12], %28 {strides = array<i32>} : memref<1x128x16xf32, #tpu.memory_space<vmem>>, vector<1x128x16xf32>,
    return
  }
  func.func @transform_0(%arg0: i32, %arg1: i32) -> (i32, i32, i32) {
    %c0_i32 = arith.constant 0 : i32
    %c0_i32_0 = arith.constant 0 : i32
    return %arg0, %c0_i32, %arg1 : i32, i32, i32
  }
  func.func @transform_1(%arg0: i32, %arg1: i32) -> (i32, i32) {
    %c0_i32 = arith.constant 0 : i32
    %c0_i32_0 = arith.constant 0 : i32
    %c0_i32_1 = arith.constant 0 : i32
    return %c0_i32, %c0_i32_0 : i32, i32
  }
  func.func @transform_2(%arg0: i32, %arg1: i32) -> (i32, i32) {
    %c0_i32 = arith.constant 0 : i32
    %c0_i32_0 = arith.constant 0 : i32
    %c0_i32_1 = arith.constant 0 : i32
    return %c0_i32, %c0_i32_0 : i32, i32
  }
  func.func @transform_3(%arg0: i32, %arg1: i32) -> (i32, i32, i32) {
    %c0_i32 = arith.constant 0 : i32
    %c0_i32_0 = arith.constant 0 : i32
    return %arg0, %c0_i32, %arg1 : i32, i32, i32
  }
}

module attributes {stable_mosaic.version = 11 : i64} {
  func.func @_s4_tail_kernel(%arg0: i32, %arg1: i32, %arg2: memref<1x128x16xf32, #tpu.memory_space<vmem>>, %arg3: memref<1x128x16xf32, #tpu.memory_space<vmem>>, %arg4: memref<256x128xbf16, #tpu.memory_space<vmem>>, %arg5: memref<256x1xf32, #tpu.memory_space<vmem>>, %arg6: memref<128x1xf32, #tpu.memory_space<vmem>>, %arg7: memref<128x1xf32, #tpu.memory_space<vmem>>, %arg8: memref<1x128x16xbf16, #tpu.memory_space<vmem>>, %arg9: memref<1x128x16xf32, #tpu.memory_space<vmem>>) attributes {dimension_semantics = [#tpu.dimension_semantics<parallel>, #tpu.dimension_semantics<parallel>], iteration_bounds = array<i64: 2, 1>, scalar_prefetch = 0 : i64, scratch_operands = 0 : i64, tpu.core_type = #tpu.core_type<tc>, window_params = [{transform_indices = @transform_0, window_bounds = array<i64: 1, 128, 16>}, {transform_indices = @transform_1, window_bounds = array<i64: 1, 128, 16>}, {pipeline_mode = #tpu.pipeline_mode<synchronous>, transform_indices = @transform_2, window_bounds = array<i64: 256, 128>}, {pipeline_mode = #tpu.pipeline_mode<synchronous>, transform_indices = @transform_3, window_bounds = array<i64: 256, 1>}, {pipeline_mode = #tpu.pipeline_mode<synchronous>, transform_indices = @transform_4, window_bounds = array<i64: 128, 1>}, {pipeline_mode = #tpu.pipeline_mode<synchronous>, transform_indices = @transform_5, window_bounds = array<i64: 128, 1>}, {transform_indices = @transform_6, window_bounds = array<i64: 1, 128, 16>}, {transform_indices = @transform_7, window_bounds = array<i64: 1, 128, 16>}]} {
    %c0 = arith.constant 0 : index
    %c0_0 = arith.constant 0 : index
    %c0_1 = arith.constant 0 : index
    %0 = vector.load %arg3[%c0, %c0_0, %c0_1] : memref<1x128x16xf32, #tpu.memory_space<vmem>>, vector<1x128x16xf32>
    %1 = vector.shape_cast %0 : vector<1x128x16xf32> to vector<128x16xf32>
    %2 = arith.mulf %1, %1 : vector<128x16xf32>
    %3 = arith.mulf %1, %2 : vector<128x16xf32>
    %cst = arith.constant 4.471500e-02 : f32
    %4 = vector.broadcast %cst : f32 to vector<128x16xf32>
    %5 = arith.mulf %4, %3 : vector<128x16xf32>
    %6 = arith.addf %1, %5 : vector<128x16xf32>
    %cst_2 = arith.constant 0.797884583 : f32
    %7 = vector.broadcast %cst_2 : f32 to vector<128x16xf32>
    %8 = arith.mulf %7, %6 : vector<128x16xf32>
    %9 = math.tanh %8 : vector<128x16xf32>
    %cst_3 = arith.constant 1.000000e+00 : f32
    %10 = vector.broadcast %cst_3 : f32 to vector<128x16xf32>
    %11 = arith.addf %10, %9 : vector<128x16xf32>
    %cst_4 = arith.constant 5.000000e-01 : f32
    %12 = vector.broadcast %cst_4 : f32 to vector<128x16xf32>
    %13 = arith.mulf %12, %11 : vector<128x16xf32>
    %14 = arith.mulf %1, %13 : vector<128x16xf32>
    %c0_5 = arith.constant 0 : index
    %c0_6 = arith.constant 0 : index
    %15 = vector.load %arg4[%c0_5, %c0_6] : memref<256x128xbf16, #tpu.memory_space<vmem>>, vector<256x128xbf16>
    %16 = arith.truncf %14 : vector<128x16xf32> to vector<128x16xbf16>
    %cst_7 = arith.constant dense<0.000000e+00> : vector<256x16xf32>
    %17 = tpu.matmul %15, %16, %cst_7 {dimension_numbers = #tpu.dot_dimension_numbers<[1], [0], [0], [1], [0, 0, 1, 1], [], []>} : vector<256x128xbf16>, vector<128x16xbf16>, vector<256x16xf32> -> vector<256x16xf32>
    %c0_8 = arith.constant 0 : index
    %c0_9 = arith.constant 0 : index
    %18 = vector.load %arg5[%c0_8, %c0_9] : memref<256x1xf32, #tpu.memory_space<vmem>>, vector<256x1xf32>
    %19 = vector.broadcast %18 : vector<256x1xf32> to vector<256x16xf32>
    %20 = arith.addf %17, %19 : vector<256x16xf32>
    %21 = vector.extract_strided_slice %20 {offsets = [0, 0], sizes = [128, 16], strides = [1, 1]} : vector<256x16xf32> to vector<128x16xf32>
    %22 = vector.extract_strided_slice %20 {offsets = [128, 0], sizes = [128, 16], strides = [1, 1]} : vector<256x16xf32> to vector<128x16xf32>
    %23 = arith.negf %22 : vector<128x16xf32>
    %24 = math.exp %23 : vector<128x16xf32>
    %cst_10 = arith.constant 1.000000e+00 : f32
    %25 = vector.broadcast %cst_10 : f32 to vector<128x16xf32>
    %26 = arith.addf %25, %24 : vector<128x16xf32>
    %27 = arith.divf %25, %26 : vector<128x16xf32>
    %28 = arith.mulf %21, %27 : vector<128x16xf32>
    %c0_11 = arith.constant 0 : index
    %c0_12 = arith.constant 0 : index
    %c0_13 = arith.constant 0 : index
    %29 = vector.load %arg2[%c0_11, %c0_12, %c0_13] : memref<1x128x16xf32, #tpu.memory_space<vmem>>, vector<1x128x16xf32>
    %30 = vector.shape_cast %29 : vector<1x128x16xf32> to vector<128x16xf32>
    %31 = arith.addf %28, %30 : vector<128x16xf32>
    %32 = arith.truncf %31 : vector<128x16xf32> to vector<128x16xbf16>
    %c0_14 = arith.constant 0 : index
    %c0_15 = arith.constant 0 : index
    %c0_16 = arith.constant 0 : index
    %33 = vector.load %arg8[%c0_14, %c0_15, %c0_16] : memref<1x128x16xbf16, #tpu.memory_space<vmem>>, vector<1x128x16xbf16>
    %34 = vector.shape_cast %33 : vector<1x128x16xbf16> to vector<128x16xbf16>
    %35 = vector.shape_cast %32 : vector<128x16xbf16> to vector<1x128x16xbf16>
    tpu.vector_store %arg8[%c0_14, %c0_15, %c0_16], %35 {strides = array<i32>} : memref<1x128x16xbf16, #tpu.memory_space<vmem>>, vector<1x128x16xbf16>,
    %c0_17 = arith.constant 0 : index
    %c0_18 = arith.constant 0 : index
    %36 = vector.load %arg6[%c0_17, %c0_18] : memref<128x1xf32, #tpu.memory_space<vmem>>, vector<128x1xf32>
    %c0_19 = arith.constant 0 : index
    %c0_20 = arith.constant 0 : index
    %37 = vector.load %arg7[%c0_19, %c0_20] : memref<128x1xf32, #tpu.memory_space<vmem>>, vector<128x1xf32>
    %cst_21 = arith.constant dense<0.000000e+00> : vector<16xf32>
    %38 = vector.multi_reduction <add>, %31, %cst_21 [0] : vector<128x16xf32> to vector<16xf32>
    %39 = vector.shape_cast %38 : vector<16xf32> to vector<1x16xf32>
    %cst_22 = arith.constant 1.280000e+02 : f32
    %40 = vector.broadcast %cst_22 : f32 to vector<1x16xf32>
    %41 = arith.divf %39, %40 : vector<1x16xf32>
    %42 = vector.broadcast %41 : vector<1x16xf32> to vector<128x16xf32>
    %43 = arith.subf %31, %42 : vector<128x16xf32>
    %44 = arith.mulf %43, %43 : vector<128x16xf32>
    %cst_23 = arith.constant dense<0.000000e+00> : vector<16xf32>
    %45 = vector.multi_reduction <add>, %44, %cst_23 [0] : vector<128x16xf32> to vector<16xf32>
    %46 = vector.shape_cast %45 : vector<16xf32> to vector<1x16xf32>
    %cst_24 = arith.constant 1.280000e+02 : f32
    %47 = vector.broadcast %cst_24 : f32 to vector<1x16xf32>
    %48 = arith.divf %46, %47 : vector<1x16xf32>
    %49 = vector.broadcast %41 : vector<1x16xf32> to vector<128x16xf32>
    %50 = arith.subf %31, %49 : vector<128x16xf32>
    %cst_25 = arith.constant 9.99999974E-6 : f32
    %51 = vector.broadcast %cst_25 : f32 to vector<1x16xf32>
    %52 = arith.addf %48, %51 : vector<1x16xf32>
    %53 = math.rsqrt %52 : vector<1x16xf32>
    %54 = vector.broadcast %53 : vector<1x16xf32> to vector<128x16xf32>
    %55 = arith.mulf %50, %54 : vector<128x16xf32>
    %56 = vector.broadcast %36 : vector<128x1xf32> to vector<128x16xf32>
    %57 = arith.mulf %55, %56 : vector<128x16xf32>
    %58 = vector.broadcast %37 : vector<128x1xf32> to vector<128x16xf32>
    %59 = arith.addf %57, %58 : vector<128x16xf32>
    %c0_26 = arith.constant 0 : index
    %c0_27 = arith.constant 0 : index
    %c0_28 = arith.constant 0 : index
    %60 = vector.load %arg9[%c0_26, %c0_27, %c0_28] : memref<1x128x16xf32, #tpu.memory_space<vmem>>, vector<1x128x16xf32>
    %61 = vector.shape_cast %60 : vector<1x128x16xf32> to vector<128x16xf32>
    %62 = vector.shape_cast %59 : vector<128x16xf32> to vector<1x128x16xf32>
    tpu.vector_store %arg9[%c0_26, %c0_27, %c0_28], %62 {strides = array<i32>} : memref<1x128x16xf32, #tpu.memory_space<vmem>>, vector<1x128x16xf32>,
    return
  }
  func.func @transform_0(%arg0: i32, %arg1: i32) -> (i32, i32, i32) {
    %c0_i32 = arith.constant 0 : i32
    %c0_i32_0 = arith.constant 0 : i32
    return %arg0, %c0_i32, %arg1 : i32, i32, i32
  }
  func.func @transform_1(%arg0: i32, %arg1: i32) -> (i32, i32, i32) {
    %c0_i32 = arith.constant 0 : i32
    %c0_i32_0 = arith.constant 0 : i32
    return %arg0, %c0_i32, %arg1 : i32, i32, i32
  }
  func.func @transform_2(%arg0: i32, %arg1: i32) -> (i32, i32) {
    %c0_i32 = arith.constant 0 : i32
    %c0_i32_0 = arith.constant 0 : i32
    %c0_i32_1 = arith.constant 0 : i32
    return %c0_i32, %c0_i32_0 : i32, i32
  }
  func.func @transform_3(%arg0: i32, %arg1: i32) -> (i32, i32) {
    %c0_i32 = arith.constant 0 : i32
    %c0_i32_0 = arith.constant 0 : i32
    %c0_i32_1 = arith.constant 0 : i32
    return %c0_i32, %c0_i32_0 : i32, i32
  }
  func.func @transform_4(%arg0: i32, %arg1: i32) -> (i32, i32) {
    %c0_i32 = arith.constant 0 : i32
    %c0_i32_0 = arith.constant 0 : i32
    %c0_i32_1 = arith.constant 0 : i32
    return %c0_i32, %c0_i32_0 : i32, i32
  }
  func.func @transform_5(%arg0: i32, %arg1: i32) -> (i32, i32) {
    %c0_i32 = arith.constant 0 : i32
    %c0_i32_0 = arith.constant 0 : i32
    %c0_i32_1 = arith.constant 0 : i32
    return %c0_i32, %c0_i32_0 : i32, i32
  }
  func.func @transform_6(%arg0: i32, %arg1: i32) -> (i32, i32, i32) {
    %c0_i32 = arith.constant 0 : i32
    %c0_i32_0 = arith.constant 0 : i32
    return %arg0, %c0_i32, %arg1 : i32, i32, i32
  }
  func.func @transform_7(%arg0: i32, %arg1: i32) -> (i32, i32, i32) {
    %c0_i32 = arith.constant 0 : i32
    %c0_i32_0 = arith.constant 0 : i32
    return %arg0, %c0_i32, %arg1 : i32, i32, i32
  }
}

module attributes {stable_mosaic.version = 11 : i64} {
  func.func @_s4_tail_kernel(%arg0: i32, %arg1: i32, %arg2: memref<1x128x16xbf16, #tpu.memory_space<vmem>>, %arg3: memref<1x128x16xf32, #tpu.memory_space<vmem>>, %arg4: memref<256x128xbf16, #tpu.memory_space<vmem>>, %arg5: memref<256x1xf32, #tpu.memory_space<vmem>>, %arg6: memref<128x1xf32, #tpu.memory_space<vmem>>, %arg7: memref<128x1xf32, #tpu.memory_space<vmem>>, %arg8: memref<1x128x16xf32, #tpu.memory_space<vmem>>) attributes {dimension_semantics = [#tpu.dimension_semantics<parallel>, #tpu.dimension_semantics<parallel>], iteration_bounds = array<i64: 2, 1>, scalar_prefetch = 0 : i64, scratch_operands = 0 : i64, tpu.core_type = #tpu.core_type<tc>, window_params = [{transform_indices = @transform_0, window_bounds = array<i64: 1, 128, 16>}, {transform_indices = @transform_1, window_bounds = array<i64: 1, 128, 16>}, {pipeline_mode = #tpu.pipeline_mode<synchronous>, transform_indices = @transform_2, window_bounds = array<i64: 256, 128>}, {pipeline_mode = #tpu.pipeline_mode<synchronous>, transform_indices = @transform_3, window_bounds = array<i64: 256, 1>}, {pipeline_mode = #tpu.pipeline_mode<synchronous>, transform_indices = @transform_4, window_bounds = array<i64: 128, 1>}, {pipeline_mode = #tpu.pipeline_mode<synchronous>, transform_indices = @transform_5, window_bounds = array<i64: 128, 1>}, {transform_indices = @transform_6, window_bounds = array<i64: 1, 128, 16>}]} {
    %c0 = arith.constant 0 : index
    %c0_0 = arith.constant 0 : index
    %c0_1 = arith.constant 0 : index
    %0 = vector.load %arg3[%c0, %c0_0, %c0_1] : memref<1x128x16xf32, #tpu.memory_space<vmem>>, vector<1x128x16xf32>
    %1 = vector.shape_cast %0 : vector<1x128x16xf32> to vector<128x16xf32>
    %2 = arith.mulf %1, %1 : vector<128x16xf32>
    %3 = arith.mulf %1, %2 : vector<128x16xf32>
    %cst = arith.constant 4.471500e-02 : f32
    %4 = vector.broadcast %cst : f32 to vector<128x16xf32>
    %5 = arith.mulf %4, %3 : vector<128x16xf32>
    %6 = arith.addf %1, %5 : vector<128x16xf32>
    %cst_2 = arith.constant 0.797884583 : f32
    %7 = vector.broadcast %cst_2 : f32 to vector<128x16xf32>
    %8 = arith.mulf %7, %6 : vector<128x16xf32>
    %9 = math.tanh %8 : vector<128x16xf32>
    %cst_3 = arith.constant 1.000000e+00 : f32
    %10 = vector.broadcast %cst_3 : f32 to vector<128x16xf32>
    %11 = arith.addf %10, %9 : vector<128x16xf32>
    %cst_4 = arith.constant 5.000000e-01 : f32
    %12 = vector.broadcast %cst_4 : f32 to vector<128x16xf32>
    %13 = arith.mulf %12, %11 : vector<128x16xf32>
    %14 = arith.mulf %1, %13 : vector<128x16xf32>
    %c0_5 = arith.constant 0 : index
    %c0_6 = arith.constant 0 : index
    %15 = vector.load %arg4[%c0_5, %c0_6] : memref<256x128xbf16, #tpu.memory_space<vmem>>, vector<256x128xbf16>
    %16 = arith.truncf %14 : vector<128x16xf32> to vector<128x16xbf16>
    %cst_7 = arith.constant dense<0.000000e+00> : vector<256x16xf32>
    %17 = tpu.matmul %15, %16, %cst_7 {dimension_numbers = #tpu.dot_dimension_numbers<[1], [0], [0], [1], [0, 0, 1, 1], [], []>} : vector<256x128xbf16>, vector<128x16xbf16>, vector<256x16xf32> -> vector<256x16xf32>
    %c0_8 = arith.constant 0 : index
    %c0_9 = arith.constant 0 : index
    %18 = vector.load %arg5[%c0_8, %c0_9] : memref<256x1xf32, #tpu.memory_space<vmem>>, vector<256x1xf32>
    %19 = vector.broadcast %18 : vector<256x1xf32> to vector<256x16xf32>
    %20 = arith.addf %17, %19 : vector<256x16xf32>
    %21 = vector.extract_strided_slice %20 {offsets = [0, 0], sizes = [128, 16], strides = [1, 1]} : vector<256x16xf32> to vector<128x16xf32>
    %22 = vector.extract_strided_slice %20 {offsets = [128, 0], sizes = [128, 16], strides = [1, 1]} : vector<256x16xf32> to vector<128x16xf32>
    %23 = arith.negf %22 : vector<128x16xf32>
    %24 = math.exp %23 : vector<128x16xf32>
    %cst_10 = arith.constant 1.000000e+00 : f32
    %25 = vector.broadcast %cst_10 : f32 to vector<128x16xf32>
    %26 = arith.addf %25, %24 : vector<128x16xf32>
    %27 = arith.divf %25, %26 : vector<128x16xf32>
    %28 = arith.mulf %21, %27 : vector<128x16xf32>
    %c0_11 = arith.constant 0 : index
    %c0_12 = arith.constant 0 : index
    %c0_13 = arith.constant 0 : index
    %29 = vector.load %arg2[%c0_11, %c0_12, %c0_13] : memref<1x128x16xbf16, #tpu.memory_space<vmem>>, vector<1x128x16xbf16>
    %30 = vector.shape_cast %29 : vector<1x128x16xbf16> to vector<128x16xbf16>
    %31 = arith.extf %30 : vector<128x16xbf16> to vector<128x16xf32>
    %32 = arith.addf %28, %31 : vector<128x16xf32>
    %c0_14 = arith.constant 0 : index
    %c0_15 = arith.constant 0 : index
    %c0_16 = arith.constant 0 : index
    %33 = vector.load %arg8[%c0_14, %c0_15, %c0_16] : memref<1x128x16xf32, #tpu.memory_space<vmem>>, vector<1x128x16xf32>
    %34 = vector.shape_cast %33 : vector<1x128x16xf32> to vector<128x16xf32>
    %35 = vector.shape_cast %32 : vector<128x16xf32> to vector<1x128x16xf32>
    tpu.vector_store %arg8[%c0_14, %c0_15, %c0_16], %35 {strides = array<i32>} : memref<1x128x16xf32, #tpu.memory_space<vmem>>, vector<1x128x16xf32>,
    return
  }
  func.func @transform_0(%arg0: i32, %arg1: i32) -> (i32, i32, i32) {
    %c0_i32 = arith.constant 0 : i32
    %c0_i32_0 = arith.constant 0 : i32
    return %arg0, %c0_i32, %arg1 : i32, i32, i32
  }
  func.func @transform_1(%arg0: i32, %arg1: i32) -> (i32, i32, i32) {
    %c0_i32 = arith.constant 0 : i32
    %c0_i32_0 = arith.constant 0 : i32
    return %arg0, %c0_i32, %arg1 : i32, i32, i32
  }
  func.func @transform_2(%arg0: i32, %arg1: i32) -> (i32, i32) {
    %c0_i32 = arith.constant 0 : i32
    %c0_i32_0 = arith.constant 0 : i32
    %c0_i32_1 = arith.constant 0 : i32
    return %c0_i32, %c0_i32_0 : i32, i32
  }
  func.func @transform_3(%arg0: i32, %arg1: i32) -> (i32, i32) {
    %c0_i32 = arith.constant 0 : i32
    %c0_i32_0 = arith.constant 0 : i32
    %c0_i32_1 = arith.constant 0 : i32
    return %c0_i32, %c0_i32_0 : i32, i32
  }
  func.func @transform_4(%arg0: i32, %arg1: i32) -> (i32, i32) {
    %c0_i32 = arith.constant 0 : i32
    %c0_i32_0 = arith.constant 0 : i32
    %c0_i32_1 = arith.constant 0 : i32
    return %c0_i32, %c0_i32_0 : i32, i32
  }
  func.func @transform_5(%arg0: i32, %arg1: i32) -> (i32, i32) {
    %c0_i32 = arith.constant 0 : i32
    %c0_i32_0 = arith.constant 0 : i32
    %c0_i32_1 = arith.constant 0 : i32
    return %c0_i32, %c0_i32_0 : i32, i32
  }
  func.func @transform_6(%arg0: i32, %arg1: i32) -> (i32, i32, i32) {
    %c0_i32 = arith.constant 0 : i32
    %c0_i32_0 = arith.constant 0 : i32
    return %arg0, %c0_i32, %arg1 : i32, i32, i32
  }
}

module attributes {stable_mosaic.version = 11 : i64} {
  func.func @_s4_tail_kernel(%arg0: i32, %arg1: i32, %arg2: memref<1x128x16xbf16, #tpu.memory_space<vmem>>, %arg3: memref<1x128x16xf32, #tpu.memory_space<vmem>>, %arg4: memref<256x128xbf16, #tpu.memory_space<vmem>>, %arg5: memref<256x1xf32, #tpu.memory_space<vmem>>, %arg6: memref<128x1xf32, #tpu.memory_space<vmem>>, %arg7: memref<128x1xf32, #tpu.memory_space<vmem>>, %arg8: memref<1x128x16xbf16, #tpu.memory_space<vmem>>, %arg9: memref<1x128x16xf32, #tpu.memory_space<vmem>>) attributes {dimension_semantics = [#tpu.dimension_semantics<parallel>, #tpu.dimension_semantics<parallel>], iteration_bounds = array<i64: 2, 1>, scalar_prefetch = 0 : i64, scratch_operands = 0 : i64, tpu.core_type = #tpu.core_type<tc>, window_params = [{transform_indices = @transform_0, window_bounds = array<i64: 1, 128, 16>}, {transform_indices = @transform_1, window_bounds = array<i64: 1, 128, 16>}, {pipeline_mode = #tpu.pipeline_mode<synchronous>, transform_indices = @transform_2, window_bounds = array<i64: 256, 128>}, {pipeline_mode = #tpu.pipeline_mode<synchronous>, transform_indices = @transform_3, window_bounds = array<i64: 256, 1>}, {pipeline_mode = #tpu.pipeline_mode<synchronous>, transform_indices = @transform_4, window_bounds = array<i64: 128, 1>}, {pipeline_mode = #tpu.pipeline_mode<synchronous>, transform_indices = @transform_5, window_bounds = array<i64: 128, 1>}, {transform_indices = @transform_6, window_bounds = array<i64: 1, 128, 16>}, {transform_indices = @transform_7, window_bounds = array<i64: 1, 128, 16>}]} {
    %c0 = arith.constant 0 : index
    %c0_0 = arith.constant 0 : index
    %c0_1 = arith.constant 0 : index
    %0 = vector.load %arg3[%c0, %c0_0, %c0_1] : memref<1x128x16xf32, #tpu.memory_space<vmem>>, vector<1x128x16xf32>
    %1 = vector.shape_cast %0 : vector<1x128x16xf32> to vector<128x16xf32>
    %2 = arith.mulf %1, %1 : vector<128x16xf32>
    %3 = arith.mulf %1, %2 : vector<128x16xf32>
    %cst = arith.constant 4.471500e-02 : f32
    %4 = vector.broadcast %cst : f32 to vector<128x16xf32>
    %5 = arith.mulf %4, %3 : vector<128x16xf32>
    %6 = arith.addf %1, %5 : vector<128x16xf32>
    %cst_2 = arith.constant 0.797884583 : f32
    %7 = vector.broadcast %cst_2 : f32 to vector<128x16xf32>
    %8 = arith.mulf %7, %6 : vector<128x16xf32>
    %9 = math.tanh %8 : vector<128x16xf32>
    %cst_3 = arith.constant 1.000000e+00 : f32
    %10 = vector.broadcast %cst_3 : f32 to vector<128x16xf32>
    %11 = arith.addf %10, %9 : vector<128x16xf32>
    %cst_4 = arith.constant 5.000000e-01 : f32
    %12 = vector.broadcast %cst_4 : f32 to vector<128x16xf32>
    %13 = arith.mulf %12, %11 : vector<128x16xf32>
    %14 = arith.mulf %1, %13 : vector<128x16xf32>
    %c0_5 = arith.constant 0 : index
    %c0_6 = arith.constant 0 : index
    %15 = vector.load %arg4[%c0_5, %c0_6] : memref<256x128xbf16, #tpu.memory_space<vmem>>, vector<256x128xbf16>
    %16 = arith.truncf %14 : vector<128x16xf32> to vector<128x16xbf16>
    %cst_7 = arith.constant dense<0.000000e+00> : vector<256x16xf32>
    %17 = tpu.matmul %15, %16, %cst_7 {dimension_numbers = #tpu.dot_dimension_numbers<[1], [0], [0], [1], [0, 0, 1, 1], [], []>} : vector<256x128xbf16>, vector<128x16xbf16>, vector<256x16xf32> -> vector<256x16xf32>
    %c0_8 = arith.constant 0 : index
    %c0_9 = arith.constant 0 : index
    %18 = vector.load %arg5[%c0_8, %c0_9] : memref<256x1xf32, #tpu.memory_space<vmem>>, vector<256x1xf32>
    %19 = vector.broadcast %18 : vector<256x1xf32> to vector<256x16xf32>
    %20 = arith.addf %17, %19 : vector<256x16xf32>
    %21 = vector.extract_strided_slice %20 {offsets = [0, 0], sizes = [128, 16], strides = [1, 1]} : vector<256x16xf32> to vector<128x16xf32>
    %22 = vector.extract_strided_slice %20 {offsets = [128, 0], sizes = [128, 16], strides = [1, 1]} : vector<256x16xf32> to vector<128x16xf32>
    %23 = arith.negf %22 : vector<128x16xf32>
    %24 = math.exp %23 : vector<128x16xf32>
    %cst_10 = arith.constant 1.000000e+00 : f32
    %25 = vector.broadcast %cst_10 : f32 to vector<128x16xf32>
    %26 = arith.addf %25, %24 : vector<128x16xf32>
    %27 = arith.divf %25, %26 : vector<128x16xf32>
    %28 = arith.mulf %21, %27 : vector<128x16xf32>
    %c0_11 = arith.constant 0 : index
    %c0_12 = arith.constant 0 : index
    %c0_13 = arith.constant 0 : index
    %29 = vector.load %arg2[%c0_11, %c0_12, %c0_13] : memref<1x128x16xbf16, #tpu.memory_space<vmem>>, vector<1x128x16xbf16>
    %30 = vector.shape_cast %29 : vector<1x128x16xbf16> to vector<128x16xbf16>
    %31 = arith.extf %30 : vector<128x16xbf16> to vector<128x16xf32>
    %32 = arith.addf %28, %31 : vector<128x16xf32>
    %33 = arith.truncf %32 : vector<128x16xf32> to vector<128x16xbf16>
    %c0_14 = arith.constant 0 : index
    %c0_15 = arith.constant 0 : index
    %c0_16 = arith.constant 0 : index
    %34 = vector.load %arg8[%c0_14, %c0_15, %c0_16] : memref<1x128x16xbf16, #tpu.memory_space<vmem>>, vector<1x128x16xbf16>
    %35 = vector.shape_cast %34 : vector<1x128x16xbf16> to vector<128x16xbf16>
    %36 = vector.shape_cast %33 : vector<128x16xbf16> to vector<1x128x16xbf16>
    tpu.vector_store %arg8[%c0_14, %c0_15, %c0_16], %36 {strides = array<i32>} : memref<1x128x16xbf16, #tpu.memory_space<vmem>>, vector<1x128x16xbf16>,
    %c0_17 = arith.constant 0 : index
    %c0_18 = arith.constant 0 : index
    %37 = vector.load %arg6[%c0_17, %c0_18] : memref<128x1xf32, #tpu.memory_space<vmem>>, vector<128x1xf32>
    %c0_19 = arith.constant 0 : index
    %c0_20 = arith.constant 0 : index
    %38 = vector.load %arg7[%c0_19, %c0_20] : memref<128x1xf32, #tpu.memory_space<vmem>>, vector<128x1xf32>
    %cst_21 = arith.constant dense<0.000000e+00> : vector<16xf32>
    %39 = vector.multi_reduction <add>, %32, %cst_21 [0] : vector<128x16xf32> to vector<16xf32>
    %40 = vector.shape_cast %39 : vector<16xf32> to vector<1x16xf32>
    %cst_22 = arith.constant 1.280000e+02 : f32
    %41 = vector.broadcast %cst_22 : f32 to vector<1x16xf32>
    %42 = arith.divf %40, %41 : vector<1x16xf32>
    %43 = vector.broadcast %42 : vector<1x16xf32> to vector<128x16xf32>
    %44 = arith.subf %32, %43 : vector<128x16xf32>
    %45 = arith.mulf %44, %44 : vector<128x16xf32>
    %cst_23 = arith.constant dense<0.000000e+00> : vector<16xf32>
    %46 = vector.multi_reduction <add>, %45, %cst_23 [0] : vector<128x16xf32> to vector<16xf32>
    %47 = vector.shape_cast %46 : vector<16xf32> to vector<1x16xf32>
    %cst_24 = arith.constant 1.280000e+02 : f32
    %48 = vector.broadcast %cst_24 : f32 to vector<1x16xf32>
    %49 = arith.divf %47, %48 : vector<1x16xf32>
    %50 = vector.broadcast %42 : vector<1x16xf32> to vector<128x16xf32>
    %51 = arith.subf %32, %50 : vector<128x16xf32>
    %cst_25 = arith.constant 9.99999974E-6 : f32
    %52 = vector.broadcast %cst_25 : f32 to vector<1x16xf32>
    %53 = arith.addf %49, %52 : vector<1x16xf32>
    %54 = math.rsqrt %53 : vector<1x16xf32>
    %55 = vector.broadcast %54 : vector<1x16xf32> to vector<128x16xf32>
    %56 = arith.mulf %51, %55 : vector<128x16xf32>
    %57 = vector.broadcast %37 : vector<128x1xf32> to vector<128x16xf32>
    %58 = arith.mulf %56, %57 : vector<128x16xf32>
    %59 = vector.broadcast %38 : vector<128x1xf32> to vector<128x16xf32>
    %60 = arith.addf %58, %59 : vector<128x16xf32>
    %c0_26 = arith.constant 0 : index
    %c0_27 = arith.constant 0 : index
    %c0_28 = arith.constant 0 : index
    %61 = vector.load %arg9[%c0_26, %c0_27, %c0_28] : memref<1x128x16xf32, #tpu.memory_space<vmem>>, vector<1x128x16xf32>
    %62 = vector.shape_cast %61 : vector<1x128x16xf32> to vector<128x16xf32>
    %63 = vector.shape_cast %60 : vector<128x16xf32> to vector<1x128x16xf32>
    tpu.vector_store %arg9[%c0_26, %c0_27, %c0_28], %63 {strides = array<i32>} : memref<1x128x16xf32, #tpu.memory_space<vmem>>, vector<1x128x16xf32>,
    return
  }
  func.func @transform_0(%arg0: i32, %arg1: i32) -> (i32, i32, i32) {
    %c0_i32 = arith.constant 0 : i32
    %c0_i32_0 = arith.constant 0 : i32
    return %arg0, %c0_i32, %arg1 : i32, i32, i32
  }
  func.func @transform_1(%arg0: i32, %arg1: i32) -> (i32, i32, i32) {
    %c0_i32 = arith.constant 0 : i32
    %c0_i32_0 = arith.constant 0 : i32
    return %arg0, %c0_i32, %arg1 : i32, i32, i32
  }
  func.func @transform_2(%arg0: i32, %arg1: i32) -> (i32, i32) {
    %c0_i32 = arith.constant 0 : i32
    %c0_i32_0 = arith.constant 0 : i32
    %c0_i32_1 = arith.constant 0 : i32
    return %c0_i32, %c0_i32_0 : i32, i32
  }
  func.func @transform_3(%arg0: i32, %arg1: i32) -> (i32, i32) {
    %c0_i32 = arith.constant 0 : i32
    %c0_i32_0 = arith.constant 0 : i32
    %c0_i32_1 = arith.constant 0 : i32
    return %c0_i32, %c0_i32_0 : i32, i32
  }
  func.func @transform_4(%arg0: i32, %arg1: i32) -> (i32, i32) {
    %c0_i32 = arith.constant 0 : i32
    %c0_i32_0 = arith.constant 0 : i32
    %c0_i32_1 = arith.constant 0 : i32
    return %c0_i32, %c0_i32_0 : i32, i32
  }
  func.func @transform_5(%arg0: i32, %arg1: i32) -> (i32, i32) {
    %c0_i32 = arith.constant 0 : i32
    %c0_i32_0 = arith.constant 0 : i32
    %c0_i32_1 = arith.constant 0 : i32
    return %c0_i32, %c0_i32_0 : i32, i32
  }
  func.func @transform_6(%arg0: i32, %arg1: i32) -> (i32, i32, i32) {
    %c0_i32 = arith.constant 0 : i32
    %c0_i32_0 = arith.constant 0 : i32
    return %arg0, %c0_i32, %arg1 : i32, i32, i32
  }
  func.func @transform_7(%arg0: i32, %arg1: i32) -> (i32, i32, i32) {
    %c0_i32 = arith.constant 0 : i32
    %c0_i32_0 = arith.constant 0 : i32
    return %arg0, %c0_i32, %arg1 : i32, i32, i32
  }
}

</mosaic_0001>

<bundles_post_ra>
// kernel: s4net_forward.4
= control target key start
LH: loop header
LB: loop body
LE: loop exit
PB: predicated region body
PF: predicated region fallthrough
CT: control target
= control target key end

     0   :  { %s756_s12 = smov 0   ;;  %s758_s13 = smov 0   ;;  %s1150_s0 = inlined_call_operand.vmem [shape: f32[2,128,16], index: 0, kind: input, shape index: {}]   ;;  %s1151_s1 = inlined_call_operand.vmem [shape: f32[128,1], index: 1, kind: input, shape index: {}]   ;;  %s1152_s2 = inlined_call_operand.vmem [shape: f32[128,1], index: 2, kind: input, shape index: {}]   ;;  %s1153_s3 = inlined_call_operand.vmem [shape: f32[2,128,16], index: 3, kind: output, shape index: {}]  }
   0x1   :  { %s760_s14 = smov 0  }
   0x2 LB: > { %s25_s15 = sadd.s32 1, %s729_s13  ;;  %p673_p0 = scmp.ge.s32.totalorder %s733_s14, 1  ;;  %s733_s14 = sphi %s760_s14, %s13_s14   ;;  %s729_s13 = sphi %s758_s13, %s1155_s13   ;;  %s725_s12 = sphi %s756_s12, %s1154_s12  }
   0x3   : > { %p27_p1 = scmp.ge.s32.totalorder %s25_s15, 2  ;;  %p156_p2 = scmp.lt.s32.totalorder %s733_s14, 3 }
   0x5   : > { %s1157_s15 = smov (%p27_p1, %s25_s15), 0  ;;  %p157_p3 = pnand %p673_p0, %p156_p2 }
   0x6   : > { %v220_v0 = vld [vmem:[%s1151_s1 + $0x10] sm:$0xff] (!%p157_p3)  ;;  %v218_v1 = vld [vmem:[%s1151_s1] sm:$0xff] (!%p157_p3)  ;;  %p186_p4 = scmp.lt.s32.totalorder (!%p157_p3), %s725_s12, 1  ;;  %v735_v2 = vmov (!%p157_p3), 0   ;;  %v221_v3 = vld [vmem:[%s1151_s1 + $0x18] sm:$0xff] (!%p157_p3)  ;;  %vm250_vm0 = vcmask (!%p157_p3), 130048  }
   0x7   : > { %160 = sbr.rel (%p157_p3) target bundleno = 199 (0xc7), region = 32  ;;  %708 = vset.pattern.permute.xlu1 (!%p157_p3), %v735_v2  ;;  %707 = vset.pattern.permute.xlu0 (!%p157_p3), %v735_v2  ;;  %v219_v4 = vld [vmem:[%s1151_s1 + $0x8] sm:$0xff] (!%p157_p3)  ;;  %v222_v6 = vld [vmem:[%s1151_s1 + $0x20] sm:$0xff] (!%p157_p3)  ;;  %v225_v7 = vld [vmem:[%s1151_s1 + $0x38] sm:$0xff] (!%p157_p3) }
   0x8   : > { %390 = vperm.xlu1 (!%p157_p3), %708, %v220_v0   ;;  %380 = vperm.xlu0 (!%p157_p3), %707, %v218_v1   ;;  %v223_v5 = vld [vmem:[%s1151_s1 + $0x28] sm:$0xff] (!%p157_p3)  ;;  %v224_v8 = vld [vmem:[%s1151_s1 + $0x30] sm:$0xff] (!%p157_p3)  ;;  %v226_v20 = vld [vmem:[%s1151_s1 + $0x40] sm:$0xff] (!%p157_p3) }
   0x9   : > { %v227_v19 = vld [vmem:[%s1151_s1 + $0x48] sm:$0xff] (!%p157_p3)  ;;  %v229_v27 = vld [vmem:[%s1151_s1 + $0x58] sm:$0xff] (!%p157_p3)  ;;  %v228_v28 = vld [vmem:[%s1151_s1 + $0x50] sm:$0xff] (!%p157_p3) }
   0xa   : > { %v231_v35 = vld [vmem:[%s1151_s1 + $0x68] sm:$0xff] (!%p157_p3)  ;;  %v230_v36 = vld [vmem:[%s1151_s1 + $0x60] sm:$0xff] (!%p157_p3)  ;;  %v233_v43 = vld [vmem:[%s1151_s1 + $0x78] sm:$0xff] (!%p157_p3) }
   0xb   : > { %v232_v44 = vld [vmem:[%s1151_s1 + $0x70] sm:$0xff] (!%p157_p3)  ;;  %v235_v51 = vld [vmem:[%s1152_s2 + $0x8] sm:$0xff] (!%p157_p3)  ;;  %v234_v52 = vld [vmem:[%s1152_s2] sm:$0xff] (!%p157_p3) }
   0xc   : > { %395 = vperm.xlu1 (!%p157_p3), %708, %v221_v3   ;;  %385 = vperm.xlu0 (!%p157_p3), %707, %v219_v4   ;;  %v237_v59 = vld [vmem:[%s1152_s2 + $0x18] sm:$0xff] (!%p157_p3)  ;;  %v236_v60 = vld [vmem:[%s1152_s2 + $0x10] sm:$0xff] (!%p157_p3)  ;;  %v239_v2 = vld [vmem:[%s1152_s2 + $0x28] sm:$0xff] (!%p157_p3) }
   0xd   : > { %v238_v3 = vld [vmem:[%s1152_s2 + $0x20] sm:$0xff] (!%p157_p3) }
   0xe   : > { %s1159_s12 = smov (!%p186_p4, %s725_s12), 1 }
   0xf   : > { %s680_s24 = sshll.u32 %s1159_s12, 7 }
  0x10   : > { %s800_s4 = scalar_lea.vmem %s1150_s0, %s680_s24  ;;  %405 = vperm.xlu1 %708, %v223_v5   ;;  %400 = vperm.xlu0 %707, %v222_v6   ;;  %v241_v6 = vld [vmem:[%s1152_s2 + $0x38] sm:$0xff] }
  0x11   : > { %v809_v9 = vld [vmem:[%s800_s4] sm:$0xff]  ;;  %v812_v10 = vld [vmem:[%s800_s4 + $0x8] sm:$0xff]  ;;  %v815_v11 = vld [vmem:[%s800_s4 + $0x10] sm:$0xff] }
  0x12   : > { %v818_v12 = vld [vmem:[%s800_s4 + $0x18] sm:$0xff]  ;;  %v251_v13 = vsel %vm250_vm0, %v809_v9, 0.0  ;;  %v252_v14 = vsel %vm250_vm0, %v812_v10, 0.0  ;;  %v254_v15 = vsel %vm250_vm0, %v815_v11, 0.0  ;;  %v827_v16 = vld [vmem:[%s800_s4 + $0x20] sm:$0xff]  ;;  %v838_v21 = vld [vmem:[%s800_s4 + $0x28] sm:$0xff] }
  0x13   : > { %v253_v17 = vadd.f32 %v252_v14, %v251_v13  ;;  %v256_v18 = vsel %vm250_vm0, %v818_v12, 0.0  ;;  %v258_v23 = vsel %vm250_vm0, %v827_v16, 0.0  ;;  %v843_v24 = vld [vmem:[%s800_s4 + $0x30] sm:$0xff]  ;;  %v260_v26 = vsel %vm250_vm0, %v838_v21, 0.0  ;;  %v854_v29 = vld [vmem:[%s800_s4 + $0x38] sm:$0xff]  ;;  %v859_v32 = vld [vmem:[%s800_s4 + $0x40] sm:$0xff] }
  0x14   : > { %415 = vperm.xlu1 %708, %v225_v7   ;;  %410 = vperm.xlu0 %707, %v224_v8   ;;  %v262_v31 = vsel %vm250_vm0, %v843_v24, 0.0  ;;  %v264_v34 = vsel %vm250_vm0, %v854_v29, 0.0  ;;  %v870_v37 = vld [vmem:[%s800_s4 + $0x48] sm:$0xff]  ;;  %v266_v39 = vsel %vm250_vm0, %v859_v32, 0.0  ;;  %v875_v40 = vld [vmem:[%s800_s4 + $0x50] sm:$0xff]  ;;  %v886_v45 = vld [vmem:[%s800_s4 + $0x58] sm:$0xff] }
  0x15   : > { %v255_v22 = vadd.f32 %v254_v15, %v253_v17  ;;  %v268_v42 = vsel %vm250_vm0, %v870_v37, 0.0  ;;  %v270_v47 = vsel %vm250_vm0, %v875_v40, 0.0  ;;  %v891_v48 = vld [vmem:[%s800_s4 + $0x60] sm:$0xff]  ;;  %v272_v50 = vsel %vm250_vm0, %v886_v45, 0.0  ;;  %v902_v53 = vld [vmem:[%s800_s4 + $0x68] sm:$0xff]  ;;  %v907_v56 = vld [vmem:[%s800_s4 + $0x70] sm:$0xff] }
  0x16   : > { %v274_v55 = vsel %vm250_vm0, %v891_v48, 0.0  ;;  %v276_v58 = vsel %vm250_vm0, %v902_v53, 0.0  ;;  %v918_v61 = vld [vmem:[%s800_s4 + $0x78] sm:$0xff]  ;;  %v278_v63 = vsel %vm250_vm0, %v907_v56, 0.0  ;;  %v240_v7 = vld [vmem:[%s1152_s2 + $0x30] sm:$0xff]  ;;  %v243_v14 = vld [vmem:[%s1152_s2 + $0x48] sm:$0xff]  ;;  %s1079_s4 = scalar_lea.vmem %s1153_s3, %s680_s24 }
  0x17   : > { %v257_v25 = vadd.f32 %v256_v18, %v255_v22  ;;  %v280_v1 = vsel %vm250_vm0, %v918_v61, 0.0  ;;  %v242_v15 = vld [vmem:[%s1152_s2 + $0x40] sm:$0xff] }
  0x18   : > { %425 = vperm.xlu1 %708, %v227_v19   ;;  %420 = vperm.xlu0 %707, %v226_v20   ;;  %v245_v19 = vld [vmem:[%s1152_s2 + $0x58] sm:$0xff]  ;;  %v244_v20 = vld [vmem:[%s1152_s2 + $0x50] sm:$0xff] }
  0x19   : > { %v259_v30 = vadd.f32 %v258_v23, %v257_v25  ;;  %v247_v25 = vld [vmem:[%s1152_s2 + $0x68] sm:$0xff] }
  0x1b   : > { %v261_v33 = vadd.f32 %v260_v26, %v259_v30  ;;  %v246_v26 = vld [vmem:[%s1152_s2 + $0x60] sm:$0xff] }
  0x1c   : > { %435 = vperm.xlu1 %708, %v229_v27   ;;  %430 = vperm.xlu0 %707, %v228_v28  }
  0x1d   : > { %v263_v38 = vadd.f32 %v262_v31, %v261_v33  ;;  %v249_v33 = vld [vmem:[%s1152_s2 + $0x78] sm:$0xff] }
  0x1f   : > { %v265_v41 = vadd.f32 %v264_v34, %v263_v38  ;;  %v248_v34 = vld [vmem:[%s1152_s2 + $0x70] sm:$0xff] }
  0x20   : > { %445 = vperm.xlu1 %708, %v231_v35   ;;  %440 = vperm.xlu0 %707, %v230_v36  }
  0x21   : > { %v267_v46 = vadd.f32 %v266_v39, %v265_v41 }
  0x23   : > { %v269_v49 = vadd.f32 %v268_v42, %v267_v46 }
  0x24   : > { %455 = vperm.xlu1 %708, %v233_v43   ;;  %450 = vperm.xlu0 %707, %v232_v44  }
  0x25   : > { %v271_v54 = vadd.f32 %v270_v47, %v269_v49 }
  0x27   : > { %v273_v57 = vadd.f32 %v272_v50, %v271_v54 }
  0x28   : > { %481 = vperm.xlu1 %708, %v235_v51   ;;  %476 = vperm.xlu0 %707, %v234_v52  }
  0x29   : > { %v275_v62 = vadd.f32 %v274_v55, %v273_v57 }
  0x2b   : > { %v277_v0 = vadd.f32 %v276_v58, %v275_v62 }
  0x2c   : > { %491 = vperm.xlu1 %708, %v237_v59   ;;  %486 = vperm.xlu0 %707, %v236_v60  }
  0x2d   : > { %v279_v4 = vadd.f32 %v278_v63, %v277_v0 }
  0x2f   : > { %v281_v5 = vadd.f32 %v280_v1, %v279_v4 }
  0x30   : > { %501 = vperm.xlu1 %708, %v239_v2   ;;  %496 = vperm.xlu0 %707, %v238_v3  }
  0x31   : > { %v282_v8 = vrot.slane %v281_v5, 4 }
  0x33   : > { %v283_v13 = vadd.f32 %v282_v8, %v281_v5 }
  0x34   : > { %511 = vperm.xlu1 %708, %v241_v6   ;;  %506 = vperm.xlu0 %707, %v240_v7  }
  0x35   : > { %v284_v17 = vrot.slane %v283_v13, 2 }
  0x37   : > { %v285_v18 = vadd.f32 %v284_v17, %v283_v13 }
  0x38   : > { %521 = vperm.xlu1 %708, %v243_v14   ;;  %516 = vperm.xlu0 %707, %v242_v15  }
  0x39   : > { %v286_v22 = vrot.slane %v285_v18, 1 }
  0x3b   : > { %v287_v23 = vadd.f32 %v286_v22, %v285_v18 }
  0x3c   : > { %531 = vperm.xlu1 %708, %v245_v19   ;;  %526 = vperm.xlu0 %707, %v244_v20  }
  0x3d   : > { %v289_v27 = vmul.f32 0.0078125, %v287_v23 }
  0x3f   : > { %v955_v28 = vsub.f32 %v809_v9, %v289_v27  ;;  %v958_v30 = vsub.f32 %v812_v10, %v289_v27  ;;  %v961_v31 = vsub.f32 %v815_v11, %v289_v27  ;;  %v970_v35 = vsub.f32 %v818_v12, %v289_v27 }
  0x40   : > { %541 = vperm.xlu1 %708, %v247_v25   ;;  %536 = vperm.xlu0 %707, %v246_v26   ;;  %v973_v9 = vsub.f32 %v827_v16, %v289_v27  ;;  %v982_v38 = vsub.f32 %v838_v21, %v289_v27  ;;  %v987_v16 = vsub.f32 %v843_v24, %v289_v27 }
  0x41   : > { %v306_v10 = vmul.f32 %v955_v28, %v955_v28  ;;  %v307_v11 = vmul.f32 %v958_v30, %v958_v30  ;;  %v308_v36 = vmul.f32 %v961_v31, %v961_v31  ;;  %v309_v12 = vmul.f32 %v970_v35, %v970_v35 }
  0x42   : > { %v310_v39 = vmul.f32 %v973_v9, %v973_v9  ;;  %v995_v46 = vsub.f32 %v854_v29, %v289_v27  ;;  %v311_v21 = vmul.f32 %v982_v38, %v982_v38  ;;  %v1001_v49 = vsub.f32 %v859_v32, %v289_v27 }
  0x43   : > { %v322_v41 = vsel %vm250_vm0, %v306_v10, 0.0  ;;  %v323_v42 = vsel %vm250_vm0, %v307_v11, 0.0  ;;  %v325_v44 = vsel %vm250_vm0, %v308_v36, 0.0  ;;  %v327_v47 = vsel %vm250_vm0, %v309_v12, 0.0 }
  0x44   : > { %551 = vperm.xlu1 %708, %v249_v33   ;;  %546 = vperm.xlu0 %707, %v248_v34   ;;  %v324_v43 = vadd.f32 %v323_v42, %v322_v41  ;;  %v312_v50 = vmul.f32 %v987_v16, %v987_v16  ;;  %v329_v51 = vsel %vm250_vm0, %v310_v39, 0.0  ;;  %v313_v54 = vmul.f32 %v995_v46, %v995_v46 }
  0x45   : > { %v331_v29 = vsel %vm250_vm0, %v311_v21, 0.0  ;;  %v1010_v55 = vsub.f32 %v870_v37, %v289_v27  ;;  %v314_v58 = vmul.f32 %v1001_v49, %v1001_v49  ;;  %v1017_v62 = vsub.f32 %v875_v40, %v289_v27 }
  0x46   : > { %v326_v24 = vadd.f32 %v325_v44, %v324_v43  ;;  %v333_v32 = vsel %vm250_vm0, %v312_v50, 0.0  ;;  %v335_v60 = vsel %vm250_vm0, %v313_v54, 0.0  ;;  %v1023_v2 = vsub.f32 %v886_v45, %v289_v27 }
  0x47   : > { %v315_v63 = vmul.f32 %v1010_v55, %v1010_v55  ;;  %v337_v1 = vsel %vm250_vm0, %v314_v58, 0.0  ;;  %v316_v3 = vmul.f32 %v1017_v62, %v1017_v62  ;;  %v1029_v40 = vsub.f32 %v891_v48, %v289_v27 }
  0x48   : > { %v328_v52 = vadd.f32 %v327_v47, %v326_v24  ;;  %v317_v7 = vmul.f32 %v1023_v2, %v1023_v2  ;;  %v1035_v14 = vsub.f32 %v902_v53, %v289_v27  ;;  %v1041_v18 = vsub.f32 %v907_v56, %v289_v27 }
  0x49   : > { %v339_v5 = vsel %vm250_vm0, %v315_v63, 0.0  ;;  %v341_v8 = vsel %vm250_vm0, %v316_v3, 0.0  ;;  %v318_v45 = vmul.f32 %v1029_v40, %v1029_v40  ;;  %v1047_v22 = vsub.f32 %v918_v61, %v289_v27 }
  0x4a   : > { %v330_v57 = vadd.f32 %v329_v51, %v328_v52  ;;  %v343_v15 = vsel %vm250_vm0, %v317_v7, 0.0  ;;  %v319_v48 = vmul.f32 %v1035_v14, %v1035_v14  ;;  %v320_v53 = vmul.f32 %v1041_v18, %v1041_v18 }
  0x4b   : > { %v345_v19 = vsel %vm250_vm0, %v318_v45, 0.0  ;;  %v321_v26 = vmul.f32 %v1047_v22, %v1047_v22 }
  0x4c   : > { %v332_v59 = vadd.f32 %v331_v29, %v330_v57  ;;  %v347_v23 = vsel %vm250_vm0, %v319_v48, 0.0  ;;  %v349_v56 = vsel %vm250_vm0, %v320_v53, 0.0 }
  0x4d   : > { %v351_v34 = vsel %vm250_vm0, %v321_v26, 0.0 }
  0x4e   : > { %v334_v0 = vadd.f32 %v333_v32, %v332_v59 }
  0x50   : > { %v336_v37 = vadd.f32 %v335_v60, %v334_v0 }
  0x52   : > { %v338_v4 = vadd.f32 %v337_v1, %v336_v37 }
  0x54   : > { %v340_v6 = vadd.f32 %v339_v5, %v338_v4 }
  0x56   : > { %v342_v13 = vadd.f32 %v341_v8, %v340_v6 }
  0x58   : > { %v344_v17 = vadd.f32 %v343_v15, %v342_v13 }
  0x5a   : > { %v346_v20 = vadd.f32 %v345_v19, %v344_v17 }
  0x5c   : > { %v348_v25 = vadd.f32 %v347_v23, %v346_v20 }
  0x5e   : > { %v350_v33 = vadd.f32 %v349_v56, %v348_v25 }
  0x60   : > { %v352_v10 = vadd.f32 %v351_v34, %v350_v33 }
  0x62   : > { %v353_v11 = vrot.slane %v352_v10, 4 }
  0x64   : > { %v354_v36 = vadd.f32 %v353_v11, %v352_v10 }
  0x66   : > { %v355_v12 = vrot.slane %v354_v36, 2 }
  0x68   : > { %v356_v61 = vadd.f32 %v355_v12, %v354_v36 }
  0x6a   : > { %v357_v27 = vrot.slane %v356_v61, 1 }
  0x6c   : > { %v358_v42 = vadd.f32 %v357_v27, %v356_v61 }
  0x6e   : > { %v359_v21 = vmul.f32 0.0078125, %v358_v42 }
  0x70   : > { %v360_v50 = vadd.f32 1e-05, %v359_v21 }
  0x72   : > { %709 = vrsqrt.f32 %v360_v50 }
  0x7c   : > { %v1056_v32 = vpop.eup %709 }
  0x7d   : > { %v362_v63 = vmul.f32 %v1056_v32, %v955_v28  ;;  %v363_v0 = vmul.f32 %v1056_v32, %v958_v30  ;;  %v364_v3 = vmul.f32 %v1056_v32, %v961_v31  ;;  %v365_v5 = vmul.f32 %v1056_v32, %v970_v35 }
  0x7e   : > { %v367_v35 = vmul.f32 %v1056_v32, %v982_v38  ;;  %v366_v45 = vmul.f32 %v1056_v32, %v973_v9  ;;  %v369_v23 = vmul.f32 %v1056_v32, %v995_v46  ;;  %v368_v38 = vmul.f32 %v1056_v32, %v987_v16 }
  0x7f   : > { %v371_v10 = vmul.f32 %v1056_v32, %v1010_v55  ;;  %v370_v46 = vmul.f32 %v1056_v32, %v1001_v49  ;;  %v372_v55 = vmul.f32 %v1056_v32, %v1017_v62 }
  0x87   : > { %v391_v39 = vpop.permute.xlu1 %390  ;;  %v381_v41 = vpop.permute.xlu0 %380 }
  0x88   : > { %v458_v4 = vmul.f32 %v381_v41, %v362_v63  ;;  %v460_v31 = vmul.f32 %v391_v39, %v364_v3  ;;  %v373_v39 = vmul.f32 %v1056_v32, %v1023_v2  ;;  %v374_v2 = vmul.f32 %v1056_v32, %v1029_v40 }
  0x89   : > { %v376_v40 = vmul.f32 %v1056_v32, %v1041_v18 }
  0x8b   : > { %v396_v43 = vpop.permute.xlu1 %395  ;;  %v386_v44 = vpop.permute.xlu0 %385 }
  0x8c   : > { %v459_v6 = vmul.f32 %v386_v44, %v363_v0  ;;  %v461_v13 = vmul.f32 %v396_v43, %v365_v5 }
  0x8f   : > { %v406_v47 = vpop.permute.xlu1 %405  ;;  %v401_v24 = vpop.permute.xlu0 %400 }
  0x90   : > { %v463_v20 = vmul.f32 %v406_v47, %v367_v35  ;;  %v462_v53 = vmul.f32 %v401_v24, %v366_v45  ;;  %v375_v47 = vmul.f32 %v1056_v32, %v1035_v14  ;;  %v377_v14 = vmul.f32 %v1056_v32, %v1047_v22 }
  0x93   : > { %v416_v51 = vpop.permute.xlu1 %415  ;;  %v411_v52 = vpop.permute.xlu0 %410 }
  0x94   : > { %v465_v33 = vmul.f32 %v416_v51, %v369_v23  ;;  %v464_v34 = vmul.f32 %v411_v52, %v368_v38 }
  0x97   : > { %v426_v54 = vpop.permute.xlu1 %425  ;;  %v421_v29 = vpop.permute.xlu0 %420 }
  0x98   : > { %v467_v61 = vmul.f32 %v426_v54, %v371_v10  ;;  %v466_v27 = vmul.f32 %v421_v29, %v370_v46 }
  0x9b   : > { %v436_v57 = vpop.permute.xlu1 %435  ;;  %v431_v58 = vpop.permute.xlu0 %430 }
  0x9c   : > { %v469_v44 = vmul.f32 %v436_v57, %v373_v39  ;;  %v468_v21 = vmul.f32 %v431_v58, %v372_v55 }
  0x9f   : > { %v1058_v59 = vpop.permute.xlu1 %445  ;;  %v1060_v60 = vpop.permute.xlu0 %440 }
  0xa0   : > { %v471_v52 = vmul.f32 %v1058_v59, %v375_v47  ;;  %v470_v54 = vmul.f32 %v1060_v60, %v374_v2 }
  0xa3   : > { %v1066_v1 = vpop.permute.xlu1 %455  ;;  %v1068_v37 = vpop.permute.xlu0 %450 }
  0xa4   : > { %v473_v59 = vmul.f32 %v1066_v1, %v377_v14  ;;  %v472_v60 = vmul.f32 %v1068_v37, %v376_v40 }
  0xa7   : > { %v482_v7 = vpop.permute.xlu1 %481  ;;  %v477_v28 = vpop.permute.xlu0 %476 }
  0xa8   : > { %v555_v30 = vadd.f32 %v482_v7, %v459_v6  ;;  %v554_v8 = vadd.f32 %v477_v28, %v458_v4 }
  0xaa   : > { %571 = vst.msk [vmem:[%s1079_s4 + $0x8] sm:$0xff] %vm250_vm0, %v555_v30  ;;  %570 = vst.msk [vmem:[%s1079_s4] sm:$0xff] %vm250_vm0, %v554_v8 }
  0xab   : > { %v492_v15 = vpop.permute.xlu1 %491  ;;  %v487_v17 = vpop.permute.xlu0 %486 }
  0xac   : > { %v557_v48 = vadd.f32 %v492_v15, %v461_v13  ;;  %v556_v19 = vadd.f32 %v487_v17, %v460_v31 }
  0xae   : > { %573 = vst.msk [vmem:[%s1079_s4 + $0x18] sm:$0xff] %vm250_vm0, %v557_v48  ;;  %572 = vst.msk [vmem:[%s1079_s4 + $0x10] sm:$0xff] %vm250_vm0, %v556_v19 }
  0xaf   : > { %v502_v9 = vpop.permute.xlu1 %501  ;;  %v497_v25 = vpop.permute.xlu0 %496 }
  0xb0   : > { %v559_v26 = vadd.f32 %v502_v9, %v463_v20  ;;  %v558_v56 = vadd.f32 %v497_v25, %v462_v53 }
  0xb2   : > { %575 = vst.msk [vmem:[%s1079_s4 + $0x28] sm:$0xff] %vm250_vm0, %v559_v26  ;;  %574 = vst.msk [vmem:[%s1079_s4 + $0x20] sm:$0xff] %vm250_vm0, %v558_v56 }
  0xb3   : > { %v512_v16 = vpop.permute.xlu1 %511  ;;  %v507_v11 = vpop.permute.xlu0 %506 }
  0xb4   : > { %v561_v36 = vadd.f32 %v512_v16, %v465_v33  ;;  %v560_v12 = vadd.f32 %v507_v11, %v464_v34 }
  0xb6   : > { %577 = vst.msk [vmem:[%s1079_s4 + $0x38] sm:$0xff] %vm250_vm0, %v561_v36  ;;  %576 = vst.msk [vmem:[%s1079_s4 + $0x30] sm:$0xff] %vm250_vm0, %v560_v12 }
  0xb7   : > { %v522_v49 = vpop.permute.xlu1 %521  ;;  %v517_v41 = vpop.permute.xlu0 %516 }
  0xb8   : > { %v563_v42 = vadd.f32 %v522_v49, %v467_v61  ;;  %v562_v43 = vadd.f32 %v517_v41, %v466_v27 }
  0xba   : > { %579 = vst.msk [vmem:[%s1079_s4 + $0x48] sm:$0xff] %vm250_vm0, %v563_v42  ;;  %578 = vst.msk [vmem:[%s1079_s4 + $0x40] sm:$0xff] %vm250_vm0, %v562_v43 }
  0xbb   : > { %v532_v62 = vpop.permute.xlu1 %531  ;;  %v527_v24 = vpop.permute.xlu0 %526 }
  0xbc   : > { %v565_v50 = vadd.f32 %v532_v62, %v469_v44  ;;  %v564_v51 = vadd.f32 %v527_v24, %v468_v21 }
  0xbe   : > { %581 = vst.msk [vmem:[%s1079_s4 + $0x58] sm:$0xff] %vm250_vm0, %v565_v50  ;;  %580 = vst.msk [vmem:[%s1079_s4 + $0x50] sm:$0xff] %vm250_vm0, %v564_v51 }
  0xbf   : > { %v542_v29 = vpop.permute.xlu1 %541  ;;  %v537_v57 = vpop.permute.xlu0 %536 }
  0xc0   : > { %v567_v58 = vadd.f32 %v542_v29, %v471_v52  ;;  %v566_v63 = vadd.f32 %v537_v57, %v470_v54 }
  0xc2   : > { %583 = vst.msk [vmem:[%s1079_s4 + $0x68] sm:$0xff] %vm250_vm0, %v567_v58  ;;  %582 = vst.msk [vmem:[%s1079_s4 + $0x60] sm:$0xff] %vm250_vm0, %v566_v63 }
  0xc3   : > { %v552_v22 = vpop.permute.xlu1 %551  ;;  %v547_v0 = vpop.permute.xlu0 %546 }
  0xc4   : > { %v569_v18 = vadd.f32 %v552_v22, %v473_v59  ;;  %v568_v32 = vadd.f32 %v547_v0, %v472_v60 }
  0xc6   : > { %585 = vst.msk [vmem:[%s1079_s4 + $0x78] sm:$0xff] %vm250_vm0, %v569_v18  ;;  %584 = vst.msk [vmem:[%s1079_s4 + $0x70] sm:$0xff] %vm250_vm0, %v568_v32 }
  0xc7 PF: > { %s13_s14 = sadd.s32 1, %s733_s14   ;;  %s1154_s12 = smov %s729_s13 }
  0xc8   : > { %p10_p5 = scmp.ge.s32.totalorder %s13_s14, 4   ;;  %s1155_s13 = smov %s1157_s15 }
  0xca   :  { %12 = sbr.rel (!%p10_p5) target bundleno = 2 (0x2), region = 62 }

// kernel: reverse.7
= control target key start
LH: loop header
LB: loop body
LE: loop exit
PB: predicated region body
PF: predicated region fallthrough
CT: control target
= control target key end

     0   :  { %v56_v3 = vlaneseq  ;;  %v62_v5 = vld [vmem:[#allocation0 + $0x7] ss:$-1 sm:$0xff]  ;;  %v90_v6 = vld [vmem:[#allocation0 + $0x1f] ss:$-1 sm:$0xff]  ;;  %s202_s0 = inlined_call_operand.vmem [shape: f32[2,128,15], index: 0, kind: input, shape index: {}]   ;;  %s203_s1 = inlined_call_operand.vmem [shape: f32[2,128,15], index: 1, kind: output, shape index: {}]  }
   0x1   :  { %v36_v0 = vld [vmem:[%s202_s0] sm:$0xff]  ;;  %v38_v1 = vld [vmem:[%s202_s0 + $0x8] sm:$0xff]  ;;  %v40_v2 = vld [vmem:[%s202_s0 + $0x10] sm:$0xff]  ;;  %v63_v7 = vrot.slane %v62_v5, 1  ;;  %v91_v8 = vrot.slane %v90_v6, 1 }
   0x2   :  { %37 = vst [vmem:[#allocation0 + $0x8] sm:$0xff] %v36_v0  ;;  %39 = vst [vmem:[#allocation0 + $0x10] sm:$0xff] %v38_v1  ;;  %v42_v4 = vld [vmem:[%s202_s0 + $0x18] sm:$0xff]  ;;  %v57_v9 = vshrl.u32 %v56_v3, 7 }
   0x3   :  { %41 = vst [vmem:[#allocation0 + $0x20] sm:$0xff] %v40_v2  ;;  %43 = vst [vmem:[#allocation0 + $0x28] sm:$0xff] %v42_v4 }
   0x4   :  { %64 = vst [vmem:[#allocation1 + $0x8] sm:$0xff] %v63_v7  ;;  %92 = vst [vmem:[#allocation1 + $0x18] sm:$0xff] %v91_v8  ;;  %vm58_vm0 = vcmp.lt.s32.totalorder %v57_v9, 7 }
   0x9   :  { %v49_v10 = vld [vmem:[#allocation0 + $0xf] ss:$-1 sm:$0xff]  ;;  %v54_v11 = vld [vmem:[#allocation0 + $0x17] ss:$-1 sm:$0xff] }
   0xa   :  { %v67_v12 = vld [vmem:[#allocation0 + $0xf] ss:$-1 sm:$0xff]  ;;  %v50_v13 = vrot.slane %v49_v10, 1  ;;  %v55_v14 = vrot.slane %v54_v11, 1  ;;  %v77_v16 = vld [vmem:[#allocation0 + $0x27] ss:$-1 sm:$0xff] }
   0xb   :  { %v68_v15 = vrot.slane %v67_v12, 1  ;;  %v78_v17 = vrot.slane %v77_v16, 1  ;;  %v82_v18 = vld [vmem:[#allocation0 + $0x2f] ss:$-1 sm:$0xff]  ;;  %v95_v19 = vld [vmem:[#allocation0 + $0x27] ss:$-1 sm:$0xff] }
   0xc   :  { %51 = vst [vmem:[#allocation1] sm:$0xff] %v50_v13  ;;  %v83_v20 = vrot.slane %v82_v18, 1  ;;  %v96_v21 = vrot.slane %v95_v19, 1 }
   0xd   :  { %72 = vst.msk [vmem:[#allocation1 + $0x8] sm:$0xff] %vm58_vm0, %v68_v15  ;;  %59 = vst.msk [vmem:[#allocation1] sm:$0xff] %vm58_vm0, %v55_v14 }
   0xe   :  { %79 = vst [vmem:[#allocation1 + $0x10] sm:$0xff] %v78_v17  ;;  %100 = vst.msk [vmem:[#allocation1 + $0x18] sm:$0xff] %vm58_vm0, %v96_v21 }
   0xf   :  { %87 = vst.msk [vmem:[#allocation1 + $0x10] sm:$0xff] %vm58_vm0, %v83_v20 }
  0x14   :  { %v136_v22 = vld [vmem:[#allocation1 + $0x8] sm:$0xff]  ;;  %v134_v23 = vld [vmem:[#allocation1] sm:$0xff] }
  0x15   :  { %137 = vst [vmem:[%s203_s1 + $0x8] sm:$0xff] %v136_v22  ;;  %135 = vst [vmem:[%s203_s1] sm:$0xff] %v134_v23  ;;  %v140_v25 = vld [vmem:[#allocation1 + $0x18] sm:$0xff] }
  0x16   :  { %v138_v24 = vld [vmem:[#allocation1 + $0x10] sm:$0xff]  ;;  %141 = vst [vmem:[%s203_s1 + $0x18] sm:$0xff] %v140_v25 }
  0x17   :  { %139 = vst [vmem:[%s203_s1 + $0x10] sm:$0xff] %v138_v24 }

// kernel: s4net_forward.7
= control target key start
LH: loop header
LB: loop body
LE: loop exit
PB: predicated region body
PF: predicated region fallthrough
CT: control target
= control target key end

     0   :  { %s1616_s21 = smov 0   ;;  %s1618_s22 = smov 0   ;;  %s2064_s0 = inlined_call_operand.vmem [shape: bf16[2,128,16], index: 0, kind: input, shape index: {}]   ;;  %s2065_s1 = inlined_call_operand.vmem [shape: f32[2,128,16], index: 1, kind: input, shape index: {}]   ;;  %s2066_s2 = inlined_call_operand.vmem [shape: bf16[256,128], index: 2, kind: input, shape index: {}]   ;;  %s2067_s3 = inlined_call_operand.vmem [shape: f32[256,1], index: 3, kind: input, shape index: {}]   ;;  %s2068_s4 = inlined_call_operand.vmem [shape: f32[128,1], index: 4, kind: input, shape index: {}]   ;;  %s2069_s5 = inlined_call_operand.vmem [shape: f32[128,1], index: 5, kind: input, shape index: {}]   ;;  %s2070_s6 = inlined_call_operand.vmem [shape: f32[2,128,16], index: 6, kind: output, shape index: {}]  }
   0x1   :  { %s1620_s23 = smov 0  }
   0x2 LB: > { %s28_s4 = sadd.s32 1, %s1574_s22  ;;  %p1246_p0 = scmp.ge.s32.totalorder %s1578_s23, 1  ;;  %s1578_s23 = sphi %s1620_s23, %s16_s23   ;;  %s1574_s22 = sphi %s1618_s22, %s2072_s22   ;;  %s1570_s21 = sphi %s1616_s21, %s2071_s21  }
   0x3   : > { %p30_p1 = scmp.ge.s32.totalorder %s28_s4, 2  ;;  %p246_p2 = scmp.lt.s32.totalorder %s1578_s23, 3 }
   0x5   : > { %s2074_s4 = smov (%p30_p1, %s28_s4), 0  ;;  %p247_p3 = pnand %p1246_p0, %p246_p2 }
   0x6   : > { %p290_p4 = scmp.lt.s32.totalorder (!%p247_p3), %s1570_s21, 1  ;;  %v1444_v0 = vld [vmem:[%s2066_s2] sm:$0xff] (!%p247_p3)   ;;  %v1580_v2 = vmov (!%p247_p3), 0   ;;  %v517_v3 = vld [vmem:[%s2067_s3 + $0x10] sm:$0xff] (!%p247_p3)  ;;  %v518_v63 = vld [vmem:[%s2067_s3 + $0x18] sm:$0xff] (!%p247_p3)  ;;  %vm1124_vm0 = vcmask (!%p247_p3), 130048  }
   0x7   : > { %250 = sbr.rel (%p247_p3) target bundleno = 354 (0x162), region = 44  ;;  %v1445_v1 = vld [vmem:[%s2066_s2 + $0x40] sm:$0xff] (!%p247_p3)   ;;  %1369 = vmatprep.mubr.bf16.mxu0 (!%p247_p3), %v1444_v0  ;;  %1443 = vset.pattern.permute.xlu1 (!%p247_p3), %v1580_v2  ;;  %v516_v0 = vld [vmem:[%s2067_s3 + $0x8] sm:$0xff] (!%p247_p3) }
   0x8   : > { %1385 = vmatprep.mubr.bf16.mxu1 (!%p247_p3), %v1445_v1  ;;  %1442 = vset.pattern.permute.xlu0 (!%p247_p3), %v1580_v2  ;;  %v515_v4 = vld [vmem:[%s2067_s3] sm:$0xff] (!%p247_p3) }
   0x9   : > { %559 = vperm.xlu1 (!%p247_p3), %1443, %v517_v3   ;;  %549 = vperm.xlu0 (!%p247_p3), %1442, %v515_v4   ;;  %v520_v4 = vld [vmem:[%s2067_s3 + $0x28] sm:$0xff] (!%p247_p3) }
   0xd   : > { %564 = vperm.xlu1 (!%p247_p3), %1443, %v518_v63   ;;  %554 = vperm.xlu0 (!%p247_p3), %1442, %v516_v0  }
   0xe   : > { %s2076_s21 = smov (!%p290_p4, %s1570_s21), 1 }
   0xf   : > { %s1288_s27 = sshll.u32 %s2076_s21, 7  ;;  %s1287_s15 = sshll.u32 %s2076_s21, 6 }
  0x10   : > { %s1654_s10 = scalar_lea.vmem %s2065_s1, %s1288_s27  ;;  %s1958_s18 = scalar_lea.vmem %s2064_s0, %s1287_s15 }
  0x11   : > { %v1657_v5 = vld [vmem:[%s1654_s10] sm:$0xff]  ;;  %v1660_v6 = vld [vmem:[%s1654_s10 + $0x8] sm:$0xff]  ;;  %v1663_v7 = vld [vmem:[%s1654_s10 + $0x10] sm:$0xff]  ;;  %574 = vperm.xlu1 %1443, %v520_v4   ;;  %s1997_s5 = scalar_lea.vmem %s2070_s6, %s1288_s27 }
  0x12   : > { %v331_v8 = vmul.f32 %v1657_v5, %v1657_v5  ;;  %v332_v9 = vmul.f32 %v1660_v6, %v1660_v6  ;;  %v1670_v10 = vld [vmem:[%s1654_s10 + $0x18] sm:$0xff]  ;;  %v333_v11 = vmul.f32 %v1663_v7, %v1663_v7  ;;  %v1675_v12 = vld [vmem:[%s1654_s10 + $0x20] sm:$0xff]  ;;  %v1678_v13 = vld [vmem:[%s1654_s10 + $0x28] sm:$0xff] }
  0x13   : > { %v334_v14 = vmul.f32 %v1670_v10, %v1670_v10  ;;  %v335_v15 = vmul.f32 %v1675_v12, %v1675_v12  ;;  %v336_v16 = vmul.f32 %v1678_v13, %v1678_v13  ;;  %v1687_v17 = vld [vmem:[%s1654_s10 + $0x30] sm:$0xff]  ;;  %v1690_v18 = vld [vmem:[%s1654_s10 + $0x38] sm:$0xff]  ;;  %v1705_v35 = vld [vmem:[%s1654_s10 + $0x40] sm:$0xff] }
  0x14   : > { %v347_v19 = vmul.f32 %v331_v8, %v1657_v5  ;;  %v348_v20 = vmul.f32 %v332_v9, %v1660_v6  ;;  %v349_v21 = vmul.f32 %v333_v11, %v1663_v7  ;;  %v337_v22 = vmul.f32 %v1687_v17, %v1687_v17  ;;  %v1708_v36 = vld [vmem:[%s1654_s10 + $0x48] sm:$0xff]  ;;  %v1714_v41 = vld [vmem:[%s1654_s10 + $0x50] sm:$0xff]  ;;  %v1717_v42 = vld [vmem:[%s1654_s10 + $0x58] sm:$0xff] }
  0x15   : > { %v350_v23 = vmul.f32 %v334_v14, %v1670_v10  ;;  %v351_v24 = vmul.f32 %v335_v15, %v1675_v12  ;;  %v352_v25 = vmul.f32 %v336_v16, %v1678_v13  ;;  %v338_v26 = vmul.f32 %v1690_v18, %v1690_v18  ;;  %v1723_v47 = vld [vmem:[%s1654_s10 + $0x60] sm:$0xff]  ;;  %v1732_v59 = vld [vmem:[%s1654_s10 + $0x68] sm:$0xff] }
  0x16   : > { %v363_v27 = vmul.f32 0.044715, %v347_v19  ;;  %v364_v28 = vmul.f32 0.044715, %v348_v20  ;;  %v365_v29 = vmul.f32 0.044715, %v349_v21  ;;  %v353_v30 = vmul.f32 %v337_v22, %v1687_v17 }
  0x17   : > { %v366_v31 = vmul.f32 0.044715, %v350_v23  ;;  %v367_v32 = vmul.f32 0.044715, %v351_v24  ;;  %v368_v33 = vmul.f32 0.044715, %v352_v25  ;;  %v354_v34 = vmul.f32 %v338_v26, %v1690_v18 }
  0x18   : > { %v379_v37 = vadd.f32 %v363_v27, %v1657_v5  ;;  %v380_v38 = vadd.f32 %v364_v28, %v1660_v6  ;;  %v381_v39 = vadd.f32 %v365_v29, %v1663_v7  ;;  %v369_v40 = vmul.f32 0.044715, %v353_v30  ;;  %v519_v14 = vld [vmem:[%s2067_s3 + $0x20] sm:$0xff]  ;;  %v1761_v23 = vld [vmem:[%s1654_s10 + $0x70] sm:$0xff]  ;;  %v1764_v24 = vld [vmem:[%s1654_s10 + $0x78] sm:$0xff] }
  0x19   : > { %v382_v43 = vadd.f32 %v366_v31, %v1670_v10  ;;  %v383_v44 = vadd.f32 %v367_v32, %v1675_v12  ;;  %v384_v45 = vadd.f32 %v368_v33, %v1678_v13  ;;  %v370_v46 = vmul.f32 0.044715, %v354_v34  ;;  %569 = vperm.xlu0 %1442, %v519_v14  }
  0x1a   : > { %v395_v48 = vmul.f32 0.7978846, %v379_v37  ;;  %v396_v49 = vmul.f32 0.7978846, %v380_v38  ;;  %v397_v50 = vmul.f32 0.7978846, %v381_v39  ;;  %v385_v51 = vadd.f32 %v369_v40, %v1687_v17 }
  0x1b   : > { %v398_v52 = vmul.f32 0.7978846, %v382_v43  ;;  %v399_v53 = vmul.f32 0.7978846, %v383_v44  ;;  %v400_v54 = vmul.f32 0.7978846, %v384_v45  ;;  %v386_v55 = vadd.f32 %v370_v46, %v1690_v18 }
  0x1c   : > { %1460 = vtanh.f32 %v395_v48  ;;  %v401_v56 = vmul.f32 0.7978846, %v385_v51  ;;  %v339_v57 = vmul.f32 %v1705_v35, %v1705_v35  ;;  %v340_v58 = vmul.f32 %v1708_v36, %v1708_v36  ;;  %v522_v37 = vld [vmem:[%s2067_s3 + $0x38] sm:$0xff]  ;;  %v521_v44 = vld [vmem:[%s2067_s3 + $0x30] sm:$0xff] }
  0x1d   : > { %1462 = vtanh.f32 %v396_v49  ;;  %v402_v60 = vmul.f32 0.7978846, %v386_v55  ;;  %v341_v61 = vmul.f32 %v1714_v41, %v1714_v41  ;;  %v342_v62 = vmul.f32 %v1717_v42, %v1717_v42  ;;  %584 = vperm.xlu1 %1443, %v522_v37   ;;  %579 = vperm.xlu0 %1442, %v521_v44   ;;  %v532_v49 = vld [vmem:[%s2067_s3 + $0x88] sm:$0xff] }
  0x1e   : > { %1464 = vtanh.f32 %v397_v50  ;;  %v355_v1 = vmul.f32 %v339_v57, %v1705_v35  ;;  %v356_v2 = vmul.f32 %v340_v58, %v1708_v36  ;;  %v343_v3 = vmul.f32 %v1723_v47, %v1723_v47 }
  0x1f   : > { %1466 = vtanh.f32 %v398_v52  ;;  %v357_v8 = vmul.f32 %v341_v61, %v1714_v41  ;;  %v358_v9 = vmul.f32 %v342_v62, %v1717_v42  ;;  %v344_v11 = vmul.f32 %v1732_v59, %v1732_v59 }
  0x20   : > { %1468 = vtanh.f32 %v399_v53  ;;  %v371_v15 = vmul.f32 0.044715, %v355_v1  ;;  %v372_v16 = vmul.f32 0.044715, %v356_v2  ;;  %v359_v19 = vmul.f32 %v343_v3, %v1723_v47 }
  0x21   : > { %1470 = vtanh.f32 %v400_v54  ;;  %v373_v20 = vmul.f32 0.044715, %v357_v8  ;;  %v374_v21 = vmul.f32 0.044715, %v358_v9  ;;  %v360_v22 = vmul.f32 %v344_v11, %v1732_v59  ;;  %v531_v54 = vld [vmem:[%s2067_s3 + $0x80] sm:$0xff]  ;;  %634 = vperm.xlu1 %1443, %v532_v49  }
  0x22   : > { %1472 = vtanh.f32 %v401_v56  ;;  %v387_v25 = vadd.f32 %v371_v15, %v1705_v35  ;;  %v388_v26 = vadd.f32 %v372_v16, %v1708_v36  ;;  %v375_v27 = vmul.f32 0.044715, %v359_v19  ;;  %629 = vperm.xlu0 %1442, %v531_v54   ;;  %v537_v54 = vld [vmem:[%s2067_s3 + $0xb0] sm:$0xff] }
  0x23   : > { %1474 = vtanh.f32 %v402_v60  ;;  %v389_v28 = vadd.f32 %v373_v20, %v1714_v41  ;;  %v390_v29 = vadd.f32 %v374_v21, %v1717_v42  ;;  %v376_v30 = vmul.f32 0.044715, %v360_v22  ;;  %v534_v20 = vld [vmem:[%s2067_s3 + $0x98] sm:$0xff]  ;;  %v533_v21 = vld [vmem:[%s2067_s3 + $0x90] sm:$0xff] }
  0x24   : > { %v403_v31 = vmul.f32 0.7978846, %v387_v25  ;;  %v404_v32 = vmul.f32 0.7978846, %v388_v26  ;;  %v391_v33 = vadd.f32 %v375_v27, %v1723_v47  ;;  %v345_v34 = vmul.f32 %v1761_v23, %v1761_v23 }
  0x25   : > { %v405_v38 = vmul.f32 0.7978846, %v389_v28  ;;  %v406_v39 = vmul.f32 0.7978846, %v390_v29  ;;  %v392_v40 = vadd.f32 %v376_v30, %v1732_v59  ;;  %v346_v43 = vmul.f32 %v1764_v24, %v1764_v24  ;;  %644 = vperm.xlu1 %1443, %v534_v20  }
  0x26   : > { %v1461_v45 = vpop.eup %1460  ;;  %1476 = vtanh.f32 %v403_v31  ;;  %v407_v46 = vmul.f32 0.7978846, %v391_v33  ;;  %v361_v48 = vmul.f32 %v345_v34, %v1761_v23  ;;  %639 = vperm.xlu0 %1442, %v533_v21   ;;  %v544_v21 = vld [vmem:[%s2067_s3 + $0xe8] sm:$0xff] }
  0x27   : > { %v1463_v50 = vpop.eup %1462  ;;  %v427_v51 = vadd.f32 1.0, %v1461_v45  ;;  %1478 = vtanh.f32 %v404_v32  ;;  %v408_v52 = vmul.f32 0.7978846, %v392_v40  ;;  %v362_v53 = vmul.f32 %v346_v43, %v1764_v24 }
  0x28   : > { %v1465_v55 = vpop.eup %1464  ;;  %v428_v56 = vadd.f32 1.0, %v1463_v50  ;;  %1480 = vtanh.f32 %v405_v38  ;;  %v377_v57 = vmul.f32 0.044715, %v361_v48 }
  0x29   : > { %v1467_v58 = vpop.eup %1466  ;;  %v443_v60 = vmul.f32 0.5, %v427_v51  ;;  %v429_v61 = vadd.f32 1.0, %v1465_v55  ;;  %1482 = vtanh.f32 %v406_v39  ;;  %v378_v62 = vmul.f32 0.044715, %v362_v53  ;;  %v535_v39 = vld [vmem:[%s2067_s3 + $0xa0] sm:$0xff] }
  0x2a   : > { %v1469_v63 = vpop.eup %1468  ;;  %v444_v0 = vmul.f32 0.5, %v428_v56  ;;  %v430_v1 = vadd.f32 1.0, %v1467_v58  ;;  %1484 = vtanh.f32 %v407_v46  ;;  %v393_v2 = vadd.f32 %v377_v57, %v1761_v23  ;;  %649 = vperm.xlu0 %1442, %v535_v39   ;;  %v1452_v39 = vld [vmem:[%s2066_s2 + $0x20] sm:$0xff]  }
  0x2b   : > { %v1471_v3 = vpop.eup %1470  ;;  %v459_v4 = vmul.f32 %v443_v60, %v1657_v5  ;;  %v445_v8 = vmul.f32 0.5, %v429_v61  ;;  %v431_v9 = vadd.f32 1.0, %v1469_v63  ;;  %1486 = vtanh.f32 %v408_v52  ;;  %v540_v63 = vld [vmem:[%s2067_s3 + $0xc8] sm:$0xff] }
  0x2c   : > { %v1473_v11 = vpop.eup %1472  ;;  %v460_v14 = vmul.f32 %v444_v0, %v1660_v6  ;;  %v446_v15 = vmul.f32 0.5, %v430_v1  ;;  %v432_v16 = vadd.f32 1.0, %v1471_v3  ;;  %v394_v19 = vadd.f32 %v378_v62, %v1764_v24  ;;  %v539_v0 = vld [vmem:[%s2067_s3 + $0xc0] sm:$0xff] }
  0x2d   : > { %v1475_v22 = vpop.eup %1474  ;;  %v461_v5 = vmul.f32 %v445_v8, %v1663_v7  ;;  %v447_v25 = vmul.f32 0.5, %v431_v9  ;;  %v433_v26 = vadd.f32 1.0, %v1473_v11  ;;  %v409_v27 = vmul.f32 0.7978846, %v393_v2 }
  0x2e   : > { %v507_v28 = vpack.c.bf16 %v460_v14, %v459_v4  ;;  %v462_v6 = vmul.f32 %v446_v15, %v1670_v10  ;;  %v448_v29 = vmul.f32 0.5, %v432_v16  ;;  %v434_v30 = vadd.f32 1.0, %v1475_v22  ;;  %v536_v10 = vld [vmem:[%s2067_s3 + $0xa8] sm:$0xff]  ;;  %659 = vperm.xlu0 %1442, %v537_v54   ;;  %v542_v14 = vld [vmem:[%s2067_s3 + $0xd8] sm:$0xff]  ;;  %v543_v22 = vld [vmem:[%s2067_s3 + $0xe0] sm:$0xff] }
  0x2f   : > { %v463_v31 = vmul.f32 %v447_v25, %v1675_v12  ;;  %v449_v32 = vmul.f32 0.5, %v433_v26  ;;  %v410_v33 = vmul.f32 0.7978846, %v394_v19  ;;  %1488 = vtanh.f32 %v409_v27  ;;  %654 = vperm.xlu1 %1443, %v536_v10   ;;  %v546_v25 = vld [vmem:[%s2067_s3 + $0xf8] sm:$0xff]  ;;  %v545_v26 = vld [vmem:[%s2067_s3 + $0xf0] sm:$0xff] }
  0x30   : > { %v1477_v34 = vpop.eup %1476  ;;  %1353 = vmatprep.subr.bf16.mxu0 %v507_v28  ;;  %1401 = vmatprep.subr.bf16.mxu1 %v507_v28  ;;  %v508_v37 = vpack.c.bf16 %v462_v6, %v461_v5  ;;  %v464_v7 = vmul.f32 %v448_v29, %v1678_v13  ;;  %v450_v38 = vmul.f32 0.5, %v434_v30  ;;  %v1447_v6 = vld [vmem:[%s2066_s2 + $0x48] sm:$0xff]   ;;  %v526_v29 = vld [vmem:[%s2067_s3 + $0x58] sm:$0xff]  ;;  %v525_v30 = vld [vmem:[%s2067_s3 + $0x50] sm:$0xff] }
  0x31   : > { %v1479_v40 = vpop.eup %1478  ;;  %1354 = vmatpush3.bf16.msra.mxu0 %v507_v28  ;;  %1409 = vmatpush3.bf16.msra.mxu1 %v507_v28  ;;  %v465_v12 = vmul.f32 %v449_v32, %v1687_v17  ;;  %v435_v43 = vadd.f32 1.0, %v1477_v34  ;;  %1490 = vtanh.f32 %v410_v33  ;;  %v538_v17 = vld [vmem:[%s2067_s3 + $0xb8] sm:$0xff]  ;;  %v1446_v28 = vld [vmem:[%s2066_s2 + $0x8] sm:$0xff]   ;;  %v1449_v32 = vld [vmem:[%s2066_s2 + $0x50] sm:$0xff]  }
  0x32   : > { %v1481_v44 = vpop.eup %1480  ;;  %1355 = vmatprep.subr.bf16.mxu0 %v508_v37  ;;  %1402 = vmatprep.subr.bf16.mxu1 %v508_v37  ;;  %v509_v13 = vpack.c.bf16 %v464_v7, %v463_v31  ;;  %v466_v45 = vmul.f32 %v450_v38, %v1690_v18  ;;  %v436_v46 = vadd.f32 1.0, %v1479_v40  ;;  %v1448_v31 = vld [vmem:[%s2066_s2 + $0x10] sm:$0xff]   ;;  %v528_v33 = vld [vmem:[%s2067_s3 + $0x68] sm:$0xff]  ;;  %v527_v34 = vld [vmem:[%s2067_s3 + $0x60] sm:$0xff] }
  0x33   : > { %v1483_v48 = vpop.eup %1482  ;;  %v451_v49 = vmul.f32 0.5, %v435_v43  ;;  %v437_v50 = vadd.f32 1.0, %v1481_v44  ;;  %664 = vperm.xlu1 %1443, %v538_v17   ;;  %669 = vperm.xlu0 %1442, %v539_v0   ;;  %v1451_v7 = vld [vmem:[%s2066_s2 + $0x58] sm:$0xff]   ;;  %v529_v10 = vld [vmem:[%s2067_s3 + $0x70] sm:$0xff]  ;;  %v1453_v40 = vld [vmem:[%s2066_s2 + $0x60] sm:$0xff]  }
  0x34   : > { %v1485_v51 = vpop.eup %1484  ;;  %v452_v52 = vmul.f32 0.5, %v436_v46  ;;  %v438_v53 = vadd.f32 1.0, %v1483_v48  ;;  %v510_v18 = vpack.c.bf16 %v466_v45, %v465_v12  ;;  %v530_v38 = vld [vmem:[%s2067_s3 + $0x78] sm:$0xff]  ;;  %v1454_v12 = vld [vmem:[%s2066_s2 + $0x28] sm:$0xff]   ;;  %v1456_v44 = vld [vmem:[%s2066_s2 + $0x30] sm:$0xff]  }
  0x35   : > { %v1487_v55 = vpop.eup %1486  ;;  %1356 = vmatpush3.bf16.msra.mxu0 %v508_v37  ;;  %1410 = vmatpush3.bf16.msra.mxu1 %v508_v37  ;;  %v453_v56 = vmul.f32 0.5, %v437_v50  ;;  %v439_v57 = vadd.f32 1.0, %v1485_v51  ;;  %v467_v58 = vmul.f32 %v451_v49, %v1705_v35  ;;  %v1450_v37 = vld [vmem:[%s2066_s2 + $0x18] sm:$0xff]   ;;  %v1455_v43 = vld [vmem:[%s2066_s2 + $0x68] sm:$0xff]  }
  0x36   : > { %1357 = vmatprep.subr.bf16.mxu0 %v509_v13  ;;  %1403 = vmatprep.subr.bf16.mxu1 %v509_v13  ;;  %v468_v60 = vmul.f32 %v452_v52, %v1708_v36  ;;  %v454_v61 = vmul.f32 0.5, %v438_v53  ;;  %v440_v62 = vadd.f32 1.0, %v1487_v55  ;;  %v1458_v45 = vld [vmem:[%s2066_s2 + $0x38] sm:$0xff]  }
  0x37   : > { %v469_v2 = vmul.f32 %v453_v56, %v1714_v41  ;;  %v455_v35 = vmul.f32 0.5, %v439_v57  ;;  %674 = vperm.xlu1 %1443, %v540_v63   ;;  %v541_v41 = vld [vmem:[%s2067_s3 + $0xd0] sm:$0xff]  ;;  %v1459_v46 = vld [vmem:[%s2066_s2 + $0x78] sm:$0xff]  }
  0x38   : > { %v511_v36 = vpack.c.bf16 %v468_v60, %v467_v58  ;;  %v470_v3 = vmul.f32 %v454_v61, %v1717_v42  ;;  %v456_v4 = vmul.f32 0.5, %v440_v62  ;;  %679 = vperm.xlu0 %1442, %v541_v41  }
  0x39   : > { %v1489_v1 = vpop.eup %1488  ;;  %1358 = vmatpush3.bf16.msra.mxu0 %v509_v13  ;;  %1411 = vmatpush3.bf16.msra.mxu1 %v509_v13  ;;  %v471_v15 = vmul.f32 %v455_v35, %v1723_v47  ;;  %v1457_v13 = vld [vmem:[%s2066_s2 + $0x70] sm:$0xff]  }
  0x3a   : > { %1359 = vmatprep.subr.bf16.mxu0 %v510_v18  ;;  %1404 = vmatprep.subr.bf16.mxu1 %v510_v18  ;;  %v441_v8 = vadd.f32 1.0, %v1489_v1  ;;  %v512_v42 = vpack.c.bf16 %v470_v3, %v469_v2  ;;  %v472_v16 = vmul.f32 %v456_v4, %v1732_v59 }
  0x3b   : > { %v1491_v9 = vpop.eup %1490  ;;  %684 = vperm.xlu1 %1443, %v542_v14  }
  0x3c   : > { %v442_v11 = vadd.f32 1.0, %v1491_v9  ;;  %v457_v19 = vmul.f32 0.5, %v441_v8  ;;  %v513_v47 = vpack.c.bf16 %v472_v16, %v471_v15  ;;  %689 = vperm.xlu0 %1442, %v543_v22  }
  0x3d   : > { %1360 = vmatpush3.bf16.msra.mxu0 %v510_v18  ;;  %1412 = vmatpush3.bf16.msra.mxu1 %v510_v18 }
  0x3e   : > { %1361 = vmatprep.subr.bf16.mxu0 %v511_v36  ;;  %1405 = vmatprep.subr.bf16.mxu1 %v511_v36  ;;  %v458_v20 = vmul.f32 0.5, %v442_v11  ;;  %v473_v5 = vmul.f32 %v457_v19, %v1761_v23  ;;  %v524_v23 = vld [vmem:[%s2067_s3 + $0x48] sm:$0xff] }
  0x3f   : > { %694 = vperm.xlu1 %1443, %v544_v21  }
  0x40   : > { %v474_v59 = vmul.f32 %v458_v20, %v1764_v24  ;;  %699 = vperm.xlu0 %1442, %v545_v26   ;;  %v523_v24 = vld [vmem:[%s2067_s3 + $0x40] sm:$0xff] }
  0x41   : > { %1362 = vmatpush3.bf16.msra.mxu0 %v511_v36  ;;  %1413 = vmatpush3.bf16.msra.mxu1 %v511_v36 }
  0x42   : > { %1363 = vmatprep.subr.bf16.mxu0 %v512_v42  ;;  %1406 = vmatprep.subr.bf16.mxu1 %v512_v42  ;;  %v514_v27 = vpack.c.bf16 %v474_v59, %v473_v5 }
  0x43   : > { %704 = vperm.xlu1 %1443, %v546_v25  }
  0x44   : > { %589 = vperm.xlu0 %1442, %v523_v24  }
  0x45   : > { %1364 = vmatpush3.bf16.msra.mxu0 %v512_v42  ;;  %1414 = vmatpush3.bf16.msra.mxu1 %v512_v42 }
  0x46   : > { %1365 = vmatprep.subr.bf16.mxu0 %v513_v47  ;;  %1407 = vmatprep.subr.bf16.mxu1 %v513_v47 }
  0x47   : > { %594 = vperm.xlu1 %1443, %v524_v23  }
  0x48   : > { %599 = vperm.xlu0 %1442, %v525_v30  }
  0x49   : > { %1366 = vmatpush3.bf16.msra.mxu0 %v513_v47  ;;  %1415 = vmatpush3.bf16.msra.mxu1 %v513_v47 }
  0x4a   : > { %1367 = vmatprep.subr.bf16.mxu0 %v514_v27  ;;  %1408 = vmatprep.subr.bf16.mxu1 %v514_v27 }
  0x4b   : > { %604 = vperm.xlu1 %1443, %v526_v29  }
  0x4c   : > { %609 = vperm.xlu0 %1442, %v527_v34  }
  0x4d   : > { %1368 = vmatpush3.bf16.msra.mxu0 %v514_v27  ;;  %1416 = vmatpush3.bf16.msra.mxu1 %v514_v27 }
  0x4f   : > { %614 = vperm.xlu1 %1443, %v528_v33  }
  0x50   : > { %1370 = vmatmul.mubr.bf16.vlgmr.msra.gmra.mrb[0].mxu0 %v1446_v28  ;;  %1386 = vmatmul.mubr.bf16.vlgmr.msra.gmra.mrb[0].mxu1 %v1447_v6 }
  0x51   : > { %1373 = vmatprep.mubr.bf16.mxu0 %v1448_v31  ;;  %1389 = vmatprep.mubr.bf16.mxu1 %v1449_v32 }
  0x52   : > { %619 = vperm.xlu0 %1442, %v529_v10  }
  0x53   : > { %624 = vperm.xlu1 %1443, %v530_v38  }
  0x58   : > { %1374 = vmatmul.mubr.bf16.gmra.mrb[4].mxu0 %v1450_v37  ;;  %1390 = vmatmul.mubr.bf16.gmra.mrb[4].mxu1 %v1451_v7 }
  0x59   : > { %1377 = vmatprep.mubr.bf16.mxu0 %v1452_v39  ;;  %1393 = vmatprep.mubr.bf16.mxu1 %v1453_v40 }
  0x60   : > { %1378 = vmatmul.mubr.bf16.gmra.mrb[8].mxu0 %v1454_v12  ;;  %1394 = vmatmul.mubr.bf16.gmra.mrb[8].mxu1 %v1455_v43 }
  0x61   : > { %1381 = vmatprep.mubr.bf16.mxu0 %v1456_v44  ;;  %1397 = vmatprep.mubr.bf16.mxu1 %v1457_v13 }
  0x68   : > { %1382 = vmatmul.mubr.bf16.gmra.mrb[12].mxu0 %v1458_v45  ;;  %1398 = vmatmul.mubr.bf16.gmra.mrb[12].mxu1 %v1459_v46 }
  0x88   : > { %v1916_v48 = vpop.permute.xlu1 %559  ;;  %v1918_v49 = vpop.permute.xlu0 %549 }
  0x8c   : > { %v1920_v50 = vpop.permute.xlu1 %564  ;;  %v1922_v51 = vpop.permute.xlu0 %554 }
  0x90   : > { %v1924_v52 = vpop.permute.xlu1 %574 }
  0x98   : > { %v1926_v53 = vpop.permute.xlu0 %569 }
  0x9c   : > { %v1928_v17 = vpop.permute.xlu1 %584  ;;  %v1930_v54 = vpop.permute.xlu0 %579 }
  0xa0   : > { %v635_v55 = vpop.permute.xlu1 %634 }
  0xa1   : > { %v630_v18 = vpop.permute.xlu0 %629 }
  0xa4   : > { %v645_v56 = vpop.permute.xlu1 %644 }
  0xa5   : > { %v640_v57 = vpop.permute.xlu0 %639 }
  0xa9   : > { %v650_v60 = vpop.permute.xlu0 %649 }
  0xad   : > { %v660_v62 = vpop.permute.xlu0 %659 }
  0xae   : > { %v655_v58 = vpop.permute.xlu1 %654 }
  0xb2   : > { %v665_v61 = vpop.permute.xlu1 %664  ;;  %v670_v0 = vpop.permute.xlu0 %669 }
  0xb6   : > { %v1932_v63 = vpop.permute.xlu1 %674 }
  0xb7   : > { %v680_v22 = vpop.permute.xlu0 %679 }
  0xba   : > { %v685_v21 = vpop.permute.xlu1 %684 }
  0xbb   : > { %v690_v38 = vpop.permute.xlu0 %689 }
  0xbe   : > { %v1951_v7 = vpop.permute.xlu1 %694 }
 0x123   : > { %v1934_v1 = vpop.f32.mrb[0].mxu0  ;;  %v1387_v2 = vpop.f32.mrb[0].mxu1 }
 0x124   : > { %v910_v35 = vadd.f32 %v1387_v2, %v640_v57  ;;  %v1936_v36 = vpop.f32.mrb[1].mxu0  ;;  %v901_v3 = vpop.f32.mrb[1].mxu1 }
 0x125   : > { %v902_v4 = vadd.f32 %v901_v3, %v630_v18  ;;  %v1938_v8 = vpop.f32.mrb[2].mxu0  ;;  %v1388_v9 = vpop.f32.mrb[2].mxu1 }
 0x126   : > { %v1271_v11 = vmul.f32 -1.442695, %v910_v35  ;;  %v913_v14 = vadd.f32 %v1388_v9, %v645_v56  ;;  %v1940_v41 = vpop.f32.mrb[3].mxu0  ;;  %v904_v15 = vpop.f32.mrb[3].mxu1  ;;  %v1967_v35 = vld [vmem:[%s1958_s18 + $0x8] sm:$0xff]   ;;  %v1970_v9 = vld [vmem:[%s1958_s18] sm:$0xff]  }
 0x127   : > { %v1269_v42 = vmul.f32 -1.442695, %v902_v4  ;;  %v905_v16 = vadd.f32 %v904_v15, %v635_v55  ;;  %v705_v15 = vpop.permute.xlu1 %704 }
 0x128   : > { %1492 = vpow2.f32 %v1271_v11  ;;  %v1272_v19 = vmul.f32 -1.442695, %v913_v14 }
 0x129   : > { %1494 = vpow2.f32 %v1269_v42  ;;  %v1270_v20 = vmul.f32 -1.442695, %v905_v16  ;;  %v700_v42 = vpop.permute.xlu0 %699  ;;  %v1296_v16 = vunpack.c.l.bf16 %v1967_v35 }
 0x12a   : > { %1496 = vpow2.f32 %v1272_v19 }
 0x12b   : > { %1498 = vpow2.f32 %v1270_v20  ;;  %v1942_v47 = vpop.f32.mrb[4].mxu0  ;;  %v1391_v5 = vpop.f32.mrb[4].mxu1 }
 0x12c   : > { %v926_v59 = vadd.f32 %v1391_v5, %v660_v62  ;;  %v1944_v25 = vpop.f32.mrb[5].mxu0  ;;  %v917_v26 = vpop.f32.mrb[5].mxu1 }
 0x12d   : > { %v918_v27 = vadd.f32 %v917_v26, %v650_v60  ;;  %v1946_v23 = vpop.f32.mrb[6].mxu0  ;;  %v1392_v24 = vpop.f32.mrb[6].mxu1 }
 0x12e   : > { %v1275_v28 = vmul.f32 -1.442695, %v926_v59  ;;  %v929_v6 = vadd.f32 %v1392_v24, %v665_v61  ;;  %v1948_v29 = vpop.f32.mrb[7].mxu0  ;;  %v920_v30 = vpop.f32.mrb[7].mxu1 }
 0x12f   : > { %v1273_v31 = vmul.f32 -1.442695, %v918_v27  ;;  %v921_v32 = vadd.f32 %v920_v30, %v655_v58 }
 0x130   : > { %1500 = vpow2.f32 %v1275_v28  ;;  %v1276_v33 = vmul.f32 -1.442695, %v929_v6 }
 0x131   : > { %1502 = vpow2.f32 %v1273_v31  ;;  %v1274_v34 = vmul.f32 -1.442695, %v921_v32  ;;  %v1293_v31 = vunpack.c.h.bf16 %v1970_v9 }
 0x132   : > { %v1493_v37 = vpop.eup %1492  ;;  %1504 = vpow2.f32 %v1276_v33 }
 0x133   : > { %v1495_v10 = vpop.eup %1494  ;;  %v1014_v39 = vadd.f32 1.0, %v1493_v37  ;;  %1506 = vpow2.f32 %v1274_v34  ;;  %v1953_v40 = vpop.f32.mrb[8].mxu0 }
 0x134   : > { %v1395_v12 = vpop.f32.mrb[8].mxu1  ;;  %v1497_v43 = vpop.eup %1496  ;;  %v1012_v44 = vadd.f32 1.0, %v1495_v10  ;;  %v846_v10 = vadd.f32 %v1934_v1, %v1916_v48 }
 0x135   : > { %v942_v13 = vadd.f32 %v1395_v12, %v680_v22  ;;  %v1960_v45 = vpop.f32.mrb[9].mxu0  ;;  %v933_v46 = vpop.f32.mrb[9].mxu1  ;;  %1508 = vrcp.f32 %v1014_v39  ;;  %v1015_v18 = vadd.f32 1.0, %v1497_v43  ;;  %v1292_v22 = vunpack.c.l.bf16 %v1970_v9 }
 0x136   : > { %v1499_v55 = vpop.eup %1498  ;;  %v934_v56 = vadd.f32 %v933_v46, %v670_v0  ;;  %v1962_v57 = vpop.f32.mrb[10].mxu0  ;;  %1510 = vrcp.f32 %v1012_v44  ;;  %v838_v46 = vadd.f32 %v1936_v36, %v1918_v49  ;;  %v841_v36 = vadd.f32 %v1940_v41, %v1922_v51  ;;  %v1323_v41 = vld [vmem:[%s1958_s18 + $0x10] sm:$0xff]  }
 0x137   : > { %v1396_v58 = vpop.f32.mrb[10].mxu1  ;;  %v1013_v60 = vadd.f32 1.0, %v1499_v55  ;;  %v1279_v61 = vmul.f32 -1.442695, %v942_v13  ;;  %v1964_v62 = vpop.f32.mrb[11].mxu0  ;;  %1512 = vrcp.f32 %v1015_v18 }
 0x138   : > { %v936_v2 = vpop.f32.mrb[11].mxu1  ;;  %v1277_v3 = vmul.f32 -1.442695, %v934_v56  ;;  %v945_v4 = vadd.f32 %v1396_v58, %v685_v21  ;;  %v849_v58 = vadd.f32 %v1938_v8, %v1920_v50 }
 0x139   : > { %1514 = vrcp.f32 %v1013_v60  ;;  %v937_v11 = vadd.f32 %v936_v2, %v1932_v63  ;;  %v1297_v63 = vunpack.c.h.bf16 %v1967_v35 }
 0x13a   : > { %1516 = vpow2.f32 %v1279_v61  ;;  %v1280_v0 = vmul.f32 -1.442695, %v945_v4  ;;  %v1501_v14 = vpop.eup %1500  ;;  %v1324_v4 = vld [vmem:[%s1958_s18 + $0x18] sm:$0xff]  }
 0x13b   : > { %1518 = vpow2.f32 %v1277_v3  ;;  %v1278_v19 = vmul.f32 -1.442695, %v937_v11  ;;  %v1503_v20 = vpop.eup %1502  ;;  %v1018_v5 = vadd.f32 1.0, %v1501_v14  ;;  %v1975_v21 = vpop.f32.mrb[12].mxu0 }
 0x13c   : > { %1520 = vpow2.f32 %v1280_v0  ;;  %v1399_v59 = vpop.f32.mrb[12].mxu1  ;;  %v1505_v26 = vpop.eup %1504  ;;  %v1016_v27 = vadd.f32 1.0, %v1503_v20  ;;  %v862_v20 = vadd.f32 %v1942_v47, %v1930_v54 }
 0x13d   : > { %1522 = vpow2.f32 %v1278_v19  ;;  %v958_v24 = vadd.f32 %v1399_v59, %v700_v42  ;;  %v1978_v28 = vpop.f32.mrb[13].mxu0  ;;  %v949_v6 = vpop.f32.mrb[13].mxu1  ;;  %v1019_v32 = vadd.f32 1.0, %v1505_v26  ;;  %v854_v26 = vadd.f32 %v1944_v25, %v1926_v53 }
 0x13e   : > { %v1507_v30 = vpop.eup %1506  ;;  %1524 = vrcp.f32 %v1018_v5  ;;  %v950_v33 = vadd.f32 %v949_v6, %v690_v38  ;;  %v1981_v34 = vpop.f32.mrb[14].mxu0 }
 0x13f   : > { %v1400_v37 = vpop.f32.mrb[14].mxu1  ;;  %1526 = vrcp.f32 %v1016_v27  ;;  %v1017_v39 = vadd.f32 1.0, %v1507_v30  ;;  %v1283_v12 = vmul.f32 -1.442695, %v958_v24  ;;  %v1985_v43 = vpop.f32.mrb[15].mxu0  ;;  %v865_v30 = vadd.f32 %v1946_v23, %v1928_v17 }
 0x140   : > { %v952_v44 = vpop.f32.mrb[15].mxu1  ;;  %v1509_v13 = vpop.eup %1508  ;;  %1528 = vrcp.f32 %v1019_v32  ;;  %v1281_v55 = vmul.f32 -1.442695, %v950_v33  ;;  %v961_v38 = vadd.f32 %v1400_v37, %v705_v15  ;;  %v857_v32 = vadd.f32 %v1948_v29, %v1924_v52 }
 0x141   : > { %v1511_v18 = vpop.eup %1510  ;;  %v1062_v56 = vmul.f32 %v1509_v13, %v846_v10  ;;  %1530 = vrcp.f32 %v1017_v39  ;;  %v953_v48 = vadd.f32 %v952_v44, %v1951_v7  ;;  %v590_v11 = vpop.permute.xlu0 %589  ;;  %v1301_v33 = vunpack.c.h.bf16 %v1323_v41 }
 0x142   : > { %v1513_v1 = vpop.eup %1512  ;;  %v1060_v49 = vmul.f32 %v1511_v18, %v838_v46  ;;  %1532 = vpow2.f32 %v1283_v12  ;;  %v1284_v60 = vmul.f32 -1.442695, %v961_v38  ;;  %v595_v19 = vpop.permute.xlu1 %594  ;;  %v1326_v46 = vld [vmem:[%s1958_s18 + $0x28] sm:$0xff]   ;;  %v1325_v38 = vld [vmem:[%s1958_s18 + $0x20] sm:$0xff]  }
 0x143   : > { %v1515_v50 = vpop.eup %1514  ;;  %v1110_v8 = vadd.f32 %v1296_v16, %v1062_v56  ;;  %v1063_v61 = vmul.f32 %v1513_v1, %v849_v58  ;;  %1534 = vpow2.f32 %v1281_v55  ;;  %v1282_v7 = vmul.f32 -1.442695, %v953_v48 }
 0x144   : > { %v1517_v2 = vpop.eup %1516  ;;  %v1108_v35 = vadd.f32 %v1292_v22, %v1060_v49  ;;  %v1061_v3 = vmul.f32 %v1515_v50, %v841_v36  ;;  %1536 = vpow2.f32 %v1284_v60  ;;  %v1304_v22 = vunpack.c.l.bf16 %v1324_v4 }
 0x145   : > { %v1519_v9 = vpop.eup %1518  ;;  %1127 = vst.msk [vmem:[%s1997_s5 + $0x10] sm:$0xff] %vm1124_vm0, %v1110_v8  ;;  %v1111_v51 = vadd.f32 %v1297_v63, %v1063_v61  ;;  %v1022_v0 = vadd.f32 1.0, %v1517_v2  ;;  %1538 = vpow2.f32 %v1282_v7  ;;  %v1300_v63 = vunpack.c.l.bf16 %v1323_v41  ;;  %v600_v25 = vpop.permute.xlu0 %599 }
 0x146   : > { %v1521_v14 = vpop.eup %1520  ;;  %1125 = vst.msk [vmem:[%s1997_s5] sm:$0xff] %vm1124_vm0, %v1108_v35  ;;  %v1109_v15 = vadd.f32 %v1293_v31, %v1061_v3  ;;  %v1020_v42 = vadd.f32 1.0, %v1519_v9  ;;  %v1305_v31 = vunpack.c.h.bf16 %v1324_v4  ;;  %v605_v44 = vpop.permute.xlu1 %604  ;;  %v878_v48 = vadd.f32 %v1953_v40, %v600_v25 }
 0x147   : > { %v1523_v16 = vpop.eup %1522  ;;  %1128 = vst.msk [vmem:[%s1997_s5 + $0x18] sm:$0xff] %vm1124_vm0, %v1111_v51  ;;  %1540 = vrcp.f32 %v1022_v0  ;;  %v1023_v5 = vadd.f32 1.0, %v1521_v14  ;;  %v1312_v1 = vunpack.c.l.bf16 %v1326_v46  ;;  %v870_v50 = vadd.f32 %v1960_v45, %v590_v11 }
 0x148   : > { %v1525_v59 = vpop.eup %1524  ;;  %1126 = vst.msk [vmem:[%s1997_s5 + $0x8] sm:$0xff] %vm1124_vm0, %v1109_v15  ;;  %1542 = vrcp.f32 %v1020_v42  ;;  %v1021_v27 = vadd.f32 1.0, %v1523_v16  ;;  %v1308_v8 = vunpack.c.l.bf16 %v1325_v38  ;;  %v881_v2 = vadd.f32 %v1962_v57, %v605_v44  ;;  %v1328_v15 = vld [vmem:[%s1958_s18 + $0x38] sm:$0xff]   ;;  %v1327_v42 = vld [vmem:[%s1958_s18 + $0x30] sm:$0xff]  }
 0x149   : > { %v1527_v24 = vpop.eup %1526  ;;  %v1066_v6 = vmul.f32 %v1525_v59, %v862_v20  ;;  %1544 = vrcp.f32 %v1023_v5  ;;  %v610_v60 = vpop.permute.xlu0 %609  ;;  %v1313_v35 = vunpack.c.h.bf16 %v1326_v46  ;;  %v873_v9 = vadd.f32 %v1964_v62, %v595_v19 }
 0x14a   : > { %v1529_v54 = vpop.eup %1528  ;;  %v1064_v47 = vmul.f32 %v1527_v24, %v854_v26  ;;  %1546 = vrcp.f32 %v1021_v27  ;;  %v615_v3 = vpop.permute.xlu1 %614  ;;  %v1309_v51 = vunpack.c.h.bf16 %v1325_v38  ;;  %v1320_v19 = vunpack.c.l.bf16 %v1328_v15 }
 0x14b   : > { %v1531_v53 = vpop.eup %1530  ;;  %v1114_v37 = vadd.f32 %v1304_v22, %v1066_v6  ;;  %v1067_v10 = vmul.f32 %v1529_v54, %v865_v30  ;;  %v886_v59 = vadd.f32 %v1978_v28, %v610_v60  ;;  %v1316_v26 = vunpack.c.l.bf16 %v1327_v42 }
 0x14c   : > { %v1533_v39 = vpop.eup %1532  ;;  %v1112_v17 = vadd.f32 %v1300_v63, %v1064_v47  ;;  %v1065_v23 = vmul.f32 %v1531_v53, %v857_v32  ;;  %v1321_v6 = vunpack.c.h.bf16 %v1328_v15  ;;  %v1317_v54 = vunpack.c.h.bf16 %v1327_v42 }
 0x14d   : > { %v1535_v12 = vpop.eup %1534  ;;  %1131 = vst.msk [vmem:[%s1997_s5 + $0x30] sm:$0xff] %vm1124_vm0, %v1114_v37  ;;  %v1115_v13 = vadd.f32 %v1305_v31, %v1067_v10  ;;  %v1026_v52 = vadd.f32 1.0, %v1533_v39  ;;  %v620_v16 = vpop.permute.xlu0 %619 }
 0x14e   : > { %v1537_v29 = vpop.eup %1536  ;;  %1129 = vst.msk [vmem:[%s1997_s5 + $0x20] sm:$0xff] %vm1124_vm0, %v1112_v17  ;;  %v1113_v55 = vadd.f32 %v1301_v33, %v1065_v23  ;;  %v1024_v18 = vadd.f32 1.0, %v1535_v12  ;;  %v894_v62 = vadd.f32 %v1975_v21, %v620_v16  ;;  %v625_v5 = vpop.permute.xlu1 %624  ;;  %v889_v21 = vadd.f32 %v1985_v43, %v615_v3 }
 0x14f   : > { %v1539_v56 = vpop.eup %1538  ;;  %1132 = vst.msk [vmem:[%s1997_s5 + $0x38] sm:$0xff] %vm1124_vm0, %v1115_v13  ;;  %1548 = vrcp.f32 %v1026_v52  ;;  %v1027_v58 = vadd.f32 1.0, %v1537_v29  ;;  %v897_v24 = vadd.f32 %v1981_v34, %v625_v5 }
 0x150   : > { %1130 = vst.msk [vmem:[%s1997_s5 + $0x28] sm:$0xff] %vm1124_vm0, %v1113_v55  ;;  %1550 = vrcp.f32 %v1024_v18  ;;  %v1025_v49 = vadd.f32 1.0, %v1539_v56 }
 0x151   : > { %v1541_v36 = vpop.eup %1540  ;;  %1552 = vrcp.f32 %v1027_v58 }
 0x152   : > { %v1543_v61 = vpop.eup %1542  ;;  %v1070_v7 = vmul.f32 %v1541_v36, %v878_v48  ;;  %1554 = vrcp.f32 %v1025_v49 }
 0x153   : > { %v1545_v40 = vpop.eup %1544  ;;  %v1068_v4 = vmul.f32 %v1543_v61, %v870_v50 }
 0x154   : > { %v1547_v45 = vpop.eup %1546  ;;  %v1118_v11 = vadd.f32 %v1312_v1, %v1070_v7  ;;  %v1071_v41 = vmul.f32 %v1545_v40, %v881_v2 }
 0x155   : > { %v1116_v0 = vadd.f32 %v1308_v8, %v1068_v4  ;;  %v1069_v14 = vmul.f32 %v1547_v45, %v873_v9 }
 0x156   : > { %1135 = vst.msk [vmem:[%s1997_s5 + $0x50] sm:$0xff] %vm1124_vm0, %v1118_v11  ;;  %v1119_v57 = vadd.f32 %v1313_v35, %v1071_v41 }
 0x157   : > { %1133 = vst.msk [vmem:[%s1997_s5 + $0x40] sm:$0xff] %vm1124_vm0, %v1116_v0  ;;  %v1117_v20 = vadd.f32 %v1309_v51, %v1069_v14 }
 0x158   : > { %1136 = vst.msk [vmem:[%s1997_s5 + $0x58] sm:$0xff] %vm1124_vm0, %v1119_v57 }
 0x159   : > { %v1549_v22 = vpop.eup %1548  ;;  %1134 = vst.msk [vmem:[%s1997_s5 + $0x48] sm:$0xff] %vm1124_vm0, %v1117_v20 }
 0x15a   : > { %v1551_v63 = vpop.eup %1550  ;;  %v1074_v27 = vmul.f32 %v1549_v22, %v894_v62 }
 0x15b   : > { %v1553_v30 = vpop.eup %1552  ;;  %v1072_v31 = vmul.f32 %v1551_v63, %v886_v59 }
 0x15c   : > { %v1555_v47 = vpop.eup %1554  ;;  %v1122_v32 = vadd.f32 %v1320_v19, %v1074_v27  ;;  %v1075_v33 = vmul.f32 %v1553_v30, %v897_v24 }
 0x15d   : > { %v1120_v53 = vadd.f32 %v1316_v26, %v1072_v31  ;;  %v1073_v25 = vmul.f32 %v1555_v47, %v889_v21 }
 0x15e   : > { %1139 = vst.msk [vmem:[%s1997_s5 + $0x70] sm:$0xff] %vm1124_vm0, %v1122_v32  ;;  %v1123_v28 = vadd.f32 %v1321_v6, %v1075_v33 }
 0x15f   : > { %1137 = vst.msk [vmem:[%s1997_s5 + $0x60] sm:$0xff] %vm1124_vm0, %v1120_v53  ;;  %v1121_v37 = vadd.f32 %v1317_v54, %v1073_v25 }
 0x160   : > { %1140 = vst.msk [vmem:[%s1997_s5 + $0x78] sm:$0xff] %vm1124_vm0, %v1123_v28 }
 0x161   : > { %1138 = vst.msk [vmem:[%s1997_s5 + $0x68] sm:$0xff] %vm1124_vm0, %v1121_v37 }
 0x162 PF: > { %s16_s23 = sadd.s32 1, %s1578_s23   ;;  %s2071_s21 = smov %s1574_s22 }
 0x163   : > { %p13_p5 = scmp.ge.s32.totalorder %s16_s23, 4   ;;  %s2072_s22 = smov %s2074_s4 }
 0x165   :  { %15 = sbr.rel (!%p13_p5) target bundleno = 2 (0x2), region = 77 }

// kernel: s4net_forward.5
= control target key start
LH: loop header
LB: loop body
LE: loop exit
PB: predicated region body
PF: predicated region fallthrough
CT: control target
= control target key end

     0   :  { %s2130_s24 = smov 0   ;;  %s2132_s25 = smov 0   ;;  %s2956_s0 = inlined_call_operand.vmem [shape: f32[2,128,16], index: 0, kind: input, shape index: {}]   ;;  %s2957_s1 = inlined_call_operand.vmem [shape: f32[2,128,16], index: 1, kind: input, shape index: {}]   ;;  %s2958_s2 = inlined_call_operand.vmem [shape: bf16[256,128], index: 2, kind: input, shape index: {}]   ;;  %s2959_s3 = inlined_call_operand.vmem [shape: f32[256,1], index: 3, kind: input, shape index: {}]   ;;  %s2960_s4 = inlined_call_operand.vmem [shape: f32[128,1], index: 4, kind: input, shape index: {}]   ;;  %s2961_s5 = inlined_call_operand.vmem [shape: f32[128,1], index: 5, kind: input, shape index: {}]   ;;  %s2962_s6 = inlined_call_operand.vmem [shape: bf16[2,128,16], index: 6, kind: output, shape index: {0}]   ;;  %s2963_s7 = inlined_call_operand.vmem [shape: f32[2,128,16], index: 7, kind: output, shape index: {1}]  }
   0x1   :  { %s2134_s26 = smov 0  }
   0x2 LB: > { %s30_s27 = sadd.s32 1, %s2083_s25  ;;  %p1757_p0 = scmp.ge.s32.totalorder %s2087_s26, 1  ;;  %s2087_s26 = sphi %s2134_s26, %s18_s26   ;;  %s2083_s25 = sphi %s2132_s25, %s2965_s25   ;;  %s2079_s24 = sphi %s2130_s24, %s2964_s24  }
   0x3   : > { %p32_p1 = scmp.ge.s32.totalorder %s30_s27, 2  ;;  %p276_p2 = scmp.lt.s32.totalorder %s2087_s26, 3 }
   0x5   : > { %s2967_s27 = smov (%p32_p1, %s30_s27), 0  ;;  %p277_p3 = pnand %p1757_p0, %p276_p2 }
   0x6   : > { %v563_v0 = vld [vmem:[%s2959_s3] sm:$0xff] (!%p277_p3)  ;;  %v565_v1 = vld [vmem:[%s2959_s3 + $0x10] sm:$0xff] (!%p277_p3)  ;;  %p330_p4 = scmp.lt.s32.totalorder (!%p277_p3), %s2079_s24, 1  ;;  %v2089_v2 = vmov (!%p277_p3), 0   ;;  %v564_v3 = vld [vmem:[%s2959_s3 + $0x8] sm:$0xff] (!%p277_p3)  ;;  %vm1269_vm0 = vcmask (!%p277_p3), 130048  }
   0x7   : > { %280 = sbr.rel (%p277_p3) target bundleno = 463 (0x1cf), region = 44  ;;  %1949 = vset.pattern.permute.xlu0 (!%p277_p3), %v2089_v2  ;;  %1950 = vset.pattern.permute.xlu1 (!%p277_p3), %v2089_v2  ;;  %v566_v4 = vld [vmem:[%s2959_s3 + $0x18] sm:$0xff] (!%p277_p3)  ;;  %v567_v8 = vld [vmem:[%s2959_s3 + $0x20] sm:$0xff] (!%p277_p3)  ;;  %v568_v9 = vld [vmem:[%s2959_s3 + $0x28] sm:$0xff] (!%p277_p3)  ;;  %vm1220_vm1 = vcmask (!%p277_p3), 125952  }
   0x8   : > { %597 = vperm.xlu0 (!%p277_p3), %1949, %v563_v0   ;;  %607 = vperm.xlu1 (!%p277_p3), %1950, %v565_v1   ;;  %v569_v23 = vld [vmem:[%s2959_s3 + $0x30] sm:$0xff] (!%p277_p3)  ;;  %v570_v24 = vld [vmem:[%s2959_s3 + $0x38] sm:$0xff] (!%p277_p3)  ;;  %v571_v36 = vld [vmem:[%s2959_s3 + $0x40] sm:$0xff] (!%p277_p3) }
   0x9   : > { %v572_v37 = vld [vmem:[%s2959_s3 + $0x48] sm:$0xff] (!%p277_p3)  ;;  %v573_v57 = vld [vmem:[%s2959_s3 + $0x50] sm:$0xff] (!%p277_p3)  ;;  %v574_v63 = vld [vmem:[%s2959_s3 + $0x58] sm:$0xff] (!%p277_p3) }
   0xc   : > { %602 = vperm.xlu0 (!%p277_p3), %1949, %v564_v3   ;;  %612 = vperm.xlu1 (!%p277_p3), %1950, %v566_v4  }
   0xe   : > { %s2969_s24 = smov (!%p330_p4, %s2079_s24), 1 }
   0xf   : > { %s2163_s13 = sshll.u32 %s2969_s24, 7  ;;  %s1818_s9 = sshll.u32 %s2969_s24, 6 }
  0x10   : > { %s2169_s16 = scalar_lea.vmem %s2957_s1, %s2163_s13  ;;  %617 = vperm.xlu0 %1949, %v567_v8   ;;  %622 = vperm.xlu1 %1950, %v568_v9   ;;  %s2613_s11 = scalar_lea.vmem %s2962_s6, %s1818_s9 }
  0x11   : > { %v2172_v5 = vld [vmem:[%s2169_s16] sm:$0xff]  ;;  %v2175_v6 = vld [vmem:[%s2169_s16 + $0x8] sm:$0xff]  ;;  %v2178_v7 = vld [vmem:[%s2169_s16 + $0x10] sm:$0xff]  ;;  %s2909_s15 = scalar_lea.vmem %s2963_s7, %s2163_s13 }
  0x12   : > { %v379_v10 = vmul.f32 %v2172_v5, %v2172_v5  ;;  %v380_v11 = vmul.f32 %v2175_v6, %v2175_v6  ;;  %v2191_v12 = vld [vmem:[%s2169_s16 + $0x18] sm:$0xff]  ;;  %v381_v13 = vmul.f32 %v2178_v7, %v2178_v7  ;;  %v2198_v15 = vld [vmem:[%s2169_s16 + $0x20] sm:$0xff]  ;;  %v2201_v16 = vld [vmem:[%s2169_s16 + $0x28] sm:$0xff] }
  0x13   : > { %v382_v14 = vmul.f32 %v2191_v12, %v2191_v12  ;;  %v383_v20 = vmul.f32 %v2198_v15, %v2198_v15  ;;  %v2209_v21 = vld [vmem:[%s2169_s16 + $0x30] sm:$0xff]  ;;  %v2212_v22 = vld [vmem:[%s2169_s16 + $0x38] sm:$0xff]  ;;  %v384_v26 = vmul.f32 %v2201_v16, %v2201_v16  ;;  %v2242_v46 = vld [vmem:[%s2169_s16 + $0x40] sm:$0xff] }
  0x14   : > { %v395_v17 = vmul.f32 %v379_v10, %v2172_v5  ;;  %v396_v18 = vmul.f32 %v380_v11, %v2175_v6  ;;  %v397_v19 = vmul.f32 %v381_v13, %v2178_v7  ;;  %v385_v27 = vmul.f32 %v2209_v21, %v2209_v21  ;;  %627 = vperm.xlu0 %1949, %v569_v23   ;;  %v2245_v47 = vld [vmem:[%s2169_s16 + $0x48] sm:$0xff]  ;;  %v2251_v56 = vld [vmem:[%s2169_s16 + $0x50] sm:$0xff]  ;;  %v2261_v61 = vld [vmem:[%s2169_s16 + $0x58] sm:$0xff] }
  0x15   : > { %v398_v25 = vmul.f32 %v382_v14, %v2191_v12  ;;  %v399_v31 = vmul.f32 %v383_v20, %v2198_v15  ;;  %v400_v33 = vmul.f32 %v384_v26, %v2201_v16  ;;  %v386_v34 = vmul.f32 %v2212_v22, %v2212_v22  ;;  %632 = vperm.xlu1 %1950, %v570_v24   ;;  %v2264_v62 = vld [vmem:[%s2169_s16 + $0x60] sm:$0xff]  ;;  %v2271_v3 = vld [vmem:[%s2169_s16 + $0x68] sm:$0xff]  ;;  %v2289_v23 = vld [vmem:[%s2169_s16 + $0x70] sm:$0xff] }
  0x16   : > { %v411_v28 = vmul.f32 0.044715, %v395_v17  ;;  %v412_v29 = vmul.f32 0.044715, %v396_v18  ;;  %v413_v30 = vmul.f32 0.044715, %v397_v19  ;;  %v401_v35 = vmul.f32 %v385_v27, %v2209_v21 }
  0x17   : > { %v414_v32 = vmul.f32 0.044715, %v398_v25  ;;  %v415_v41 = vmul.f32 0.044715, %v399_v31  ;;  %v416_v43 = vmul.f32 0.044715, %v400_v33  ;;  %v402_v44 = vmul.f32 %v386_v34, %v2212_v22 }
  0x18   : > { %v427_v38 = vadd.f32 %v411_v28, %v2172_v5  ;;  %v428_v39 = vadd.f32 %v412_v29, %v2175_v6  ;;  %v429_v40 = vadd.f32 %v413_v30, %v2178_v7  ;;  %v417_v45 = vmul.f32 0.044715, %v401_v35  ;;  %637 = vperm.xlu0 %1949, %v571_v36   ;;  %v1951_v10 = vld [vmem:[%s2958_s2] sm:$0xff]   ;;  %v580_v28 = vld [vmem:[%s2959_s3 + $0x88] sm:$0xff]  ;;  %v581_v36 = vld [vmem:[%s2959_s3 + $0x90] sm:$0xff] }
  0x19   : > { %v430_v42 = vadd.f32 %v414_v32, %v2191_v12  ;;  %v431_v51 = vadd.f32 %v415_v41, %v2198_v15  ;;  %v432_v53 = vadd.f32 %v416_v43, %v2201_v16  ;;  %v418_v54 = vmul.f32 0.044715, %v402_v44  ;;  %642 = vperm.xlu1 %1950, %v572_v37   ;;  %v579_v17 = vld [vmem:[%s2959_s3 + $0x80] sm:$0xff]  ;;  %1876 = vmatprep.mubr.bf16.mxu0 %v1951_v10  ;;  %v2304_v32 = vld [vmem:[%s2169_s16 + $0x78] sm:$0xff]  ;;  %s2586_s16 = scalar_lea.vmem %s2956_s0, %s2163_s13 }
  0x1a   : > { %v443_v48 = vmul.f32 0.7978846, %v427_v38  ;;  %v444_v49 = vmul.f32 0.7978846, %v428_v39  ;;  %v445_v50 = vmul.f32 0.7978846, %v429_v40  ;;  %v433_v55 = vadd.f32 %v417_v45, %v2209_v21 }
  0x1b   : > { %v446_v52 = vmul.f32 0.7978846, %v430_v42  ;;  %v447_v58 = vmul.f32 0.7978846, %v431_v51  ;;  %v387_v59 = vmul.f32 %v2242_v46, %v2242_v46  ;;  %v388_v60 = vmul.f32 %v2245_v47, %v2245_v47  ;;  %v1952_v24 = vld [vmem:[%s2958_s2 + $0x40] sm:$0xff]   ;;  %v582_v37 = vld [vmem:[%s2959_s3 + $0x98] sm:$0xff] }
  0x1c   : > { %1967 = vtanh.f32 %v443_v48  ;;  %v448_v0 = vmul.f32 0.7978846, %v432_v53  ;;  %v434_v1 = vadd.f32 %v418_v54, %v2212_v22  ;;  %v449_v2 = vmul.f32 0.7978846, %v433_v55  ;;  %647 = vperm.xlu0 %1949, %v573_v57   ;;  %1892 = vmatprep.mubr.bf16.mxu1 %v1952_v24 }
  0x1d   : > { %1969 = vtanh.f32 %v444_v49  ;;  %v403_v4 = vmul.f32 %v387_v59, %v2242_v46  ;;  %v404_v8 = vmul.f32 %v388_v60, %v2245_v47  ;;  %v389_v9 = vmul.f32 %v2251_v56, %v2251_v56  ;;  %652 = vperm.xlu1 %1950, %v574_v63   ;;  %v584_v59 = vld [vmem:[%s2959_s3 + $0xa8] sm:$0xff] }
  0x1e   : > { %1971 = vtanh.f32 %v445_v50  ;;  %v450_v11 = vmul.f32 0.7978846, %v434_v1  ;;  %v390_v13 = vmul.f32 %v2261_v61, %v2261_v61  ;;  %v391_v14 = vmul.f32 %v2264_v62, %v2264_v62 }
  0x1f   : > { %1973 = vtanh.f32 %v446_v52  ;;  %v419_v18 = vmul.f32 0.044715, %v403_v4  ;;  %v420_v19 = vmul.f32 0.044715, %v404_v8  ;;  %v405_v20 = vmul.f32 %v389_v9, %v2251_v56 }
  0x20   : > { %1975 = vtanh.f32 %v447_v58  ;;  %v406_v25 = vmul.f32 %v390_v13, %v2261_v61  ;;  %v392_v26 = vmul.f32 %v2271_v3, %v2271_v3  ;;  %v407_v27 = vmul.f32 %v391_v14, %v2264_v62  ;;  %677 = vperm.xlu0 %1949, %v579_v17   ;;  %v583_v58 = vld [vmem:[%s2959_s3 + $0xa0] sm:$0xff] }
  0x21   : > { %1977 = vtanh.f32 %v448_v0  ;;  %v435_v29 = vadd.f32 %v419_v18, %v2242_v46  ;;  %v436_v30 = vadd.f32 %v420_v19, %v2245_v47  ;;  %v421_v31 = vmul.f32 0.044715, %v405_v20  ;;  %682 = vperm.xlu1 %1950, %v580_v28  }
  0x22   : > { %1979 = vtanh.f32 %v449_v2  ;;  %v422_v33 = vmul.f32 0.044715, %v406_v25  ;;  %v408_v34 = vmul.f32 %v392_v26, %v2271_v3  ;;  %v423_v35 = vmul.f32 0.044715, %v407_v27 }
  0x23   : > { %1981 = vtanh.f32 %v450_v11  ;;  %v451_v38 = vmul.f32 0.7978846, %v435_v29  ;;  %v452_v39 = vmul.f32 0.7978846, %v436_v30  ;;  %v437_v40 = vadd.f32 %v421_v31, %v2251_v56 }
  0x24   : > { %v393_v41 = vmul.f32 %v2289_v23, %v2289_v23  ;;  %v438_v42 = vadd.f32 %v422_v33, %v2261_v61  ;;  %v424_v43 = vmul.f32 0.044715, %v408_v34  ;;  %v439_v44 = vadd.f32 %v423_v35, %v2264_v62  ;;  %687 = vperm.xlu0 %1949, %v581_v36  }
  0x25   : > { %v394_v45 = vmul.f32 %v2304_v32, %v2304_v32  ;;  %1983 = vtanh.f32 %v451_v38  ;;  %v453_v49 = vmul.f32 0.7978846, %v437_v40  ;;  %692 = vperm.xlu1 %1950, %v582_v37  }
  0x26   : > { %v1968_v48 = vpop.eup %1967  ;;  %v409_v50 = vmul.f32 %v393_v41, %v2289_v23  ;;  %1985 = vtanh.f32 %v452_v39  ;;  %v454_v53 = vmul.f32 0.7978846, %v438_v42  ;;  %v440_v54 = vadd.f32 %v424_v43, %v2271_v3 }
  0x27   : > { %v1970_v51 = vpop.eup %1969  ;;  %v475_v52 = vadd.f32 1.0, %v1968_v48  ;;  %1987 = vtanh.f32 %v453_v49  ;;  %v455_v60 = vmul.f32 0.7978846, %v439_v44  ;;  %v410_v63 = vmul.f32 %v394_v45, %v2304_v32 }
  0x28   : > { %v1972_v55 = vpop.eup %1971  ;;  %v476_v57 = vadd.f32 1.0, %v1970_v51  ;;  %1989 = vtanh.f32 %v454_v53  ;;  %v456_v4 = vmul.f32 0.7978846, %v440_v54  ;;  %v425_v11 = vmul.f32 0.044715, %v409_v50  ;;  %697 = vperm.xlu0 %1949, %v583_v58  }
  0x29   : > { %v1974_v0 = vpop.eup %1973  ;;  %v491_v1 = vmul.f32 0.5, %v475_v52  ;;  %v477_v2 = vadd.f32 1.0, %v1972_v55  ;;  %1991 = vtanh.f32 %v455_v60  ;;  %v426_v26 = vmul.f32 0.044715, %v410_v63  ;;  %702 = vperm.xlu1 %1950, %v584_v59  }
  0x2a   : > { %v1976_v8 = vpop.eup %1975  ;;  %v492_v9 = vmul.f32 0.5, %v476_v57  ;;  %v478_v10 = vadd.f32 1.0, %v1974_v0  ;;  %1993 = vtanh.f32 %v456_v4  ;;  %v441_v31 = vadd.f32 %v425_v11, %v2289_v23 }
  0x2b   : > { %v1978_v13 = vpop.eup %1977  ;;  %v507_v14 = vmul.f32 %v491_v1, %v2172_v5  ;;  %v493_v17 = vmul.f32 0.5, %v477_v2  ;;  %v479_v18 = vadd.f32 1.0, %v1976_v8  ;;  %v442_v38 = vadd.f32 %v426_v26, %v2304_v32  ;;  %v589_v8 = vld [vmem:[%s2959_s3 + $0xd0] sm:$0xff] }
  0x2c   : > { %v1980_v19 = vpop.eup %1979  ;;  %v508_v20 = vmul.f32 %v492_v9, %v2175_v6  ;;  %v494_v24 = vmul.f32 0.5, %v478_v10  ;;  %v480_v25 = vadd.f32 1.0, %v1978_v13  ;;  %v585_v6 = vld [vmem:[%s2959_s3 + $0xb0] sm:$0xff]  ;;  %v457_v39 = vmul.f32 0.7978846, %v441_v31  ;;  %v590_v9 = vld [vmem:[%s2959_s3 + $0xd8] sm:$0xff] }
  0x2d   : > { %v1982_v27 = vpop.eup %1981  ;;  %v509_v28 = vmul.f32 %v493_v17, %v2178_v7  ;;  %v495_v29 = vmul.f32 0.5, %v479_v18  ;;  %v481_v30 = vadd.f32 1.0, %v1980_v19  ;;  %v458_v45 = vmul.f32 0.7978846, %v442_v38  ;;  %707 = vperm.xlu0 %1949, %v585_v6   ;;  %v591_v17 = vld [vmem:[%s2959_s3 + $0xe0] sm:$0xff]  ;;  %v592_v18 = vld [vmem:[%s2959_s3 + $0xe8] sm:$0xff] }
  0x2e   : > { %v555_v33 = vpack.c.bf16 %v508_v20, %v507_v14  ;;  %v510_v5 = vmul.f32 %v494_v24, %v2191_v12  ;;  %v496_v34 = vmul.f32 0.5, %v480_v25  ;;  %v482_v35 = vadd.f32 1.0, %v1982_v27  ;;  %v586_v12 = vld [vmem:[%s2959_s3 + $0xb8] sm:$0xff]  ;;  %v593_v27 = vld [vmem:[%s2959_s3 + $0xf0] sm:$0xff]  ;;  %v575_v31 = vld [vmem:[%s2959_s3 + $0x60] sm:$0xff] }
  0x2f   : > { %v511_v36 = vmul.f32 %v495_v29, %v2198_v15  ;;  %v497_v37 = vmul.f32 0.5, %v481_v30  ;;  %v1984_v7 = vpop.eup %1983  ;;  %1995 = vtanh.f32 %v457_v39  ;;  %712 = vperm.xlu1 %1950, %v586_v12   ;;  %v1237_v6 = vld [vmem:[%s2960_s4] sm:$0xff]  ;;  %v1956_v38 = vld [vmem:[%s2958_s2 + $0x50] sm:$0xff]   ;;  %v1958_v12 = vld [vmem:[%s2958_s2 + $0x58] sm:$0xff]  }
  0x30   : > { %1860 = vmatprep.subr.bf16.mxu0 %v555_v33  ;;  %1908 = vmatprep.subr.bf16.mxu1 %v555_v33  ;;  %v556_v40 = vpack.c.bf16 %v510_v5, %v509_v28  ;;  %v512_v41 = vmul.f32 %v496_v34, %v2201_v16  ;;  %v498_v42 = vmul.f32 0.5, %v482_v35  ;;  %v1986_v43 = vpop.eup %1985  ;;  %v483_v44 = vadd.f32 1.0, %v1984_v7  ;;  %v587_v16 = vld [vmem:[%s2959_s3 + $0xc0] sm:$0xff]  ;;  %v594_v28 = vld [vmem:[%s2959_s3 + $0xf8] sm:$0xff]  ;;  %v1953_v34 = vld [vmem:[%s2958_s2 + $0x8] sm:$0xff]  }
  0x31   : > { %1861 = vmatpush3.bf16.msra.mxu0 %v555_v33  ;;  %1916 = vmatpush3.bf16.msra.mxu1 %v555_v33  ;;  %v513_v15 = vmul.f32 %v497_v37, %v2209_v21  ;;  %v1988_v48 = vpop.eup %1987  ;;  %v484_v51 = vadd.f32 1.0, %v1986_v43  ;;  %v588_v21 = vld [vmem:[%s2959_s3 + $0xc8] sm:$0xff]  ;;  %1997 = vtanh.f32 %v458_v45  ;;  %v1955_v37 = vld [vmem:[%s2958_s2 + $0x10] sm:$0xff]   ;;  %v1240_v7 = vld [vmem:[%s2960_s4 + $0x18] sm:$0xff] }
  0x32   : > { %1862 = vmatprep.subr.bf16.mxu0 %v556_v40  ;;  %1909 = vmatprep.subr.bf16.mxu1 %v556_v40  ;;  %v557_v49 = vpack.c.bf16 %v512_v41, %v511_v36  ;;  %v514_v50 = vmul.f32 %v498_v42, %v2212_v22  ;;  %v1990_v52 = vpop.eup %1989  ;;  %v499_v53 = vmul.f32 0.5, %v483_v44  ;;  %v485_v54 = vadd.f32 1.0, %v1988_v48  ;;  %v576_v33 = vld [vmem:[%s2959_s3 + $0x68] sm:$0xff]  ;;  %v1239_v39 = vld [vmem:[%s2960_s4 + $0x10] sm:$0xff]  ;;  %v1241_v41 = vld [vmem:[%s2960_s4 + $0x20] sm:$0xff] }
  0x33   : > { %v1992_v55 = vpop.eup %1991  ;;  %v500_v57 = vmul.f32 0.5, %v484_v51  ;;  %v486_v58 = vadd.f32 1.0, %v1990_v52  ;;  %717 = vperm.xlu0 %1949, %v587_v16   ;;  %722 = vperm.xlu1 %1950, %v588_v21   ;;  %v1954_v35 = vld [vmem:[%s2958_s2 + $0x48] sm:$0xff]   ;;  %v1959_v43 = vld [vmem:[%s2958_s2 + $0x20] sm:$0xff]   ;;  %v1243_v44 = vld [vmem:[%s2960_s4 + $0x30] sm:$0xff] }
  0x34   : > { %v1994_v59 = vpop.eup %1993  ;;  %v558_v22 = vpack.c.bf16 %v514_v50, %v513_v15  ;;  %v501_v60 = vmul.f32 0.5, %v485_v54  ;;  %v487_v63 = vadd.f32 1.0, %v1992_v55  ;;  %v515_v0 = vmul.f32 %v499_v53, %v2242_v46  ;;  %v1238_v36 = vld [vmem:[%s2960_s4 + $0x8] sm:$0xff]  ;;  %v1960_v15 = vld [vmem:[%s2958_s2 + $0x60] sm:$0xff]   ;;  %v1244_v45 = vld [vmem:[%s2960_s4 + $0x38] sm:$0xff] }
  0x35   : > { %1863 = vmatpush3.bf16.msra.mxu0 %v556_v40  ;;  %1917 = vmatpush3.bf16.msra.mxu1 %v556_v40  ;;  %v516_v1 = vmul.f32 %v500_v57, %v2245_v47  ;;  %v502_v2 = vmul.f32 0.5, %v486_v58  ;;  %v488_v4 = vadd.f32 1.0, %v1994_v59  ;;  %v1957_v40 = vld [vmem:[%s2958_s2 + $0x18] sm:$0xff]   ;;  %v1242_v42 = vld [vmem:[%s2960_s4 + $0x28] sm:$0xff]  ;;  %v1245_v50 = vld [vmem:[%s2960_s4 + $0x40] sm:$0xff] }
  0x36   : > { %1864 = vmatprep.subr.bf16.mxu0 %v557_v49  ;;  %1910 = vmatprep.subr.bf16.mxu1 %v557_v49  ;;  %v503_v10 = vmul.f32 0.5, %v487_v63  ;;  %v517_v47 = vmul.f32 %v501_v60, %v2251_v56  ;;  %v1961_v48 = vld [vmem:[%s2958_s2 + $0x28] sm:$0xff]   ;;  %v1963_v52 = vld [vmem:[%s2958_s2 + $0x30] sm:$0xff]   ;;  %v1248_v53 = vld [vmem:[%s2960_s4 + $0x58] sm:$0xff] }
  0x37   : > { %v559_v46 = vpack.c.bf16 %v516_v1, %v515_v0  ;;  %v518_v11 = vmul.f32 %v502_v2, %v2261_v61  ;;  %v504_v13 = vmul.f32 0.5, %v488_v4  ;;  %727 = vperm.xlu0 %1949, %v589_v8   ;;  %732 = vperm.xlu1 %1950, %v590_v9   ;;  %v1246_v51 = vld [vmem:[%s2960_s4 + $0x48] sm:$0xff]  ;;  %v1964_v16 = vld [vmem:[%s2958_s2 + $0x70] sm:$0xff]   ;;  %v1965_v54 = vld [vmem:[%s2958_s2 + $0x38] sm:$0xff]  }
  0x38   : > { %v519_v56 = vmul.f32 %v503_v10, %v2264_v62  ;;  %v1247_v21 = vld [vmem:[%s2960_s4 + $0x50] sm:$0xff]  ;;  %v1966_v55 = vld [vmem:[%s2958_s2 + $0x78] sm:$0xff]   ;;  %v1249_v57 = vld [vmem:[%s2960_s4 + $0x60] sm:$0xff] }
  0x39   : > { %1865 = vmatpush3.bf16.msra.mxu0 %v557_v49  ;;  %1918 = vmatpush3.bf16.msra.mxu1 %v557_v49  ;;  %v1996_v14 = vpop.eup %1995  ;;  %v560_v61 = vpack.c.bf16 %v518_v11, %v517_v47  ;;  %v520_v24 = vmul.f32 %v504_v13, %v2271_v3  ;;  %v1962_v49 = vld [vmem:[%s2958_s2 + $0x68] sm:$0xff]   ;;  %v1251_v59 = vld [vmem:[%s2960_s4 + $0x70] sm:$0xff]  ;;  %v1253_v60 = vld [vmem:[%s2961_s5] sm:$0xff] }
  0x3a   : > { %1866 = vmatprep.subr.bf16.mxu0 %v558_v22  ;;  %1911 = vmatprep.subr.bf16.mxu1 %v558_v22  ;;  %v489_v19 = vadd.f32 1.0, %v1996_v14  ;;  %v1250_v58 = vld [vmem:[%s2960_s4 + $0x68] sm:$0xff]  ;;  %v1255_v0 = vld [vmem:[%s2961_s5 + $0x10] sm:$0xff]  ;;  %v1256_v1 = vld [vmem:[%s2961_s5 + $0x18] sm:$0xff] }
  0x3b   : > { %v1998_v20 = vpop.eup %1997  ;;  %737 = vperm.xlu0 %1949, %v591_v17   ;;  %742 = vperm.xlu1 %1950, %v592_v18   ;;  %v561_v62 = vpack.c.bf16 %v520_v24, %v519_v56  ;;  %v1254_v63 = vld [vmem:[%s2961_s5 + $0x8] sm:$0xff]  ;;  %v1257_v2 = vld [vmem:[%s2961_s5 + $0x20] sm:$0xff]  ;;  %v1259_v8 = vld [vmem:[%s2961_s5 + $0x30] sm:$0xff] }
  0x3c   : > { %v490_v25 = vadd.f32 1.0, %v1998_v20  ;;  %v505_v26 = vmul.f32 0.5, %v489_v19  ;;  %v1258_v4 = vld [vmem:[%s2961_s5 + $0x28] sm:$0xff]  ;;  %v1260_v9 = vld [vmem:[%s2961_s5 + $0x38] sm:$0xff]  ;;  %v1261_v10 = vld [vmem:[%s2961_s5 + $0x40] sm:$0xff] }
  0x3d   : > { %1867 = vmatpush3.bf16.msra.mxu0 %v558_v22  ;;  %1919 = vmatpush3.bf16.msra.mxu1 %v558_v22  ;;  %v1252_v22 = vld [vmem:[%s2960_s4 + $0x78] sm:$0xff]  ;;  %v1263_v47 = vld [vmem:[%s2961_s5 + $0x50] sm:$0xff]  ;;  %v1265_v13 = vld [vmem:[%s2961_s5 + $0x60] sm:$0xff] }
  0x3e   : > { %1868 = vmatprep.subr.bf16.mxu0 %v559_v46  ;;  %1912 = vmatprep.subr.bf16.mxu1 %v559_v46  ;;  %v506_v29 = vmul.f32 0.5, %v490_v25  ;;  %v521_v3 = vmul.f32 %v505_v26, %v2289_v23  ;;  %v577_v23 = vld [vmem:[%s2959_s3 + $0x70] sm:$0xff]  ;;  %v1264_v11 = vld [vmem:[%s2961_s5 + $0x58] sm:$0xff]  ;;  %v1266_v14 = vld [vmem:[%s2961_s5 + $0x68] sm:$0xff] }
  0x3f   : > { %747 = vperm.xlu0 %1949, %v593_v27   ;;  %752 = vperm.xlu1 %1950, %v594_v28   ;;  %v1267_v17 = vld [vmem:[%s2961_s5 + $0x70] sm:$0xff]  ;;  %v1268_v18 = vld [vmem:[%s2961_s5 + $0x78] sm:$0xff] }
  0x40   : > { %v522_v30 = vmul.f32 %v506_v29, %v2304_v32  ;;  %v578_v32 = vld [vmem:[%s2959_s3 + $0x78] sm:$0xff] }
  0x41   : > { %1869 = vmatpush3.bf16.msra.mxu0 %v559_v46  ;;  %1920 = vmatpush3.bf16.msra.mxu1 %v559_v46  ;;  %v1262_v46 = vld [vmem:[%s2961_s5 + $0x48] sm:$0xff] }
  0x42   : > { %1870 = vmatprep.subr.bf16.mxu0 %v560_v61  ;;  %1913 = vmatprep.subr.bf16.mxu1 %v560_v61  ;;  %v562_v5 = vpack.c.bf16 %v522_v30, %v521_v3 }
  0x43   : > { %657 = vperm.xlu0 %1949, %v575_v31   ;;  %662 = vperm.xlu1 %1950, %v576_v33  }
  0x45   : > { %1871 = vmatpush3.bf16.msra.mxu0 %v560_v61  ;;  %1921 = vmatpush3.bf16.msra.mxu1 %v560_v61 }
  0x46   : > { %1872 = vmatprep.subr.bf16.mxu0 %v561_v62  ;;  %1914 = vmatprep.subr.bf16.mxu1 %v561_v62 }
  0x47   : > { %667 = vperm.xlu0 %1949, %v577_v23   ;;  %672 = vperm.xlu1 %1950, %v578_v32  }
  0x49   : > { %1873 = vmatpush3.bf16.msra.mxu0 %v561_v62  ;;  %1922 = vmatpush3.bf16.msra.mxu1 %v561_v62 }
  0x4a   : > { %1874 = vmatprep.subr.bf16.mxu0 %v562_v5  ;;  %1915 = vmatprep.subr.bf16.mxu1 %v562_v5 }
  0x4b   : > { %1399 = vperm.xlu0 %1949, %v1237_v6   ;;  %1404 = vperm.xlu1 %1950, %v1238_v36  }
  0x4d   : > { %1875 = vmatpush3.bf16.msra.mxu0 %v562_v5  ;;  %1923 = vmatpush3.bf16.msra.mxu1 %v562_v5 }
  0x4f   : > { %1409 = vperm.xlu0 %1949, %v1239_v39   ;;  %1414 = vperm.xlu1 %1950, %v1240_v7  }
  0x50   : > { %1877 = vmatmul.mubr.bf16.vlgmr.msra.gmra.mrb[0].mxu0 %v1953_v34  ;;  %1893 = vmatmul.mubr.bf16.vlgmr.msra.gmra.mrb[0].mxu1 %v1954_v35 }
  0x51   : > { %1880 = vmatprep.mubr.bf16.mxu0 %v1955_v37  ;;  %1896 = vmatprep.mubr.bf16.mxu1 %v1956_v38 }
  0x53   : > { %1419 = vperm.xlu0 %1949, %v1241_v41   ;;  %1424 = vperm.xlu1 %1950, %v1242_v42  }
  0x57   : > { %1429 = vperm.xlu0 %1949, %v1243_v44   ;;  %1434 = vperm.xlu1 %1950, %v1244_v45  }
  0x58   : > { %1881 = vmatmul.mubr.bf16.gmra.mrb[4].mxu0 %v1957_v40  ;;  %1897 = vmatmul.mubr.bf16.gmra.mrb[4].mxu1 %v1958_v12 }
  0x59   : > { %1884 = vmatprep.mubr.bf16.mxu0 %v1959_v43  ;;  %1900 = vmatprep.mubr.bf16.mxu1 %v1960_v15 }
  0x5b   : > { %1439 = vperm.xlu0 %1949, %v1245_v50   ;;  %1444 = vperm.xlu1 %1950, %v1246_v51  }
  0x5f   : > { %1449 = vperm.xlu0 %1949, %v1247_v21   ;;  %1454 = vperm.xlu1 %1950, %v1248_v53  }
  0x60   : > { %1885 = vmatmul.mubr.bf16.gmra.mrb[8].mxu0 %v1961_v48  ;;  %1901 = vmatmul.mubr.bf16.gmra.mrb[8].mxu1 %v1962_v49 }
  0x61   : > { %1888 = vmatprep.mubr.bf16.mxu0 %v1963_v52  ;;  %1904 = vmatprep.mubr.bf16.mxu1 %v1964_v16 }
  0x63   : > { %1459 = vperm.xlu0 %1949, %v1249_v57   ;;  %1464 = vperm.xlu1 %1950, %v1250_v58  }
  0x67   : > { %1469 = vperm.xlu0 %1949, %v1251_v59   ;;  %1474 = vperm.xlu1 %1950, %v1252_v22  }
  0x68   : > { %1889 = vmatmul.mubr.bf16.gmra.mrb[12].mxu0 %v1965_v54  ;;  %1905 = vmatmul.mubr.bf16.gmra.mrb[12].mxu1 %v1966_v55 }
  0x6b   : > { %1495 = vperm.xlu0 %1949, %v1253_v60   ;;  %1500 = vperm.xlu1 %1950, %v1254_v63  }
  0x6f   : > { %1505 = vperm.xlu0 %1949, %v1255_v0   ;;  %1510 = vperm.xlu1 %1950, %v1256_v1  }
  0x73   : > { %1515 = vperm.xlu0 %1949, %v1257_v2   ;;  %1520 = vperm.xlu1 %1950, %v1258_v4  }
  0x77   : > { %1525 = vperm.xlu0 %1949, %v1259_v8   ;;  %1530 = vperm.xlu1 %1950, %v1260_v9  }
  0x7b   : > { %1535 = vperm.xlu0 %1949, %v1261_v10   ;;  %1540 = vperm.xlu1 %1950, %v1262_v46  }
  0x7f   : > { %1545 = vperm.xlu0 %1949, %v1263_v47   ;;  %1550 = vperm.xlu1 %1950, %v1264_v11  }
  0x83   : > { %1555 = vperm.xlu0 %1949, %v1265_v13   ;;  %1560 = vperm.xlu1 %1950, %v1266_v14  }
  0x87   : > { %1565 = vperm.xlu0 %1949, %v1267_v17   ;;  %1570 = vperm.xlu1 %1950, %v1268_v18   ;;  %v2527_v19 = vpop.permute.xlu0 %597  ;;  %v2529_v20 = vpop.permute.xlu1 %607 }
  0x8b   : > { %v2531_v56 = vpop.permute.xlu0 %602  ;;  %v2533_v61 = vpop.permute.xlu1 %612 }
  0x8f   : > { %v2535_v24 = vpop.permute.xlu0 %617  ;;  %v2537_v25 = vpop.permute.xlu1 %622 }
  0x93   : > { %v2539_v26 = vpop.permute.xlu0 %627 }
  0x94   : > { %v2541_v27 = vpop.permute.xlu1 %632 }
  0x97   : > { %v2543_v28 = vpop.permute.xlu0 %637 }
  0x98   : > { %v2545_v29 = vpop.permute.xlu1 %642 }
  0x9b   : > { %v2547_v62 = vpop.permute.xlu0 %647 }
  0x9c   : > { %v2549_v3 = vpop.permute.xlu1 %652 }
  0x9f   : > { %v678_v30 = vpop.permute.xlu0 %677 }
  0xa0   : > { %v683_v31 = vpop.permute.xlu1 %682 }
  0xa3   : > { %v688_v33 = vpop.permute.xlu0 %687 }
  0xa4   : > { %v693_v5 = vpop.permute.xlu1 %692 }
  0xa7   : > { %v698_v23 = vpop.permute.xlu0 %697 }
  0xa8   : > { %v703_v32 = vpop.permute.xlu1 %702 }
  0xac   : > { %v708_v34 = vpop.permute.xlu0 %707 }
  0xae   : > { %v713_v35 = vpop.permute.xlu1 %712 }
  0xb2   : > { %v718_v6 = vpop.permute.xlu0 %717  ;;  %v2551_v36 = vpop.permute.xlu1 %722 }
  0xb6   : > { %v728_v52 = vpop.permute.xlu0 %727  ;;  %v733_v16 = vpop.permute.xlu1 %732 }
  0xba   : > { %v738_v46 = vpop.permute.xlu0 %737  ;;  %v2569_v47 = vpop.permute.xlu1 %742 }
 0x123   : > { %v2553_v37 = vpop.f32.mrb[0].mxu0  ;;  %v1894_v38 = vpop.f32.mrb[0].mxu1 }
 0x124   : > { %v958_v39 = vadd.f32 %v1894_v38, %v688_v33  ;;  %v2555_v7 = vpop.f32.mrb[1].mxu0  ;;  %v949_v40 = vpop.f32.mrb[1].mxu1 }
 0x125   : > { %v950_v12 = vadd.f32 %v949_v40, %v678_v30  ;;  %v2557_v41 = vpop.f32.mrb[2].mxu0  ;;  %v1895_v42 = vpop.f32.mrb[2].mxu1 }
 0x126   : > { %v1784_v43 = vmul.f32 -1.442695, %v958_v39  ;;  %v961_v15 = vadd.f32 %v1895_v42, %v693_v5  ;;  %v2559_v44 = vpop.f32.mrb[3].mxu0  ;;  %v952_v45 = vpop.f32.mrb[3].mxu1 }
 0x127   : > { %v1782_v48 = vmul.f32 -1.442695, %v950_v12  ;;  %v953_v49 = vadd.f32 %v952_v45, %v683_v31 }
 0x128   : > { %1999 = vpow2.f32 %v1784_v43  ;;  %v1785_v50 = vmul.f32 -1.442695, %v961_v15 }
 0x129   : > { %2001 = vpow2.f32 %v1782_v48  ;;  %v1783_v51 = vmul.f32 -1.442695, %v953_v49 }
 0x12a   : > { %2003 = vpow2.f32 %v1785_v50  ;;  %v753_v50 = vpop.permute.xlu1 %752 }
 0x12b   : > { %2005 = vpow2.f32 %v1783_v51  ;;  %v2561_v21 = vpop.f32.mrb[4].mxu0  ;;  %v1898_v53 = vpop.f32.mrb[4].mxu1 }
 0x12c   : > { %v974_v54 = vadd.f32 %v1898_v53, %v708_v34  ;;  %v2563_v55 = vpop.f32.mrb[5].mxu0  ;;  %v965_v57 = vpop.f32.mrb[5].mxu1 }
 0x12d   : > { %v966_v58 = vadd.f32 %v965_v57, %v698_v23  ;;  %v2565_v59 = vpop.f32.mrb[6].mxu0  ;;  %v1899_v22 = vpop.f32.mrb[6].mxu1 }
 0x12e   : > { %v1788_v60 = vmul.f32 -1.442695, %v974_v54  ;;  %v977_v63 = vadd.f32 %v1899_v22, %v713_v35  ;;  %v2567_v0 = vpop.f32.mrb[7].mxu0  ;;  %v968_v1 = vpop.f32.mrb[7].mxu1 }
 0x12f   : > { %v1786_v2 = vmul.f32 -1.442695, %v966_v58  ;;  %v969_v4 = vadd.f32 %v968_v1, %v703_v32 }
 0x130   : > { %2007 = vpow2.f32 %v1788_v60  ;;  %v1789_v8 = vmul.f32 -1.442695, %v977_v63 }
 0x131   : > { %2009 = vpow2.f32 %v1786_v2  ;;  %v1787_v9 = vmul.f32 -1.442695, %v969_v4 }
 0x132   : > { %v2000_v10 = vpop.eup %1999  ;;  %2011 = vpow2.f32 %v1789_v8 }
 0x133   : > { %v2002_v11 = vpop.eup %2001  ;;  %v1062_v13 = vadd.f32 1.0, %v2000_v10  ;;  %2013 = vpow2.f32 %v1787_v9  ;;  %v2571_v14 = vpop.f32.mrb[8].mxu0  ;;  %v894_v9 = vadd.f32 %v2553_v37, %v2529_v20  ;;  %v1124_v20 = vld [vmem:[%s2586_s16] sm:$0xff]  ;;  %v897_v37 = vadd.f32 %v2557_v41, %v2533_v61 }
 0x134   : > { %v1902_v17 = vpop.f32.mrb[8].mxu1  ;;  %v2004_v18 = vpop.eup %2003  ;;  %v1060_v30 = vadd.f32 1.0, %v2002_v11  ;;  %v910_v41 = vadd.f32 %v2561_v21, %v2539_v26 }
 0x135   : > { %v990_v31 = vadd.f32 %v1902_v17, %v728_v52  ;;  %v2573_v33 = vpop.f32.mrb[9].mxu0  ;;  %v981_v5 = vpop.f32.mrb[9].mxu1  ;;  %2015 = vrcp.f32 %v1062_v13  ;;  %v1063_v32 = vadd.f32 1.0, %v2004_v18 }
 0x136   : > { %v2006_v23 = vpop.eup %2005  ;;  %v982_v34 = vadd.f32 %v981_v5, %v718_v6  ;;  %v2575_v35 = vpop.f32.mrb[10].mxu0  ;;  %2017 = vrcp.f32 %v1060_v30  ;;  %v1126_v30 = vld [vmem:[%s2586_s16 + $0x10] sm:$0xff] }
 0x137   : > { %v1903_v38 = vpop.f32.mrb[10].mxu1  ;;  %v1061_v39 = vadd.f32 1.0, %v2006_v23  ;;  %v1792_v40 = vmul.f32 -1.442695, %v990_v31  ;;  %v2577_v12 = vpop.f32.mrb[11].mxu0  ;;  %2019 = vrcp.f32 %v1063_v32 }
 0x138   : > { %v984_v42 = vpop.f32.mrb[11].mxu1  ;;  %v1790_v43 = vmul.f32 -1.442695, %v982_v34  ;;  %v993_v15 = vadd.f32 %v1903_v38, %v733_v16  ;;  %v748_v6 = vpop.permute.xlu0 %747  ;;  %v889_v34 = vadd.f32 %v2559_v44, %v2531_v56 }
 0x139   : > { %2021 = vrcp.f32 %v1061_v39  ;;  %v985_v45 = vadd.f32 %v984_v42, %v2551_v36 }
 0x13a   : > { %2023 = vpow2.f32 %v1792_v40  ;;  %v1793_v48 = vmul.f32 -1.442695, %v993_v15  ;;  %v2008_v49 = vpop.eup %2007  ;;  %v1127_v40 = vld [vmem:[%s2586_s16 + $0x18] sm:$0xff] }
 0x13b   : > { %2025 = vpow2.f32 %v1790_v43  ;;  %v1791_v51 = vmul.f32 -1.442695, %v985_v45  ;;  %v2010_v52 = vpop.eup %2009  ;;  %v1066_v53 = vadd.f32 1.0, %v2008_v49  ;;  %v2580_v54 = vpop.f32.mrb[12].mxu0  ;;  %v1125_v45 = vld [vmem:[%s2586_s16 + $0x8] sm:$0xff] }
 0x13c   : > { %2027 = vpow2.f32 %v1793_v48  ;;  %v1906_v57 = vpop.f32.mrb[12].mxu1  ;;  %v2012_v58 = vpop.eup %2011  ;;  %v1064_v36 = vadd.f32 1.0, %v2010_v52 }
 0x13d   : > { %2029 = vpow2.f32 %v1791_v51  ;;  %v1006_v16 = vadd.f32 %v1906_v57, %v748_v6  ;;  %v2588_v22 = vpop.f32.mrb[13].mxu0  ;;  %v997_v60 = vpop.f32.mrb[13].mxu1  ;;  %v1067_v1 = vadd.f32 1.0, %v2012_v58  ;;  %v902_v6 = vadd.f32 %v2563_v55, %v2535_v24 }
 0x13e   : > { %v2014_v63 = vpop.eup %2013  ;;  %2031 = vrcp.f32 %v1066_v53  ;;  %v998_v2 = vadd.f32 %v997_v60, %v738_v46  ;;  %v2590_v4 = vpop.f32.mrb[14].mxu0  ;;  %v886_v46 = vadd.f32 %v2555_v7, %v2527_v19 }
 0x13f   : > { %v1907_v8 = vpop.f32.mrb[14].mxu1  ;;  %2033 = vrcp.f32 %v1064_v36  ;;  %v1065_v10 = vadd.f32 1.0, %v2014_v63  ;;  %v1796_v11 = vmul.f32 -1.442695, %v1006_v16  ;;  %v2594_v13 = vpop.f32.mrb[15].mxu0  ;;  %v1130_v63 = vld [vmem:[%s2586_s16 + $0x30] sm:$0xff] }
 0x140   : > { %v1000_v17 = vpop.f32.mrb[15].mxu1  ;;  %v2016_v18 = vpop.eup %2015  ;;  %2035 = vrcp.f32 %v1067_v1  ;;  %v1794_v31 = vmul.f32 -1.442695, %v998_v2  ;;  %v1009_v5 = vadd.f32 %v1907_v8, %v753_v50 }
 0x141   : > { %v2018_v23 = vpop.eup %2017  ;;  %v1110_v32 = vmul.f32 %v2016_v18, %v894_v9  ;;  %2037 = vrcp.f32 %v1065_v10  ;;  %v1001_v7 = vadd.f32 %v1000_v17, %v2569_v47  ;;  %v1128_v10 = vld [vmem:[%s2586_s16 + $0x20] sm:$0xff] }
 0x142   : > { %v2020_v38 = vpop.eup %2019  ;;  %v1108_v39 = vmul.f32 %v2018_v23, %v886_v46  ;;  %2039 = vpow2.f32 %v1796_v11  ;;  %v1797_v19 = vmul.f32 -1.442695, %v1009_v5  ;;  %v913_v11 = vadd.f32 %v2565_v59, %v2541_v27  ;;  %v1131_v46 = vld [vmem:[%s2586_s16 + $0x38] sm:$0xff]  ;;  %v1129_v27 = vld [vmem:[%s2586_s16 + $0x28] sm:$0xff] }
 0x143   : > { %v2022_v42 = vpop.eup %2021  ;;  %v2607_v43 = vadd.f32 %v1126_v30, %v1110_v32  ;;  %v1111_v15 = vmul.f32 %v2020_v38, %v897_v37  ;;  %2041 = vpow2.f32 %v1794_v31  ;;  %v1795_v21 = vmul.f32 -1.442695, %v1001_v7 }
 0x144   : > { %v2024_v48 = vpop.eup %2023  ;;  %v2615_v56 = vadd.f32 %v1124_v20, %v1108_v39  ;;  %v1109_v61 = vmul.f32 %v2022_v42, %v889_v34  ;;  %2043 = vpow2.f32 %v1797_v19  ;;  %v905_v31 = vadd.f32 %v2567_v0, %v2537_v25 }
 0x145   : > { %v2026_v44 = vpop.eup %2025  ;;  %v1822_v47 = vpack.c.bf16 %v2607_v43, %v2607_v43  ;;  %v2621_v49 = vadd.f32 %v1127_v40, %v1111_v15  ;;  %v1070_v50 = vadd.f32 1.0, %v2024_v48  ;;  %v1273_v18 = vsel %vm1269_vm0, %v2607_v43, 0.0 }
 0x146   : > { %v2028_v51 = vpop.eup %2027  ;;  %v1820_v52 = vpack.c.bf16 %v2615_v56, %v2615_v56  ;;  %v2627_v53 = vadd.f32 %v1125_v45, %v1109_v61  ;;  %v1068_v26 = vadd.f32 1.0, %v2026_v44  ;;  %v1270_v58 = vsel %vm1269_vm0, %v2615_v56, 0.0 }
 0x147   : > { %v2030_v57 = vpop.eup %2029  ;;  %1223 = vst.msk [vmem:[%s2613_s11 + $0x8] sm:$0xf] %vm1220_vm1, %v1822_v47  ;;  %v1823_v24 = vpack.c.bf16 %v2621_v49, %v2621_v49  ;;  %2045 = vrcp.f32 %v1070_v50  ;;  %v1071_v55 = vadd.f32 1.0, %v2028_v51  ;;  %v1275_v37 = vsel %vm1269_vm0, %v2621_v49, 0.0 }
 0x148   : > { %v2032_v36 = vpop.eup %2031  ;;  %1221 = vst.msk [vmem:[%s2613_s11] sm:$0xf] %vm1220_vm1, %v1820_v52  ;;  %v1821_v16 = vpack.c.bf16 %v2627_v53, %v2627_v53  ;;  %v1271_v60 = vsel %vm1269_vm0, %v2627_v53, 0.0  ;;  %2047 = vrcp.f32 %v1068_v26  ;;  %v1069_v1 = vadd.f32 1.0, %v2030_v57  ;;  %v1134_v26 = vld [vmem:[%s2586_s16 + $0x50] sm:$0xff] }
 0x149   : > { %v2034_v2 = vpop.eup %2033  ;;  %1224 = vst.msk [vmem:[%s2613_s11 + $0xc] sm:$0xf] %vm1220_vm1, %v1823_v24  ;;  %v1272_v8 = vadd.f32 %v1271_v60, %v1270_v58  ;;  %v1114_v9 = vmul.f32 %v2032_v36, %v910_v41  ;;  %2049 = vrcp.f32 %v1071_v55  ;;  %v926_v41 = vadd.f32 %v2571_v14, %v2547_v62  ;;  %v1132_v24 = vld [vmem:[%s2586_s16 + $0x40] sm:$0xff] }
 0x14a   : > { %v2036_v17 = vpop.eup %2035  ;;  %1222 = vst.msk [vmem:[%s2613_s11 + $0x4] sm:$0xf] %vm1220_vm1, %v1821_v16  ;;  %v1112_v30 = vmul.f32 %v2034_v2, %v902_v6  ;;  %2051 = vrcp.f32 %v1069_v1  ;;  %v918_v62 = vadd.f32 %v2573_v33, %v2543_v28  ;;  %v929_v55 = vadd.f32 %v2575_v35, %v2549_v3  ;;  %v663_v1 = vpop.permute.xlu1 %662 }
 0x14b   : > { %v2038_v5 = vpop.eup %2037  ;;  %v1274_v23 = vadd.f32 %v1273_v18, %v1272_v8  ;;  %v2654_v32 = vadd.f32 %v1130_v63, %v1114_v9  ;;  %v1115_v20 = vmul.f32 %v2036_v17, %v913_v11  ;;  %2053 = vpow2.f32 %v1795_v21  ;;  %v658_v21 = vpop.permute.xlu0 %657  ;;  %v1135_v63 = vld [vmem:[%s2586_s16 + $0x58] sm:$0xff] }
 0x14c   : > { %v2040_v59 = vpop.eup %2039  ;;  %v2659_v34 = vadd.f32 %v1128_v10, %v1112_v30  ;;  %v1113_v38 = vmul.f32 %v2038_v5, %v905_v31  ;;  %v921_v28 = vadd.f32 %v2577_v12, %v2545_v29  ;;  %v1133_v10 = vld [vmem:[%s2586_s16 + $0x48] sm:$0xff] }
 0x14d   : > { %v2042_v39 = vpop.eup %2041  ;;  %v1826_v25 = vpack.c.bf16 %v2654_v32, %v2654_v32  ;;  %v1276_v0 = vadd.f32 %v1275_v37, %v1274_v23  ;;  %v2663_v40 = vadd.f32 %v1131_v46, %v1115_v20  ;;  %v1074_v45 = vadd.f32 1.0, %v2040_v59 }
 0x14e   : > { %v2044_v19 = vpop.eup %2043  ;;  %v1824_v7 = vpack.c.bf16 %v2659_v34, %v2659_v34  ;;  %v1277_v42 = vsel %vm1269_vm0, %v2659_v34, 0.0  ;;  %v2669_v15 = vadd.f32 %v1129_v27, %v1113_v38  ;;  %v1072_v44 = vadd.f32 1.0, %v2042_v39  ;;  %v673_v39 = vpop.permute.xlu1 %672 }
 0x14f   : > { %1227 = vst.msk [vmem:[%s2613_s11 + $0x18] sm:$0xf] %vm1220_vm1, %v1826_v25  ;;  %v1278_v48 = vadd.f32 %v1277_v42, %v1276_v0  ;;  %v1827_v61 = vpack.c.bf16 %v2663_v40, %v2663_v40  ;;  %2055 = vrcp.f32 %v1074_v45  ;;  %v1075_v50 = vadd.f32 1.0, %v2044_v19  ;;  %v668_v5 = vpop.permute.xlu0 %667  ;;  %v1138_v0 = vld [vmem:[%s2586_s16 + $0x70] sm:$0xff] }
 0x150   : > { %1225 = vst.msk [vmem:[%s2613_s11 + $0x10] sm:$0xf] %vm1220_vm1, %v1824_v7  ;;  %v1825_v47 = vpack.c.bf16 %v2669_v15, %v2669_v15  ;;  %v1279_v6 = vsel %vm1269_vm0, %v2669_v15, 0.0  ;;  %2057 = vrcp.f32 %v1072_v44  ;;  %v1281_v57 = vsel %vm1269_vm0, %v2654_v32, 0.0 }
 0x151   : > { %v2046_v51 = vpop.eup %2045  ;;  %1228 = vst.msk [vmem:[%s2613_s11 + $0x1c] sm:$0xf] %vm1220_vm1, %v1827_v61  ;;  %v1280_v52 = vadd.f32 %v1279_v6, %v1278_v48  ;;  %2059 = vrcp.f32 %v1075_v50  ;;  %v1283_v2 = vsel %vm1269_vm0, %v2663_v40, 0.0  ;;  %v942_v37 = vadd.f32 %v2580_v54, %v668_v5  ;;  %v1136_v48 = vld [vmem:[%s2586_s16 + $0x60] sm:$0xff] }
 0x152   : > { %v2048_v14 = vpop.eup %2047  ;;  %1226 = vst.msk [vmem:[%s2613_s11 + $0x14] sm:$0xf] %vm1220_vm1, %v1825_v47  ;;  %v1118_v58 = vmul.f32 %v2046_v51, %v926_v41  ;;  %v934_v19 = vadd.f32 %v2588_v22, %v658_v21  ;;  %v945_v54 = vadd.f32 %v2590_v4, %v673_v39  ;;  %v1139_v47 = vld [vmem:[%s2586_s16 + $0x78] sm:$0xff] }
 0x153   : > { %v2050_v36 = vpop.eup %2049  ;;  %v1282_v16 = vadd.f32 %v1281_v57, %v1280_v52  ;;  %v1116_v60 = vmul.f32 %v2048_v14, %v918_v62 }
 0x154   : > { %v2052_v33 = vpop.eup %2051  ;;  %v2700_v8 = vadd.f32 %v1134_v26, %v1118_v58  ;;  %v1119_v9 = vmul.f32 %v2050_v36, %v929_v55  ;;  %v937_v58 = vadd.f32 %v2594_v13, %v663_v1  ;;  %v1137_v55 = vld [vmem:[%s2586_s16 + $0x68] sm:$0xff]  ;;  %v2753_v1 = vpop.permute.xlu0 %1399 }
 0x155   : > { %v2054_v3 = vpop.eup %2053  ;;  %v2703_v35 = vadd.f32 %v1132_v24, %v1116_v60  ;;  %v1284_v11 = vadd.f32 %v1283_v2, %v1282_v16  ;;  %v1117_v17 = vmul.f32 %v2052_v33, %v921_v28 }
 0x156   : > { %v1830_v18 = vpack.c.bf16 %v2700_v8, %v2700_v8  ;;  %v2707_v29 = vadd.f32 %v1135_v63, %v1119_v9  ;;  %v1073_v12 = vadd.f32 1.0, %v2054_v3  ;;  %v1289_v42 = vsel %vm1269_vm0, %v2700_v8, 0.0 }
 0x157   : > { %v1828_v30 = vpack.c.bf16 %v2703_v35, %v2703_v35  ;;  %v1285_v46 = vsel %vm1269_vm0, %v2703_v35, 0.0  ;;  %v2713_v31 = vadd.f32 %v1133_v10, %v1117_v17  ;;  %v2755_v10 = vpop.permute.xlu1 %1404 }
 0x158   : > { %1231 = vst.msk [vmem:[%s2613_s11 + $0x28] sm:$0xf] %vm1220_vm1, %v1830_v18  ;;  %v1286_v23 = vadd.f32 %v1285_v46, %v1284_v11  ;;  %v1831_v20 = vpack.c.bf16 %v2707_v29, %v2707_v29  ;;  %2061 = vrcp.f32 %v1073_v12  ;;  %v1291_v22 = vsel %vm1269_vm0, %v2707_v29, 0.0  ;;  %v2757_v18 = vpop.permute.xlu0 %1409 }
 0x159   : > { %1229 = vst.msk [vmem:[%s2613_s11 + $0x20] sm:$0xf] %vm1220_vm1, %v1828_v30  ;;  %v1829_v27 = vpack.c.bf16 %v2713_v31, %v2713_v31  ;;  %v1287_v59 = vsel %vm1269_vm0, %v2713_v31, 0.0  ;;  %v2056_v38 = vpop.eup %2055 }
 0x15a   : > { %1232 = vst.msk [vmem:[%s2613_s11 + $0x2c] sm:$0xf] %vm1220_vm1, %v1831_v20  ;;  %v1288_v25 = vadd.f32 %v1287_v59, %v1286_v23  ;;  %v2058_v7 = vpop.eup %2057  ;;  %v1122_v45 = vmul.f32 %v2056_v38, %v942_v37 }
 0x15b   : > { %1230 = vst.msk [vmem:[%s2613_s11 + $0x24] sm:$0xf] %vm1220_vm1, %v1829_v27  ;;  %v2060_v61 = vpop.eup %2059  ;;  %v1120_v44 = vmul.f32 %v2058_v7, %v934_v19  ;;  %v2759_v12 = vpop.permute.xlu1 %1414 }
 0x15c   : > { %v1290_v41 = vadd.f32 %v1289_v42, %v1288_v25  ;;  %v1154_v6 = vadd.f32 %v1138_v0, %v1122_v45  ;;  %v1123_v50 = vmul.f32 %v2060_v61, %v945_v54  ;;  %v2761_v23 = vpop.permute.xlu0 %1419 }
 0x15d   : > { %v1152_v51 = vadd.f32 %v1136_v48, %v1120_v44 }
 0x15e   : > { %v1292_v52 = vadd.f32 %v1291_v22, %v1290_v41  ;;  %v1834_v26 = vpack.c.bf16 %v1154_v6, %v1154_v6  ;;  %v1155_v62 = vadd.f32 %v1139_v47, %v1123_v50  ;;  %v1297_v33 = vsel %vm1269_vm0, %v1154_v6, 0.0 }
 0x15f   : > { %v1832_v14 = vpack.c.bf16 %v1152_v51, %v1152_v51  ;;  %v1293_v4 = vsel %vm1269_vm0, %v1152_v51, 0.0  ;;  %v2763_v20 = vpop.permute.xlu1 %1424 }
 0x160   : > { %1235 = vst.msk [vmem:[%s2613_s11 + $0x38] sm:$0xf] %vm1220_vm1, %v1834_v26  ;;  %v1294_v21 = vadd.f32 %v1293_v4, %v1292_v52  ;;  %v1835_v57 = vpack.c.bf16 %v1155_v62, %v1155_v62  ;;  %v1299_v9 = vsel %vm1269_vm0, %v1155_v62, 0.0  ;;  %v2809_v42 = vpop.permute.xlu0 %1429 }
 0x161   : > { %1233 = vst.msk [vmem:[%s2613_s11 + $0x30] sm:$0xf] %vm1220_vm1, %v1832_v14 }
 0x162   : > { %v2062_v24 = vpop.eup %2061  ;;  %1236 = vst.msk [vmem:[%s2613_s11 + $0x3c] sm:$0xf] %vm1220_vm1, %v1835_v57 }
 0x163   : > { %v1121_v36 = vmul.f32 %v2062_v24, %v937_v58 }
 0x164   : > { %v2823_v41 = vpop.permute.xlu0 %1439 }
 0x165   : > { %v1153_v16 = vadd.f32 %v1137_v55, %v1121_v36 }
 0x167   : > { %v1833_v60 = vpack.c.bf16 %v1153_v16, %v1153_v16  ;;  %v1295_v63 = vsel %vm1269_vm0, %v1153_v16, 0.0 }
 0x168   : > { %v1296_v28 = vadd.f32 %v1295_v63, %v1294_v21  ;;  %v2836_v4 = vpop.permute.xlu0 %1449 }
 0x169   : > { %1234 = vst.msk [vmem:[%s2613_s11 + $0x34] sm:$0xf] %vm1220_vm1, %v1833_v60 }
 0x16a   : > { %v1298_v2 = vadd.f32 %v1297_v33, %v1296_v28 }
 0x16c   : > { %v1300_v13 = vadd.f32 %v1299_v9, %v1298_v2  ;;  %v2849_v33 = vpop.permute.xlu0 %1459 }
 0x16e   : > { %v1301_v3 = vrot.slane %v1300_v13, 4 }
 0x170   : > { %v1302_v11 = vadd.f32 %v1301_v3, %v1300_v13 }
 0x172   : > { %v1303_v17 = vrot.slane %v1302_v11, 2 }
 0x174   : > { %v1304_v30 = vadd.f32 %v1303_v17, %v1302_v11 }
 0x176   : > { %v1305_v46 = vrot.slane %v1304_v30, 1 }
 0x178   : > { %v1306_v5 = vadd.f32 %v1305_v46, %v1304_v30 }
 0x17a   : > { %v1308_v27 = vmul.f32 0.0078125, %v1306_v5 }
 0x17c   : > { %v2766_v59 = vsub.f32 %v2615_v56, %v1308_v27  ;;  %v2769_v37 = vsub.f32 %v2627_v53, %v1308_v27  ;;  %v2772_v38 = vsub.f32 %v2607_v43, %v1308_v27  ;;  %v2775_v39 = vsub.f32 %v2621_v49, %v1308_v27 }
 0x17d   : > { %v2778_v25 = vsub.f32 %v2659_v34, %v1308_v27  ;;  %v2781_v0 = vsub.f32 %v2669_v15, %v1308_v27  ;;  %v2784_v19 = vsub.f32 %v2654_v32, %v1308_v27  ;;  %v2787_v56 = vsub.f32 %v2663_v40, %v1308_v27 }
 0x17e   : > { %v2790_v53 = vsub.f32 %v2703_v35, %v1308_v27  ;;  %v2793_v43 = vsub.f32 %v2713_v31, %v1308_v27  ;;  %v2796_v49 = vsub.f32 %v2700_v8, %v1308_v27  ;;  %v2799_v34 = vsub.f32 %v2707_v29, %v1308_v27  ;;  %v2811_v35 = vpop.permute.xlu1 %1434 }
 0x17f   : > { %v2801_v15 = vsub.f32 %v1152_v51, %v1308_v27  ;;  %v2803_v7 = vsub.f32 %v1153_v16, %v1308_v27  ;;  %v2805_v32 = vsub.f32 %v1154_v6, %v1308_v27  ;;  %v2807_v40 = vsub.f32 %v1155_v62, %v1308_v27 }
 0x180   : > { %v1325_v31 = vmul.f32 %v2766_v59, %v2766_v59  ;;  %v1326_v8 = vmul.f32 %v2769_v37, %v2769_v37  ;;  %v1327_v29 = vmul.f32 %v2772_v38, %v2772_v38  ;;  %v1328_v45 = vmul.f32 %v2775_v39, %v2775_v39 }
 0x181   : > { %v1329_v47 = vmul.f32 %v2778_v25, %v2778_v25  ;;  %v1330_v50 = vmul.f32 %v2781_v0, %v2781_v0  ;;  %v1331_v26 = vmul.f32 %v2784_v19, %v2784_v19  ;;  %v1332_v57 = vmul.f32 %v2787_v56, %v2787_v56 }
 0x182   : > { %v1341_v48 = vsel %vm1269_vm0, %v1325_v31, 0.0  ;;  %v1342_v54 = vsel %vm1269_vm0, %v1326_v8, 0.0  ;;  %v2825_v44 = vpop.permute.xlu1 %1444  ;;  %v1344_v22 = vsel %vm1269_vm0, %v1327_v29, 0.0  ;;  %v1346_v51 = vsel %vm1269_vm0, %v1328_v45, 0.0  ;;  %v2862_v31 = vpop.permute.xlu0 %1469 }
 0x183   : > { %v1343_v61 = vadd.f32 %v1342_v54, %v1341_v48  ;;  %v1348_v62 = vsel %vm1269_vm0, %v1329_v47, 0.0  ;;  %v1350_v58 = vsel %vm1269_vm0, %v1330_v50, 0.0  ;;  %v1333_v55 = vmul.f32 %v2790_v53, %v2790_v53 }
 0x184   : > { %v1352_v36 = vsel %vm1269_vm0, %v1331_v26, 0.0  ;;  %v1334_v60 = vmul.f32 %v2793_v43, %v2793_v43  ;;  %v1354_v63 = vsel %vm1269_vm0, %v1332_v57, 0.0  ;;  %v1335_v9 = vmul.f32 %v2796_v49, %v2796_v49 }
 0x185   : > { %v1345_v6 = vadd.f32 %v1344_v22, %v1343_v61  ;;  %v1356_v13 = vsel %vm1269_vm0, %v1333_v55, 0.0  ;;  %v1336_v11 = vmul.f32 %v2799_v34, %v2799_v34  ;;  %v1337_v46 = vmul.f32 %v2801_v15, %v2801_v15 }
 0x186   : > { %v2838_v21 = vpop.permute.xlu1 %1454  ;;  %v1358_v17 = vsel %vm1269_vm0, %v1334_v60, 0.0  ;;  %v1360_v5 = vsel %vm1269_vm0, %v1335_v9, 0.0  ;;  %v1338_v29 = vmul.f32 %v2803_v7, %v2803_v7  ;;  %v1339_v54 = vmul.f32 %v2805_v32, %v2805_v32 }
 0x187   : > { %v1347_v52 = vadd.f32 %v1346_v51, %v1345_v6  ;;  %v1362_v45 = vsel %vm1269_vm0, %v1336_v11, 0.0  ;;  %v1364_v61 = vsel %vm1269_vm0, %v1337_v46, 0.0  ;;  %v1340_v22 = vmul.f32 %v2807_v40, %v2807_v40  ;;  %v1496_v51 = vpop.permute.xlu0 %1495 }
 0x188   : > { %v1366_v6 = vsel %vm1269_vm0, %v1338_v29, 0.0  ;;  %v1368_v26 = vsel %vm1269_vm0, %v1339_v54, 0.0 }
 0x189   : > { %v1349_v14 = vadd.f32 %v1348_v62, %v1347_v52 }
 0x18a   : > { %v2851_v2 = vpop.permute.xlu1 %1464 }
 0x18b   : > { %v1351_v24 = vadd.f32 %v1350_v58, %v1349_v14  ;;  %v1370_v14 = vsel %vm1269_vm0, %v1340_v22, 0.0 }
 0x18d   : > { %v1353_v16 = vadd.f32 %v1352_v36, %v1351_v24  ;;  %v1506_v24 = vpop.permute.xlu0 %1505 }
 0x18e   : > { %v2864_v8 = vpop.permute.xlu1 %1474 }
 0x18f   : > { %v1355_v28 = vadd.f32 %v1354_v63, %v1353_v16 }
 0x191   : > { %v1357_v3 = vadd.f32 %v1356_v13, %v1355_v28  ;;  %v1516_v63 = vpop.permute.xlu0 %1515 }
 0x192   : > { %v1501_v52 = vpop.permute.xlu1 %1500 }
 0x193   : > { %v1359_v30 = vadd.f32 %v1358_v17, %v1357_v3 }
 0x195   : > { %v1361_v27 = vadd.f32 %v1360_v5, %v1359_v30  ;;  %v1526_v11 = vpop.permute.xlu0 %1525 }
 0x196   : > { %v1511_v55 = vpop.permute.xlu1 %1510 }
 0x197   : > { %v1363_v48 = vadd.f32 %v1362_v45, %v1361_v27 }
 0x199   : > { %v1365_v47 = vadd.f32 %v1364_v61, %v1363_v48  ;;  %v1536_v46 = vpop.permute.xlu0 %1535 }
 0x19a   : > { %v1521_v28 = vpop.permute.xlu1 %1520 }
 0x19b   : > { %v1367_v50 = vadd.f32 %v1366_v6, %v1365_v47 }
 0x19d   : > { %v1369_v62 = vadd.f32 %v1368_v26, %v1367_v50  ;;  %v1546_v27 = vpop.permute.xlu0 %1545 }
 0x19e   : > { %v1531_v17 = vpop.permute.xlu1 %1530 }
 0x19f   : > { %v1371_v57 = vadd.f32 %v1370_v14, %v1369_v62 }
 0x1a1   : > { %v1372_v58 = vrot.slane %v1371_v57, 4 }
 0x1a2   : > { %v1541_v5 = vpop.permute.xlu1 %1540 }
 0x1a3   : > { %v1373_v36 = vadd.f32 %v1372_v58, %v1371_v57 }
 0x1a5   : > { %v1374_v16 = vrot.slane %v1373_v36, 2 }
 0x1a6   : > { %v1551_v29 = vpop.permute.xlu1 %1550 }
 0x1a7   : > { %v1375_v60 = vadd.f32 %v1374_v16, %v1373_v36 }
 0x1a9   : > { %v1376_v9 = vrot.slane %v1375_v60, 1 }
 0x1aa   : > { %v1561_v57 = vpop.permute.xlu1 %1560 }
 0x1ab   : > { %v1377_v13 = vadd.f32 %v1376_v9, %v1375_v60 }
 0x1ad   : > { %v1378_v3 = vmul.f32 0.0078125, %v1377_v13 }
 0x1af   : > { %v1379_v30 = vadd.f32 1e-05, %v1378_v3 }
 0x1b1   : > { %2063 = vrsqrt.f32 %v1379_v30 }
 0x1bb   : > { %v2064_v45 = vpop.eup %2063 }
 0x1bc   : > { %v1381_v48 = vmul.f32 %v2064_v45, %v2766_v59  ;;  %v1382_v54 = vmul.f32 %v2064_v45, %v2769_v37  ;;  %v1383_v61 = vmul.f32 %v2064_v45, %v2772_v38  ;;  %v1384_v47 = vmul.f32 %v2064_v45, %v2775_v39 }
 0x1bd   : > { %v1385_v22 = vmul.f32 %v2064_v45, %v2778_v25  ;;  %v1386_v6 = vmul.f32 %v2064_v45, %v2781_v0  ;;  %v1387_v50 = vmul.f32 %v2064_v45, %v2784_v19  ;;  %v1388_v26 = vmul.f32 %v2064_v45, %v2787_v56  ;;  %v1556_v19 = vpop.permute.xlu0 %1555 }
 0x1be   : > { %v1389_v62 = vmul.f32 %v2064_v45, %v2790_v53  ;;  %v1390_v14 = vmul.f32 %v2064_v45, %v2793_v43  ;;  %v1391_v59 = vmul.f32 %v2064_v45, %v2796_v49  ;;  %v1392_v37 = vmul.f32 %v2064_v45, %v2799_v34 }
 0x1bf   : > { %v1393_v38 = vmul.f32 %v2064_v45, %v2801_v15  ;;  %v1394_v39 = vmul.f32 %v2064_v45, %v2803_v7  ;;  %v1395_v25 = vmul.f32 %v2064_v45, %v2805_v32  ;;  %v1396_v0 = vmul.f32 %v2064_v45, %v2807_v40 }
 0x1c0   : > { %v1477_v56 = vmul.f32 %v2753_v1, %v1381_v48  ;;  %v1478_v53 = vmul.f32 %v2755_v10, %v1382_v54  ;;  %v1479_v43 = vmul.f32 %v2757_v18, %v1383_v61  ;;  %v1480_v49 = vmul.f32 %v2759_v12, %v1384_v47 }
 0x1c1   : > { %v1481_v34 = vmul.f32 %v2761_v23, %v1385_v22  ;;  %v1482_v15 = vmul.f32 %v2763_v20, %v1386_v6  ;;  %v1483_v7 = vmul.f32 %v2809_v42, %v1387_v50  ;;  %v1484_v32 = vmul.f32 %v2811_v35, %v1388_v26 }
 0x1c2   : > { %v1485_v40 = vmul.f32 %v2823_v41, %v1389_v62  ;;  %v1486_v58 = vmul.f32 %v2825_v44, %v1390_v14  ;;  %v1487_v1 = vmul.f32 %v2836_v4, %v1391_v59  ;;  %v1488_v10 = vmul.f32 %v2838_v21, %v1392_v37 }
 0x1c3   : > { %v1489_v18 = vmul.f32 %v2849_v33, %v1393_v38  ;;  %v1490_v12 = vmul.f32 %v2851_v2, %v1394_v39  ;;  %v1491_v23 = vmul.f32 %v2862_v31, %v1395_v25  ;;  %v1492_v20 = vmul.f32 %v2864_v8, %v1396_v0  ;;  %v1566_v33 = vpop.permute.xlu0 %1565  ;;  %v1571_v2 = vpop.permute.xlu1 %1570 }
 0x1c4   : > { %v1573_v42 = vadd.f32 %v1496_v51, %v1477_v56  ;;  %v1574_v35 = vadd.f32 %v1501_v52, %v1478_v53  ;;  %v1575_v41 = vadd.f32 %v1506_v24, %v1479_v43  ;;  %v1576_v44 = vadd.f32 %v1511_v55, %v1480_v49 }
 0x1c5   : > { %v1577_v4 = vadd.f32 %v1516_v63, %v1481_v34  ;;  %v1578_v21 = vadd.f32 %v1521_v28, %v1482_v15  ;;  %v1579_v36 = vadd.f32 %v1526_v11, %v1483_v7  ;;  %v1580_v16 = vadd.f32 %v1531_v17, %v1484_v32 }
 0x1c6   : > { %v1581_v31 = vadd.f32 %v1536_v46, %v1485_v40  ;;  %v1582_v8 = vadd.f32 %v1541_v5, %v1486_v58  ;;  %v1583_v51 = vadd.f32 %v1546_v27, %v1487_v1  ;;  %v1584_v52 = vadd.f32 %v1551_v29, %v1488_v10  ;;  %1589 = vst.msk [vmem:[%s2909_s15] sm:$0xff] %vm1269_vm0, %v1573_v42 }
 0x1c7   : > { %1590 = vst.msk [vmem:[%s2909_s15 + $0x8] sm:$0xff] %vm1269_vm0, %v1574_v35  ;;  %1591 = vst.msk [vmem:[%s2909_s15 + $0x10] sm:$0xff] %vm1269_vm0, %v1575_v41  ;;  %v1585_v24 = vadd.f32 %v1556_v19, %v1489_v18  ;;  %v1586_v55 = vadd.f32 %v1561_v57, %v1490_v12  ;;  %v1587_v60 = vadd.f32 %v1566_v33, %v1491_v23 }
 0x1c8   : > { %1592 = vst.msk [vmem:[%s2909_s15 + $0x18] sm:$0xff] %vm1269_vm0, %v1576_v44  ;;  %v1588_v63 = vadd.f32 %v1571_v2, %v1492_v20  ;;  %1593 = vst.msk [vmem:[%s2909_s15 + $0x20] sm:$0xff] %vm1269_vm0, %v1577_v4 }
 0x1c9   : > { %1594 = vst.msk [vmem:[%s2909_s15 + $0x28] sm:$0xff] %vm1269_vm0, %v1578_v21  ;;  %1595 = vst.msk [vmem:[%s2909_s15 + $0x30] sm:$0xff] %vm1269_vm0, %v1579_v36 }
 0x1ca   : > { %1596 = vst.msk [vmem:[%s2909_s15 + $0x38] sm:$0xff] %vm1269_vm0, %v1580_v16  ;;  %1597 = vst.msk [vmem:[%s2909_s15 + $0x40] sm:$0xff] %vm1269_vm0, %v1581_v31 }
 0x1cb   : > { %1598 = vst.msk [vmem:[%s2909_s15 + $0x48] sm:$0xff] %vm1269_vm0, %v1582_v8  ;;  %1599 = vst.msk [vmem:[%s2909_s15 + $0x50] sm:$0xff] %vm1269_vm0, %v1583_v51 }
 0x1cc   : > { %1600 = vst.msk [vmem:[%s2909_s15 + $0x58] sm:$0xff] %vm1269_vm0, %v1584_v52  ;;  %1601 = vst.msk [vmem:[%s2909_s15 + $0x60] sm:$0xff] %vm1269_vm0, %v1585_v24 }
 0x1cd   : > { %1602 = vst.msk [vmem:[%s2909_s15 + $0x68] sm:$0xff] %vm1269_vm0, %v1586_v55  ;;  %1603 = vst.msk [vmem:[%s2909_s15 + $0x70] sm:$0xff] %vm1269_vm0, %v1587_v60 }
 0x1ce   : > { %1604 = vst.msk [vmem:[%s2909_s15 + $0x78] sm:$0xff] %vm1269_vm0, %v1588_v63 }
 0x1cf PF: > { %s18_s26 = sadd.s32 1, %s2087_s26   ;;  %s2964_s24 = smov %s2083_s25 }
 0x1d0   : > { %p15_p5 = scmp.ge.s32.totalorder %s18_s26, 4   ;;  %s2965_s25 = smov %s2967_s27 }
 0x1d2   :  { %17 = sbr.rel (!%p15_p5) target bundleno = 2 (0x2), region = 89 }

// kernel: s4net_forward.6
= control target key start
LH: loop header
LB: loop body
LE: loop exit
PB: predicated region body
PF: predicated region fallthrough
CT: control target
= control target key end

     0   :  { %s2185_s24 = smov 0   ;;  %s2187_s25 = smov 0   ;;  %s3055_s0 = inlined_call_operand.vmem [shape: bf16[2,128,16], index: 0, kind: input, shape index: {}, may-alias: {0,6}]   ;;  %s3056_s1 = inlined_call_operand.vmem [shape: f32[2,128,16], index: 1, kind: input, shape index: {}]   ;;  %s3057_s2 = inlined_call_operand.vmem [shape: bf16[256,128], index: 2, kind: input, shape index: {}]   ;;  %s3058_s3 = inlined_call_operand.vmem [shape: f32[256,1], index: 3, kind: input, shape index: {}]   ;;  %s3059_s4 = inlined_call_operand.vmem [shape: f32[128,1], index: 4, kind: input, shape index: {}]   ;;  %s3060_s5 = inlined_call_operand.vmem [shape: f32[128,1], index: 5, kind: input, shape index: {}]   ;;  %s3061_s6 = inlined_call_operand.vmem [shape: bf16[2,128,16], index: 6, kind: output, shape index: {0}, may-alias: {0,6}]   ;;  %s3062_s7 = inlined_call_operand.vmem [shape: f32[2,128,16], index: 7, kind: output, shape index: {1}]  }
   0x1   :  { %s2189_s26 = smov 0  }
   0x2 LB: > { %s30_s27 = sadd.s32 1, %s2138_s25  ;;  %p1773_p0 = scmp.ge.s32.totalorder %s2142_s26, 1  ;;  %s2142_s26 = sphi %s2189_s26, %s18_s26   ;;  %s2138_s25 = sphi %s2187_s25, %s3064_s25   ;;  %s2134_s24 = sphi %s2185_s24, %s3063_s24  }
   0x3   : > { %p32_p1 = scmp.ge.s32.totalorder %s30_s27, 2  ;;  %p276_p2 = scmp.lt.s32.totalorder %s2142_s26, 3 }
   0x5   : > { %s3066_s27 = smov (%p32_p1, %s30_s27), 0  ;;  %p277_p3 = pnand %p1773_p0, %p276_p2 }
   0x6   : > { %v563_v0 = vld [vmem:[%s3058_s3] sm:$0xff] (!%p277_p3)  ;;  %v565_v1 = vld [vmem:[%s3058_s3 + $0x10] sm:$0xff] (!%p277_p3)  ;;  %p330_p4 = scmp.lt.s32.totalorder (!%p277_p3), %s2134_s24, 1  ;;  %v2144_v2 = vmov (!%p277_p3), 0   ;;  %v564_v3 = vld [vmem:[%s3058_s3 + $0x8] sm:$0xff] (!%p277_p3)  ;;  %vm1236_vm0 = vcmask (!%p277_p3), 125952  }
   0x7   : > { %280 = sbr.rel (%p277_p3) target bundleno = 463 (0x1cf), region = 44  ;;  %2004 = vset.pattern.permute.xlu0 (!%p277_p3), %v2144_v2  ;;  %2005 = vset.pattern.permute.xlu1 (!%p277_p3), %v2144_v2  ;;  %v566_v4 = vld [vmem:[%s3058_s3 + $0x18] sm:$0xff] (!%p277_p3)  ;;  %v567_v7 = vld [vmem:[%s3058_s3 + $0x20] sm:$0xff] (!%p277_p3)  ;;  %v568_v8 = vld [vmem:[%s3058_s3 + $0x28] sm:$0xff] (!%p277_p3)  ;;  %vm1285_vm1 = vcmask (!%p277_p3), 130048  }
   0x8   : > { %597 = vperm.xlu0 (!%p277_p3), %2004, %v563_v0   ;;  %607 = vperm.xlu1 (!%p277_p3), %2005, %v565_v1   ;;  %v569_v15 = vld [vmem:[%s3058_s3 + $0x30] sm:$0xff] (!%p277_p3)  ;;  %v570_v19 = vld [vmem:[%s3058_s3 + $0x38] sm:$0xff] (!%p277_p3)  ;;  %v571_v29 = vld [vmem:[%s3058_s3 + $0x40] sm:$0xff] (!%p277_p3) }
   0x9   : > { %v572_v34 = vld [vmem:[%s3058_s3 + $0x48] sm:$0xff] (!%p277_p3)  ;;  %v573_v53 = vld [vmem:[%s3058_s3 + $0x50] sm:$0xff] (!%p277_p3)  ;;  %v574_v57 = vld [vmem:[%s3058_s3 + $0x58] sm:$0xff] (!%p277_p3) }
   0xc   : > { %602 = vperm.xlu0 (!%p277_p3), %2004, %v564_v3   ;;  %612 = vperm.xlu1 (!%p277_p3), %2005, %v566_v4   ;;  %v579_v4 = vld [vmem:[%s3058_s3 + $0x80] sm:$0xff] (!%p277_p3) }
   0xe   : > { %s3068_s24 = smov (!%p330_p4, %s2134_s24), 1 }
   0xf   : > { %s1833_s13 = sshll.u32 %s3068_s24, 7  ;;  %s1832_s29 = sshll.u32 %s3068_s24, 6 }
  0x10   : > { %s2223_s16 = scalar_lea.vmem %s3056_s1, %s1833_s13  ;;  %617 = vperm.xlu0 %2004, %v567_v7   ;;  %622 = vperm.xlu1 %2005, %v568_v8   ;;  %v580_v7 = vld [vmem:[%s3058_s3 + $0x88] sm:$0xff]  ;;  %s2629_s9 = scalar_lea.vmem %s3055_s0, %s1832_s29 }
  0x11   : > { %v2226_v5 = vld [vmem:[%s2223_s16] sm:$0xff]  ;;  %v2229_v6 = vld [vmem:[%s2223_s16 + $0x8] sm:$0xff]  ;;  %v2244_v13 = vld [vmem:[%s2223_s16 + $0x10] sm:$0xff]  ;;  %s2692_s12 = scalar_lea.vmem %s3061_s6, %s1832_s29  ;;  %s3008_s17 = scalar_lea.vmem %s3062_s7, %s1833_s13 }
  0x12   : > { %v379_v9 = vmul.f32 %v2226_v5, %v2226_v5  ;;  %v380_v10 = vmul.f32 %v2229_v6, %v2229_v6  ;;  %v2247_v14 = vld [vmem:[%s2223_s16 + $0x18] sm:$0xff]  ;;  %v381_v16 = vmul.f32 %v2244_v13, %v2244_v13  ;;  %v2257_v18 = vld [vmem:[%s2223_s16 + $0x20] sm:$0xff]  ;;  %v2263_v22 = vld [vmem:[%s2223_s16 + $0x28] sm:$0xff] }
  0x13   : > { %v382_v17 = vmul.f32 %v2247_v14, %v2247_v14  ;;  %v383_v23 = vmul.f32 %v2257_v18, %v2257_v18  ;;  %v384_v26 = vmul.f32 %v2263_v22, %v2263_v22  ;;  %v2272_v27 = vld [vmem:[%s2223_s16 + $0x30] sm:$0xff]  ;;  %v2275_v28 = vld [vmem:[%s2223_s16 + $0x38] sm:$0xff]  ;;  %v2292_v39 = vld [vmem:[%s2223_s16 + $0x40] sm:$0xff] }
  0x14   : > { %v395_v11 = vmul.f32 %v379_v9, %v2226_v5  ;;  %v396_v12 = vmul.f32 %v380_v10, %v2229_v6  ;;  %v397_v24 = vmul.f32 %v381_v16, %v2244_v13  ;;  %v385_v33 = vmul.f32 %v2272_v27, %v2272_v27  ;;  %627 = vperm.xlu0 %2004, %v569_v15   ;;  %v2299_v48 = vld [vmem:[%s2223_s16 + $0x48] sm:$0xff]  ;;  %v2305_v52 = vld [vmem:[%s2223_s16 + $0x50] sm:$0xff]  ;;  %v2318_v62 = vld [vmem:[%s2223_s16 + $0x58] sm:$0xff] }
  0x15   : > { %v398_v25 = vmul.f32 %v382_v17, %v2247_v14  ;;  %v399_v32 = vmul.f32 %v383_v23, %v2257_v18  ;;  %632 = vperm.xlu1 %2005, %v570_v19   ;;  %v400_v37 = vmul.f32 %v384_v26, %v2263_v22  ;;  %v386_v38 = vmul.f32 %v2275_v28, %v2275_v28  ;;  %v2324_v2 = vld [vmem:[%s2223_s16 + $0x60] sm:$0xff]  ;;  %v2327_v3 = vld [vmem:[%s2223_s16 + $0x68] sm:$0xff]  ;;  %v2344_v17 = vld [vmem:[%s2223_s16 + $0x78] sm:$0xff] }
  0x16   : > { %v411_v20 = vmul.f32 0.044715, %v395_v11  ;;  %v412_v21 = vmul.f32 0.044715, %v396_v12  ;;  %v413_v35 = vmul.f32 0.044715, %v397_v24  ;;  %v401_v43 = vmul.f32 %v385_v33, %v2272_v27 }
  0x17   : > { %v414_v36 = vmul.f32 0.044715, %v398_v25  ;;  %v415_v42 = vmul.f32 0.044715, %v399_v32  ;;  %v416_v46 = vmul.f32 0.044715, %v400_v37  ;;  %v402_v47 = vmul.f32 %v386_v38, %v2275_v28 }
  0x18   : > { %v427_v30 = vadd.f32 %v411_v20, %v2226_v5  ;;  %v428_v31 = vadd.f32 %v412_v21, %v2229_v6  ;;  %v429_v44 = vadd.f32 %v413_v35, %v2244_v13  ;;  %v417_v50 = vmul.f32 0.044715, %v401_v43  ;;  %637 = vperm.xlu0 %2004, %v571_v29   ;;  %v2338_v11 = vld [vmem:[%s2223_s16 + $0x70] sm:$0xff]  ;;  %v2006_v19 = vld [vmem:[%s3057_s2] sm:$0xff]  }
  0x19   : > { %v430_v45 = vadd.f32 %v414_v36, %v2247_v14  ;;  %v431_v49 = vadd.f32 %v415_v42, %v2257_v18  ;;  %v387_v51 = vmul.f32 %v2292_v39, %v2292_v39  ;;  %642 = vperm.xlu1 %2005, %v572_v34   ;;  %v432_v56 = vadd.f32 %v416_v46, %v2263_v22  ;;  %v2007_v20 = vld [vmem:[%s3057_s2 + $0x40] sm:$0xff]   ;;  %v581_v38 = vld [vmem:[%s3058_s3 + $0x90] sm:$0xff] }
  0x1a   : > { %v443_v40 = vmul.f32 0.7978846, %v427_v30  ;;  %v444_v41 = vmul.f32 0.7978846, %v428_v31  ;;  %v445_v54 = vmul.f32 0.7978846, %v429_v44  ;;  %v433_v60 = vadd.f32 %v417_v50, %v2272_v27  ;;  %1931 = vmatprep.mubr.bf16.mxu0 %v2006_v19  ;;  %1947 = vmatprep.mubr.bf16.mxu1 %v2007_v20 }
  0x1b   : > { %v446_v55 = vmul.f32 0.7978846, %v430_v45  ;;  %v447_v58 = vmul.f32 0.7978846, %v431_v49  ;;  %v418_v59 = vmul.f32 0.044715, %v402_v47  ;;  %v388_v61 = vmul.f32 %v2299_v48, %v2299_v48 }
  0x1c   : > { %2022 = vtanh.f32 %v443_v40  ;;  %v448_v63 = vmul.f32 0.7978846, %v432_v56  ;;  %v403_v0 = vmul.f32 %v387_v51, %v2292_v39  ;;  %v389_v1 = vmul.f32 %v2305_v52, %v2305_v52  ;;  %647 = vperm.xlu0 %2004, %v573_v53   ;;  %v582_v40 = vld [vmem:[%s3058_s3 + $0x98] sm:$0xff]  ;;  %v583_v51 = vld [vmem:[%s3058_s3 + $0xa0] sm:$0xff] }
  0x1d   : > { %2024 = vtanh.f32 %v444_v41  ;;  %v434_v8 = vadd.f32 %v418_v59, %v2275_v28  ;;  %v449_v9 = vmul.f32 0.7978846, %v433_v60  ;;  %v404_v10 = vmul.f32 %v388_v61, %v2299_v48  ;;  %652 = vperm.xlu1 %2005, %v574_v57   ;;  %v584_v57 = vld [vmem:[%s3058_s3 + $0xa8] sm:$0xff] }
  0x1e   : > { %2026 = vtanh.f32 %v445_v54  ;;  %v419_v12 = vmul.f32 0.044715, %v403_v0  ;;  %v390_v15 = vmul.f32 %v2318_v62, %v2318_v62  ;;  %v405_v16 = vmul.f32 %v389_v1, %v2305_v52 }
  0x1f   : > { %2028 = vtanh.f32 %v446_v55  ;;  %v450_v21 = vmul.f32 0.7978846, %v434_v8  ;;  %v420_v23 = vmul.f32 0.044715, %v404_v10  ;;  %v391_v24 = vmul.f32 %v2324_v2, %v2324_v2 }
  0x20   : > { %2030 = vtanh.f32 %v447_v58  ;;  %v435_v25 = vadd.f32 %v419_v12, %v2292_v39  ;;  %v406_v26 = vmul.f32 %v390_v15, %v2318_v62  ;;  %v421_v29 = vmul.f32 0.044715, %v405_v16  ;;  %677 = vperm.xlu0 %2004, %v579_v4  }
  0x21   : > { %2032 = vtanh.f32 %v448_v63  ;;  %v436_v30 = vadd.f32 %v420_v23, %v2299_v48  ;;  %v392_v31 = vmul.f32 %v2327_v3, %v2327_v3  ;;  %v407_v32 = vmul.f32 %v391_v24, %v2324_v2  ;;  %682 = vperm.xlu1 %2005, %v580_v7  }
  0x22   : > { %2034 = vtanh.f32 %v449_v9  ;;  %v451_v33 = vmul.f32 0.7978846, %v435_v25  ;;  %v422_v34 = vmul.f32 0.044715, %v406_v26  ;;  %v437_v35 = vadd.f32 %v421_v29, %v2305_v52 }
  0x23   : > { %2036 = vtanh.f32 %v450_v21  ;;  %v393_v36 = vmul.f32 %v2338_v11, %v2338_v11  ;;  %v452_v41 = vmul.f32 0.7978846, %v436_v30  ;;  %v408_v42 = vmul.f32 %v392_v31, %v2327_v3 }
  0x24   : > { %v423_v43 = vmul.f32 0.044715, %v407_v32  ;;  %v394_v44 = vmul.f32 %v2344_v17, %v2344_v17  ;;  %2038 = vtanh.f32 %v451_v33  ;;  %v438_v47 = vadd.f32 %v422_v34, %v2318_v62  ;;  %687 = vperm.xlu0 %2004, %v581_v38   ;;  %v586_v32 = vld [vmem:[%s3058_s3 + $0xb8] sm:$0xff] }
  0x25   : > { %v453_v49 = vmul.f32 0.7978846, %v437_v35  ;;  %2040 = vtanh.f32 %v452_v41  ;;  %v424_v53 = vmul.f32 0.044715, %v408_v42  ;;  %692 = vperm.xlu1 %2005, %v582_v40   ;;  %v409_v59 = vmul.f32 %v393_v36, %v2338_v11 }
  0x26   : > { %v2023_v37 = vpop.eup %2022  ;;  %v439_v54 = vadd.f32 %v423_v43, %v2324_v2  ;;  %v454_v58 = vmul.f32 0.7978846, %v438_v47  ;;  %v410_v9 = vmul.f32 %v394_v44, %v2344_v17  ;;  %v587_v43 = vld [vmem:[%s3058_s3 + $0xc0] sm:$0xff] }
  0x27   : > { %v2025_v45 = vpop.eup %2024  ;;  %v475_v46 = vadd.f32 1.0, %v2023_v37  ;;  %2042 = vtanh.f32 %v453_v49  ;;  %v440_v0 = vadd.f32 %v424_v53, %v2327_v3  ;;  %v425_v24 = vmul.f32 0.044715, %v409_v59 }
  0x28   : > { %v476_v50 = vadd.f32 1.0, %v2025_v45  ;;  %v2027_v55 = vpop.eup %2026  ;;  %v455_v1 = vmul.f32 0.7978846, %v439_v54  ;;  %2044 = vtanh.f32 %v454_v58  ;;  %697 = vperm.xlu0 %2004, %v583_v51   ;;  %v426_v36 = vmul.f32 0.044715, %v410_v9 }
  0x29   : > { %v491_v56 = vmul.f32 0.5, %v475_v46  ;;  %v2029_v60 = vpop.eup %2028  ;;  %v477_v63 = vadd.f32 1.0, %v2027_v55  ;;  %v456_v19 = vmul.f32 0.7978846, %v440_v0  ;;  %702 = vperm.xlu1 %2005, %v584_v57   ;;  %v441_v37 = vadd.f32 %v425_v24, %v2338_v11  ;;  %v590_v0 = vld [vmem:[%s3058_s3 + $0xd8] sm:$0xff]  ;;  %v593_v24 = vld [vmem:[%s3058_s3 + $0xf0] sm:$0xff] }
  0x2a   : > { %v492_v61 = vmul.f32 0.5, %v476_v50  ;;  %v2031_v4 = vpop.eup %2030  ;;  %v478_v8 = vadd.f32 1.0, %v2029_v60  ;;  %2046 = vtanh.f32 %v455_v1  ;;  %v442_v45 = vadd.f32 %v426_v36, %v2344_v17  ;;  %v2010_v36 = vld [vmem:[%s3057_s2 + $0x10] sm:$0xff]  }
  0x2b   : > { %v507_v7 = vmul.f32 %v491_v56, %v2226_v5  ;;  %v2033_v10 = vpop.eup %2032  ;;  %v493_v15 = vmul.f32 0.5, %v477_v63  ;;  %v479_v16 = vadd.f32 1.0, %v2031_v4  ;;  %2048 = vtanh.f32 %v456_v19  ;;  %v589_v63 = vld [vmem:[%s3058_s3 + $0xd0] sm:$0xff] }
  0x2c   : > { %v508_v12 = vmul.f32 %v492_v61, %v2229_v6  ;;  %v2035_v20 = vpop.eup %2034  ;;  %v494_v21 = vmul.f32 0.5, %v478_v8  ;;  %v480_v23 = vadd.f32 1.0, %v2033_v10  ;;  %v585_v6 = vld [vmem:[%s3058_s3 + $0xb0] sm:$0xff]  ;;  %v457_v46 = vmul.f32 0.7978846, %v441_v37 }
  0x2d   : > { %v2037_v25 = vpop.eup %2036  ;;  %v509_v5 = vmul.f32 %v493_v15, %v2244_v13  ;;  %v495_v29 = vmul.f32 0.5, %v479_v16  ;;  %v481_v30 = vadd.f32 1.0, %v2035_v20  ;;  %707 = vperm.xlu0 %2004, %v585_v6   ;;  %712 = vperm.xlu1 %2005, %v586_v32   ;;  %v458_v55 = vmul.f32 0.7978846, %v442_v45  ;;  %v592_v15 = vld [vmem:[%s3058_s3 + $0xe8] sm:$0xff]  ;;  %v2011_v37 = vld [vmem:[%s3057_s2 + $0x50] sm:$0xff]  }
  0x2e   : > { %v555_v26 = vpack.c.bf16 %v508_v12, %v507_v7  ;;  %v510_v31 = vmul.f32 %v494_v21, %v2247_v14  ;;  %v496_v33 = vmul.f32 0.5, %v480_v23  ;;  %v482_v34 = vadd.f32 1.0, %v2037_v25  ;;  %v2039_v14 = vpop.eup %2038  ;;  %v591_v12 = vld [vmem:[%s3058_s3 + $0xe0] sm:$0xff]  ;;  %v594_v25 = vld [vmem:[%s3058_s3 + $0xf8] sm:$0xff]  ;;  %v1259_v45 = vld [vmem:[%s3059_s4 + $0x30] sm:$0xff] }
  0x2f   : > { %v511_v35 = vmul.f32 %v495_v29, %v2257_v18  ;;  %v497_v13 = vmul.f32 0.5, %v481_v30  ;;  %v2041_v42 = vpop.eup %2040  ;;  %v483_v44 = vadd.f32 1.0, %v2039_v14  ;;  %2050 = vtanh.f32 %v457_v46  ;;  %v575_v30 = vld [vmem:[%s3058_s3 + $0x60] sm:$0xff]  ;;  %v1255_v14 = vld [vmem:[%s3059_s4 + $0x10] sm:$0xff]  ;;  %v1260_v46 = vld [vmem:[%s3059_s4 + $0x38] sm:$0xff] }
  0x30   : > { %1915 = vmatprep.subr.bf16.mxu0 %v555_v26  ;;  %1963 = vmatprep.subr.bf16.mxu1 %v555_v26  ;;  %v556_v38 = vpack.c.bf16 %v510_v31, %v509_v5  ;;  %v512_v40 = vmul.f32 %v496_v33, %v2263_v22  ;;  %v498_v41 = vmul.f32 0.5, %v482_v34  ;;  %v588_v22 = vld [vmem:[%s3058_s3 + $0xc8] sm:$0xff]  ;;  %v484_v51 = vadd.f32 1.0, %v2041_v42  ;;  %v578_v33 = vld [vmem:[%s3058_s3 + $0x78] sm:$0xff]  ;;  %v1257_v42 = vld [vmem:[%s3059_s4 + $0x20] sm:$0xff] }
  0x31   : > { %1916 = vmatpush3.bf16.msra.mxu0 %v555_v26  ;;  %1971 = vmatpush3.bf16.msra.mxu1 %v555_v26  ;;  %v513_v18 = vmul.f32 %v497_v13, %v2272_v27  ;;  %v2043_v47 = vpop.eup %2042  ;;  %v499_v53 = vmul.f32 0.5, %v483_v44  ;;  %2052 = vtanh.f32 %v458_v55  ;;  %v576_v31 = vld [vmem:[%s3058_s3 + $0x68] sm:$0xff]  ;;  %v2015_v44 = vld [vmem:[%s3057_s2 + $0x60] sm:$0xff]   ;;  %v1264_v55 = vld [vmem:[%s3059_s4 + $0x58] sm:$0xff] }
  0x32   : > { %1917 = vmatprep.subr.bf16.mxu0 %v556_v38  ;;  %1964 = vmatprep.subr.bf16.mxu1 %v556_v38  ;;  %v557_v49 = vpack.c.bf16 %v512_v40, %v511_v35  ;;  %v514_v50 = vmul.f32 %v498_v41, %v2275_v28  ;;  %v485_v54 = vadd.f32 1.0, %v2043_v47  ;;  %v2045_v27 = vpop.eup %2044  ;;  %v500_v57 = vmul.f32 0.5, %v484_v51  ;;  %v2009_v34 = vld [vmem:[%s3057_s2 + $0x48] sm:$0xff]   ;;  %v1253_v35 = vld [vmem:[%s3059_s4] sm:$0xff]  ;;  %v2012_v40 = vld [vmem:[%s3057_s2 + $0x18] sm:$0xff]  }
  0x33   : > { %v515_v58 = vmul.f32 %v499_v53, %v2292_v39  ;;  %v486_v59 = vadd.f32 1.0, %v2045_v27  ;;  %717 = vperm.xlu0 %2004, %v587_v43   ;;  %722 = vperm.xlu1 %2005, %v588_v22   ;;  %v1254_v13 = vld [vmem:[%s3059_s4 + $0x8] sm:$0xff]  ;;  %v2013_v41 = vld [vmem:[%s3057_s2 + $0x58] sm:$0xff]   ;;  %v1261_v22 = vld [vmem:[%s3059_s4 + $0x40] sm:$0xff] }
  0x34   : > { %v558_v56 = vpack.c.bf16 %v514_v50, %v513_v18  ;;  %v501_v60 = vmul.f32 0.5, %v485_v54  ;;  %v2047_v61 = vpop.eup %2046  ;;  %v516_v28 = vmul.f32 %v500_v57, %v2299_v48  ;;  %v1258_v43 = vld [vmem:[%s3059_s4 + $0x28] sm:$0xff]  ;;  %v2014_v18 = vld [vmem:[%s3057_s2 + $0x20] sm:$0xff]   ;;  %v2018_v51 = vld [vmem:[%s3057_s2 + $0x30] sm:$0xff]  }
  0x35   : > { %1918 = vmatpush3.bf16.msra.mxu0 %v556_v38  ;;  %1972 = vmatpush3.bf16.msra.mxu1 %v556_v38  ;;  %v502_v1 = vmul.f32 0.5, %v486_v59  ;;  %v487_v4 = vadd.f32 1.0, %v2047_v61  ;;  %v2049_v7 = vpop.eup %2048  ;;  %v1256_v38 = vld [vmem:[%s3059_s4 + $0x18] sm:$0xff]  ;;  %v2016_v47 = vld [vmem:[%s3057_s2 + $0x28] sm:$0xff]   ;;  %v2019_v53 = vld [vmem:[%s3057_s2 + $0x70] sm:$0xff]  }
  0x36   : > { %1919 = vmatprep.subr.bf16.mxu0 %v557_v49  ;;  %1965 = vmatprep.subr.bf16.mxu1 %v557_v49  ;;  %v517_v39 = vmul.f32 %v501_v60, %v2305_v52  ;;  %v559_v8 = vpack.c.bf16 %v516_v28, %v515_v58  ;;  %v488_v9 = vadd.f32 1.0, %v2049_v7  ;;  %v1262_v50 = vld [vmem:[%s3059_s4 + $0x48] sm:$0xff]  ;;  %v1263_v54 = vld [vmem:[%s3059_s4 + $0x50] sm:$0xff]  ;;  %v2020_v27 = vld [vmem:[%s3057_s2 + $0x38] sm:$0xff]  }
  0x37   : > { %v518_v48 = vmul.f32 %v502_v1, %v2318_v62  ;;  %v503_v10 = vmul.f32 0.5, %v487_v4  ;;  %727 = vperm.xlu0 %2004, %v589_v63   ;;  %732 = vperm.xlu1 %2005, %v590_v0   ;;  %v1265_v57 = vld [vmem:[%s3059_s4 + $0x60] sm:$0xff]  ;;  %v1266_v58 = vld [vmem:[%s3059_s4 + $0x68] sm:$0xff]  ;;  %v1267_v59 = vld [vmem:[%s3059_s4 + $0x70] sm:$0xff] }
  0x38   : > { %v504_v16 = vmul.f32 0.5, %v488_v9  ;;  %v1268_v60 = vld [vmem:[%s3059_s4 + $0x78] sm:$0xff]  ;;  %v1269_v61 = vld [vmem:[%s3060_s5] sm:$0xff]  ;;  %v1270_v28 = vld [vmem:[%s3060_s5 + $0x8] sm:$0xff] }
  0x39   : > { %1920 = vmatpush3.bf16.msra.mxu0 %v557_v49  ;;  %1973 = vmatpush3.bf16.msra.mxu1 %v557_v49  ;;  %v2051_v52 = vpop.eup %2050  ;;  %v560_v19 = vpack.c.bf16 %v518_v48, %v517_v39  ;;  %v519_v62 = vmul.f32 %v503_v10, %v2324_v2  ;;  %v2017_v49 = vld [vmem:[%s3057_s2 + $0x68] sm:$0xff]   ;;  %v1271_v63 = vld [vmem:[%s3060_s5 + $0x10] sm:$0xff]  ;;  %v1272_v0 = vld [vmem:[%s3060_s5 + $0x18] sm:$0xff] }
  0x3a   : > { %1921 = vmatprep.subr.bf16.mxu0 %v558_v56  ;;  %1966 = vmatprep.subr.bf16.mxu1 %v558_v56  ;;  %v520_v20 = vmul.f32 %v504_v16, %v2327_v3  ;;  %v489_v21 = vadd.f32 1.0, %v2051_v52  ;;  %v1273_v1 = vld [vmem:[%s3060_s5 + $0x20] sm:$0xff]  ;;  %v1274_v4 = vld [vmem:[%s3060_s5 + $0x28] sm:$0xff]  ;;  %v1275_v7 = vld [vmem:[%s3060_s5 + $0x30] sm:$0xff] }
  0x3b   : > { %737 = vperm.xlu0 %2004, %v591_v12   ;;  %742 = vperm.xlu1 %2005, %v592_v15   ;;  %v2053_v23 = vpop.eup %2052  ;;  %v1276_v39 = vld [vmem:[%s3060_s5 + $0x38] sm:$0xff]  ;;  %v1278_v48 = vld [vmem:[%s3060_s5 + $0x48] sm:$0xff]  ;;  %v1279_v9 = vld [vmem:[%s3060_s5 + $0x50] sm:$0xff] }
  0x3c   : > { %v490_v26 = vadd.f32 1.0, %v2053_v23  ;;  %v505_v5 = vmul.f32 0.5, %v489_v21  ;;  %v561_v2 = vpack.c.bf16 %v520_v20, %v519_v62  ;;  %v1280_v10 = vld [vmem:[%s3060_s5 + $0x58] sm:$0xff]  ;;  %v1281_v12 = vld [vmem:[%s3060_s5 + $0x60] sm:$0xff]  ;;  %v1282_v15 = vld [vmem:[%s3060_s5 + $0x68] sm:$0xff] }
  0x3d   : > { %1922 = vmatpush3.bf16.msra.mxu0 %v558_v56  ;;  %1974 = vmatpush3.bf16.msra.mxu1 %v558_v56  ;;  %v2021_v56 = vld [vmem:[%s3057_s2 + $0x78] sm:$0xff]   ;;  %v1283_v16 = vld [vmem:[%s3060_s5 + $0x70] sm:$0xff] }
  0x3e   : > { %1923 = vmatprep.subr.bf16.mxu0 %v559_v8  ;;  %1967 = vmatprep.subr.bf16.mxu1 %v559_v8  ;;  %v506_v3 = vmul.f32 0.5, %v490_v26  ;;  %v521_v29 = vmul.f32 %v505_v5, %v2338_v11  ;;  %v577_v11 = vld [vmem:[%s3058_s3 + $0x70] sm:$0xff]  ;;  %v1284_v52 = vld [vmem:[%s3060_s5 + $0x78] sm:$0xff] }
  0x3f   : > { %747 = vperm.xlu0 %2004, %v593_v24   ;;  %752 = vperm.xlu1 %2005, %v594_v25  }
  0x40   : > { %v522_v6 = vmul.f32 %v506_v3, %v2344_v17  ;;  %v2008_v17 = vld [vmem:[%s3057_s2 + $0x8] sm:$0xff]  }
  0x41   : > { %1924 = vmatpush3.bf16.msra.mxu0 %v559_v8  ;;  %1975 = vmatpush3.bf16.msra.mxu1 %v559_v8  ;;  %v1277_v8 = vld [vmem:[%s3060_s5 + $0x40] sm:$0xff] }
  0x42   : > { %1925 = vmatprep.subr.bf16.mxu0 %v560_v19  ;;  %1968 = vmatprep.subr.bf16.mxu1 %v560_v19  ;;  %v562_v32 = vpack.c.bf16 %v522_v6, %v521_v29 }
  0x43   : > { %657 = vperm.xlu0 %2004, %v575_v30   ;;  %662 = vperm.xlu1 %2005, %v576_v31  }
  0x45   : > { %1926 = vmatpush3.bf16.msra.mxu0 %v560_v19  ;;  %1976 = vmatpush3.bf16.msra.mxu1 %v560_v19 }
  0x46   : > { %1927 = vmatprep.subr.bf16.mxu0 %v561_v2  ;;  %1969 = vmatprep.subr.bf16.mxu1 %v561_v2 }
  0x47   : > { %667 = vperm.xlu0 %2004, %v577_v11   ;;  %672 = vperm.xlu1 %2005, %v578_v33  }
  0x49   : > { %1928 = vmatpush3.bf16.msra.mxu0 %v561_v2  ;;  %1977 = vmatpush3.bf16.msra.mxu1 %v561_v2 }
  0x4a   : > { %1929 = vmatprep.subr.bf16.mxu0 %v562_v32  ;;  %1970 = vmatprep.subr.bf16.mxu1 %v562_v32 }
  0x4b   : > { %1415 = vperm.xlu0 %2004, %v1253_v35   ;;  %1420 = vperm.xlu1 %2005, %v1254_v13  }
  0x4d   : > { %1930 = vmatpush3.bf16.msra.mxu0 %v562_v32  ;;  %1978 = vmatpush3.bf16.msra.mxu1 %v562_v32 }
  0x4f   : > { %1425 = vperm.xlu0 %2004, %v1255_v14   ;;  %1430 = vperm.xlu1 %2005, %v1256_v38  }
  0x50   : > { %1932 = vmatmul.mubr.bf16.vlgmr.msra.gmra.mrb[0].mxu0 %v2008_v17  ;;  %1948 = vmatmul.mubr.bf16.vlgmr.msra.gmra.mrb[0].mxu1 %v2009_v34 }
  0x51   : > { %1935 = vmatprep.mubr.bf16.mxu0 %v2010_v36  ;;  %1951 = vmatprep.mubr.bf16.mxu1 %v2011_v37 }
  0x53   : > { %1435 = vperm.xlu0 %2004, %v1257_v42   ;;  %1440 = vperm.xlu1 %2005, %v1258_v43  }
  0x57   : > { %1445 = vperm.xlu0 %2004, %v1259_v45   ;;  %1450 = vperm.xlu1 %2005, %v1260_v46  }
  0x58   : > { %1936 = vmatmul.mubr.bf16.gmra.mrb[4].mxu0 %v2012_v40  ;;  %1952 = vmatmul.mubr.bf16.gmra.mrb[4].mxu1 %v2013_v41 }
  0x59   : > { %1939 = vmatprep.mubr.bf16.mxu0 %v2014_v18  ;;  %1955 = vmatprep.mubr.bf16.mxu1 %v2015_v44 }
  0x5b   : > { %1455 = vperm.xlu0 %2004, %v1261_v22   ;;  %1460 = vperm.xlu1 %2005, %v1262_v50  }
  0x5f   : > { %1465 = vperm.xlu0 %2004, %v1263_v54   ;;  %1470 = vperm.xlu1 %2005, %v1264_v55  }
  0x60   : > { %1940 = vmatmul.mubr.bf16.gmra.mrb[8].mxu0 %v2016_v47  ;;  %1956 = vmatmul.mubr.bf16.gmra.mrb[8].mxu1 %v2017_v49 }
  0x61   : > { %1943 = vmatprep.mubr.bf16.mxu0 %v2018_v51  ;;  %1959 = vmatprep.mubr.bf16.mxu1 %v2019_v53 }
  0x63   : > { %1475 = vperm.xlu0 %2004, %v1265_v57   ;;  %1480 = vperm.xlu1 %2005, %v1266_v58  }
  0x67   : > { %1485 = vperm.xlu0 %2004, %v1267_v59   ;;  %1490 = vperm.xlu1 %2005, %v1268_v60  }
  0x68   : > { %1944 = vmatmul.mubr.bf16.gmra.mrb[12].mxu0 %v2020_v27  ;;  %1960 = vmatmul.mubr.bf16.gmra.mrb[12].mxu1 %v2021_v56 }
  0x6b   : > { %1511 = vperm.xlu0 %2004, %v1269_v61   ;;  %1516 = vperm.xlu1 %2005, %v1270_v28  }
  0x6f   : > { %1521 = vperm.xlu0 %2004, %v1271_v63   ;;  %1526 = vperm.xlu1 %2005, %v1272_v0  }
  0x73   : > { %1531 = vperm.xlu0 %2004, %v1273_v1   ;;  %1536 = vperm.xlu1 %2005, %v1274_v4  }
  0x77   : > { %1541 = vperm.xlu0 %2004, %v1275_v7   ;;  %1546 = vperm.xlu1 %2005, %v1276_v39  }
  0x7b   : > { %1551 = vperm.xlu0 %2004, %v1277_v8   ;;  %1556 = vperm.xlu1 %2005, %v1278_v48  }
  0x7f   : > { %1561 = vperm.xlu0 %2004, %v1279_v9   ;;  %1566 = vperm.xlu1 %2005, %v1280_v10  }
  0x83   : > { %1571 = vperm.xlu0 %2004, %v1281_v12   ;;  %1576 = vperm.xlu1 %2005, %v1282_v15  }
  0x87   : > { %1581 = vperm.xlu0 %2004, %v1283_v16   ;;  %1586 = vperm.xlu1 %2005, %v1284_v52   ;;  %v2581_v19 = vpop.permute.xlu0 %597  ;;  %v2583_v62 = vpop.permute.xlu1 %607 }
  0x8b   : > { %v2585_v20 = vpop.permute.xlu0 %602  ;;  %v2587_v21 = vpop.permute.xlu1 %612 }
  0x8f   : > { %v2589_v23 = vpop.permute.xlu0 %617  ;;  %v2591_v24 = vpop.permute.xlu1 %622 }
  0x93   : > { %v2593_v25 = vpop.permute.xlu0 %627 }
  0x94   : > { %v2595_v26 = vpop.permute.xlu1 %632 }
  0x97   : > { %v2597_v5 = vpop.permute.xlu0 %637 }
  0x98   : > { %v2599_v2 = vpop.permute.xlu1 %642 }
  0x9b   : > { %v2601_v3 = vpop.permute.xlu0 %647 }
  0x9c   : > { %v2603_v29 = vpop.permute.xlu1 %652 }
  0x9f   : > { %v678_v30 = vpop.permute.xlu0 %677 }
  0xa0   : > { %v683_v31 = vpop.permute.xlu1 %682 }
  0xa3   : > { %v688_v6 = vpop.permute.xlu0 %687 }
  0xa4   : > { %v693_v32 = vpop.permute.xlu1 %692 }
  0xa7   : > { %v698_v11 = vpop.permute.xlu0 %697 }
  0xa8   : > { %v703_v33 = vpop.permute.xlu1 %702 }
  0xac   : > { %v708_v17 = vpop.permute.xlu0 %707  ;;  %v713_v34 = vpop.permute.xlu1 %712 }
  0xb2   : > { %v718_v35 = vpop.permute.xlu0 %717  ;;  %v2605_v13 = vpop.permute.xlu1 %722 }
  0xb6   : > { %v728_v51 = vpop.permute.xlu0 %727  ;;  %v733_v53 = vpop.permute.xlu1 %732 }
  0xba   : > { %v2631_v48 = vpop.permute.xlu0 %737  ;;  %v2633_v9 = vpop.permute.xlu1 %742 }
 0x123   : > { %v2607_v36 = vpop.f32.mrb[0].mxu0  ;;  %v1949_v37 = vpop.f32.mrb[0].mxu1 }
 0x124   : > { %v958_v14 = vadd.f32 %v1949_v37, %v688_v6  ;;  %v2609_v38 = vpop.f32.mrb[1].mxu0  ;;  %v949_v40 = vpop.f32.mrb[1].mxu1 }
 0x125   : > { %v950_v41 = vadd.f32 %v949_v40, %v678_v30  ;;  %v2611_v42 = vpop.f32.mrb[2].mxu0  ;;  %v1950_v43 = vpop.f32.mrb[2].mxu1  ;;  %v2645_v40 = vld [vmem:[%s2629_s9 + $0x8] sm:$0xff]  }
 0x126   : > { %v1800_v18 = vmul.f32 -1.442695, %v958_v14  ;;  %v961_v44 = vadd.f32 %v1950_v43, %v693_v32  ;;  %v2613_v45 = vpop.f32.mrb[3].mxu0  ;;  %v952_v46 = vpop.f32.mrb[3].mxu1 }
 0x127   : > { %v1798_v47 = vmul.f32 -1.442695, %v950_v41  ;;  %v953_v49 = vadd.f32 %v952_v46, %v683_v31 }
 0x128   : > { %2054 = vpow2.f32 %v1800_v18  ;;  %v1801_v22 = vmul.f32 -1.442695, %v961_v44 }
 0x129   : > { %2056 = vpow2.f32 %v1798_v47  ;;  %v1799_v50 = vmul.f32 -1.442695, %v953_v49 }
 0x12a   : > { %2058 = vpow2.f32 %v1801_v22 }
 0x12b   : > { %2060 = vpow2.f32 %v1799_v50  ;;  %v2615_v54 = vpop.f32.mrb[4].mxu0  ;;  %v1953_v55 = vpop.f32.mrb[4].mxu1 }
 0x12c   : > { %v974_v27 = vadd.f32 %v1953_v55, %v708_v17  ;;  %v2617_v56 = vpop.f32.mrb[5].mxu0  ;;  %v965_v57 = vpop.f32.mrb[5].mxu1  ;;  %v2653_v55 = vld [vmem:[%s2629_s9 + $0x18] sm:$0xff]  }
 0x12d   : > { %v966_v58 = vadd.f32 %v965_v57, %v698_v11  ;;  %v2619_v59 = vpop.f32.mrb[6].mxu0  ;;  %v1954_v60 = vpop.f32.mrb[6].mxu1 }
 0x12e   : > { %v1804_v61 = vmul.f32 -1.442695, %v974_v27  ;;  %v977_v28 = vadd.f32 %v1954_v60, %v713_v34  ;;  %v2621_v63 = vpop.f32.mrb[7].mxu0  ;;  %v968_v0 = vpop.f32.mrb[7].mxu1 }
 0x12f   : > { %v1802_v1 = vmul.f32 -1.442695, %v966_v58  ;;  %v969_v4 = vadd.f32 %v968_v0, %v703_v33  ;;  %v2640_v33 = vld [vmem:[%s2629_s9] sm:$0xff]   ;;  %v748_v27 = vpop.permute.xlu0 %747  ;;  %v753_v57 = vpop.permute.xlu1 %752  ;;  %v1859_v58 = vunpack.c.h.bf16 %v2645_v40  ;;  %v1866_v0 = vunpack.c.l.bf16 %v2653_v55 }
 0x130   : > { %2062 = vpow2.f32 %v1804_v61  ;;  %v1805_v7 = vmul.f32 -1.442695, %v977_v28  ;;  %v1854_v22 = vunpack.c.l.bf16 %v2640_v33  ;;  %v1855_v60 = vunpack.c.h.bf16 %v2640_v33  ;;  %v2658_v28 = vld [vmem:[%s2629_s9 + $0x10] sm:$0xff]  }
 0x131   : > { %2064 = vpow2.f32 %v1802_v1  ;;  %v1803_v39 = vmul.f32 -1.442695, %v969_v4 }
 0x132   : > { %v2055_v8 = vpop.eup %2054  ;;  %2066 = vpow2.f32 %v1805_v7 }
 0x133   : > { %v2057_v10 = vpop.eup %2056  ;;  %v1062_v12 = vadd.f32 1.0, %v2055_v8  ;;  %2068 = vpow2.f32 %v1803_v39  ;;  %v2635_v15 = vpop.f32.mrb[8].mxu0  ;;  %v1862_v8 = vunpack.c.l.bf16 %v2658_v28 }
 0x134   : > { %v1957_v16 = vpop.f32.mrb[8].mxu1  ;;  %v2059_v52 = vpop.eup %2058  ;;  %v1060_v30 = vadd.f32 1.0, %v2057_v10 }
 0x135   : > { %v990_v31 = vadd.f32 %v1957_v16, %v728_v51  ;;  %v2637_v6 = vpop.f32.mrb[9].mxu0  ;;  %v981_v32 = vpop.f32.mrb[9].mxu1  ;;  %2070 = vrcp.f32 %v1062_v12  ;;  %v1063_v17 = vadd.f32 1.0, %v2059_v52 }
 0x136   : > { %v2061_v11 = vpop.eup %2060  ;;  %v982_v34 = vadd.f32 %v981_v32, %v718_v35  ;;  %v2642_v37 = vpop.f32.mrb[10].mxu0  ;;  %2072 = vrcp.f32 %v1060_v30  ;;  %v1858_v35 = vunpack.c.l.bf16 %v2645_v40 }
 0x137   : > { %v1958_v14 = vpop.f32.mrb[10].mxu1  ;;  %v1061_v41 = vadd.f32 1.0, %v2061_v11  ;;  %v1808_v43 = vmul.f32 -1.442695, %v990_v31  ;;  %v2647_v18 = vpop.f32.mrb[11].mxu0  ;;  %2074 = vrcp.f32 %v1063_v17  ;;  %v1867_v31 = vunpack.c.h.bf16 %v2653_v55 }
 0x138   : > { %v984_v44 = vpop.f32.mrb[11].mxu1  ;;  %v1806_v46 = vmul.f32 -1.442695, %v982_v34  ;;  %v993_v47 = vadd.f32 %v1958_v14, %v733_v53  ;;  %v894_v34 = vadd.f32 %v2607_v36, %v2583_v62  ;;  %v897_v62 = vadd.f32 %v2611_v42, %v2587_v21 }
 0x139   : > { %2076 = vrcp.f32 %v1061_v41  ;;  %v985_v49 = vadd.f32 %v984_v44, %v2605_v13  ;;  %v889_v36 = vadd.f32 %v2613_v45, %v2585_v20  ;;  %v1863_v21 = vunpack.c.h.bf16 %v2658_v28  ;;  %v2695_v20 = vld [vmem:[%s2629_s9 + $0x28] sm:$0xff]   ;;  %v2698_v45 = vld [vmem:[%s2629_s9 + $0x30] sm:$0xff]  }
 0x13a   : > { %2078 = vpow2.f32 %v1808_v43  ;;  %v1809_v50 = vmul.f32 -1.442695, %v993_v47  ;;  %v2063_v51 = vpop.eup %2062  ;;  %v886_v47 = vadd.f32 %v2609_v38, %v2581_v19 }
 0x13b   : > { %2080 = vpow2.f32 %v1806_v46  ;;  %v1807_v53 = vmul.f32 -1.442695, %v985_v49  ;;  %v2065_v61 = vpop.eup %2064  ;;  %v1066_v13 = vadd.f32 1.0, %v2063_v51  ;;  %v2661_v1 = vpop.f32.mrb[12].mxu0 }
 0x13c   : > { %2082 = vpow2.f32 %v1809_v50  ;;  %v1961_v4 = vpop.f32.mrb[12].mxu1  ;;  %v2067_v7 = vpop.eup %2066  ;;  %v1064_v39 = vadd.f32 1.0, %v2065_v61  ;;  %v2682_v61 = vld [vmem:[%s2629_s9 + $0x20] sm:$0xff]  }
 0x13d   : > { %2084 = vpow2.f32 %v1807_v53  ;;  %v1006_v10 = vadd.f32 %v1961_v4, %v748_v27  ;;  %v2664_v12 = vpop.f32.mrb[13].mxu0  ;;  %v997_v16 = vpop.f32.mrb[13].mxu1  ;;  %v1067_v30 = vadd.f32 1.0, %v2067_v7 }
 0x13e   : > { %v2069_v52 = vpop.eup %2068  ;;  %2086 = vrcp.f32 %v1066_v13  ;;  %v998_v32 = vadd.f32 %v997_v16, %v2631_v48  ;;  %v2668_v11 = vpop.f32.mrb[14].mxu0 }
 0x13f   : > { %v1962_v17 = vpop.f32.mrb[14].mxu1  ;;  %2088 = vrcp.f32 %v1064_v39  ;;  %v1065_v14 = vadd.f32 1.0, %v2069_v52  ;;  %v1812_v41 = vmul.f32 -1.442695, %v1006_v10  ;;  %v2672_v43 = vpop.f32.mrb[15].mxu0  ;;  %v910_v39 = vadd.f32 %v2615_v54, %v2593_v25 }
 0x140   : > { %v1000_v44 = vpop.f32.mrb[15].mxu1  ;;  %v2071_v46 = vpop.eup %2070  ;;  %2090 = vrcp.f32 %v1067_v30  ;;  %v1810_v49 = vmul.f32 -1.442695, %v998_v32  ;;  %v1009_v48 = vadd.f32 %v1962_v17, %v753_v57  ;;  %v902_v30 = vadd.f32 %v2617_v56, %v2589_v23 }
 0x141   : > { %v2073_v50 = vpop.eup %2072  ;;  %v1110_v51 = vmul.f32 %v2071_v46, %v894_v34  ;;  %2092 = vrcp.f32 %v1065_v14  ;;  %v1001_v38 = vadd.f32 %v1000_v44, %v2633_v9  ;;  %v2701_v9 = vld [vmem:[%s2629_s9 + $0x38] sm:$0xff]  }
 0x142   : > { %v2075_v27 = vpop.eup %2074  ;;  %v1108_v53 = vmul.f32 %v2073_v50, %v886_v47  ;;  %2094 = vpow2.f32 %v1812_v41  ;;  %v1813_v19 = vmul.f32 -1.442695, %v1009_v48 }
 0x143   : > { %v2077_v57 = vpop.eup %2076  ;;  %v2684_v13 = vadd.f32 %v1858_v35, %v1110_v51  ;;  %v1111_v4 = vmul.f32 %v2075_v27, %v897_v62  ;;  %2096 = vpow2.f32 %v1810_v49  ;;  %v1811_v34 = vmul.f32 -1.442695, %v1001_v38 }
 0x144   : > { %v2079_v42 = vpop.eup %2078  ;;  %v2705_v35 = vadd.f32 %v1854_v22, %v1108_v53  ;;  %v1109_v7 = vmul.f32 %v2077_v57, %v889_v36  ;;  %2098 = vpow2.f32 %v1813_v19  ;;  %v913_v49 = vadd.f32 %v2619_v59, %v2595_v26 }
 0x145   : > { %v2081_v10 = vpop.eup %2080  ;;  %v1838_v16 = vpack.c.bf16 %v2684_v13, %v2684_v13  ;;  %v2713_v52 = vadd.f32 %v1859_v58, %v1111_v4  ;;  %v1070_v32 = vadd.f32 1.0, %v2079_v42  ;;  %v1289_v50 = vsel %vm1285_vm1, %v2684_v13, 0.0 }
 0x146   : > { %v2083_v22 = vpop.eup %2082  ;;  %v1836_v17 = vpack.c.bf16 %v2705_v35, %v2705_v35  ;;  %v2721_v25 = vadd.f32 %v1855_v60, %v1109_v7  ;;  %v1068_v54 = vadd.f32 1.0, %v2081_v10  ;;  %v1286_v40 = vsel %vm1285_vm1, %v2705_v35, 0.0 }
 0x147   : > { %v2085_v14 = vpop.eup %2084  ;;  %1239 = vst.msk [vmem:[%s2692_s12 + $0x8] sm:$0xf] %vm1236_vm0, %v1838_v16  ;;  %v1839_v23 = vpack.c.bf16 %v2713_v52, %v2713_v52  ;;  %2100 = vrcp.f32 %v1070_v32  ;;  %v1071_v56 = vadd.f32 1.0, %v2083_v22  ;;  %v905_v62 = vadd.f32 %v2621_v63, %v2591_v24 }
 0x148   : > { %v2087_v58 = vpop.eup %2086  ;;  %1237 = vst.msk [vmem:[%s2692_s12] sm:$0xf] %vm1236_vm0, %v1836_v17  ;;  %v1837_v33 = vpack.c.bf16 %v2721_v25, %v2721_v25  ;;  %v1287_v60 = vsel %vm1285_vm1, %v2721_v25, 0.0  ;;  %2102 = vrcp.f32 %v1068_v54  ;;  %v1069_v41 = vadd.f32 1.0, %v2085_v14 }
 0x149   : > { %v2089_v44 = vpop.eup %2088  ;;  %1240 = vst.msk [vmem:[%s2692_s12 + $0xc] sm:$0xf] %vm1236_vm0, %v1839_v23  ;;  %v1288_v46 = vadd.f32 %v1287_v60, %v1286_v40  ;;  %v1114_v47 = vmul.f32 %v2087_v58, %v910_v39  ;;  %2104 = vrcp.f32 %v1071_v56  ;;  %v1291_v59 = vsel %vm1285_vm1, %v2713_v52, 0.0  ;;  %v658_v40 = vpop.permute.xlu0 %657 }
 0x14a   : > { %v2091_v48 = vpop.eup %2090  ;;  %1238 = vst.msk [vmem:[%s2692_s12 + $0x4] sm:$0xf] %vm1236_vm0, %v1837_v33  ;;  %v1112_v51 = vmul.f32 %v2089_v44, %v902_v30  ;;  %2106 = vrcp.f32 %v1069_v41  ;;  %v1874_v24 = vunpack.c.l.bf16 %v2695_v20  ;;  %v1870_v7 = vunpack.c.l.bf16 %v2682_v61  ;;  %v663_v44 = vpop.permute.xlu1 %662 }
 0x14b   : > { %v2093_v36 = vpop.eup %2092  ;;  %v1290_v27 = vadd.f32 %v1289_v50, %v1288_v46  ;;  %v2747_v53 = vadd.f32 %v1866_v0, %v1114_v47  ;;  %v1115_v19 = vmul.f32 %v2091_v48, %v913_v49  ;;  %2108 = vpow2.f32 %v1811_v34 }
 0x14c   : > { %v2095_v26 = vpop.eup %2094  ;;  %v2753_v38 = vadd.f32 %v1862_v8, %v1112_v51  ;;  %v1113_v57 = vmul.f32 %v2093_v36, %v905_v62  ;;  %v926_v32 = vadd.f32 %v2635_v15, %v2601_v3  ;;  %v918_v14 = vadd.f32 %v2637_v6, %v2597_v5 }
 0x14d   : > { %v2097_v63 = vpop.eup %2096  ;;  %v1842_v0 = vpack.c.bf16 %v2747_v53, %v2747_v53  ;;  %v1292_v4 = vadd.f32 %v1291_v59, %v1290_v27  ;;  %v2760_v42 = vadd.f32 %v1867_v31, %v1115_v19  ;;  %v1074_v30 = vadd.f32 1.0, %v2095_v26  ;;  %v668_v27 = vpop.permute.xlu0 %667 }
 0x14e   : > { %v2099_v39 = vpop.eup %2098  ;;  %v1840_v8 = vpack.c.bf16 %v2753_v38, %v2753_v38  ;;  %v1293_v10 = vsel %vm1285_vm1, %v2753_v38, 0.0  ;;  %v2769_v16 = vadd.f32 %v1863_v21, %v1113_v57  ;;  %v1072_v22 = vadd.f32 1.0, %v2097_v63 }
 0x14f   : > { %1243 = vst.msk [vmem:[%s2692_s12 + $0x18] sm:$0xf] %vm1236_vm0, %v1842_v0  ;;  %v1294_v55 = vadd.f32 %v1293_v10, %v1292_v4  ;;  %v1843_v31 = vpack.c.bf16 %v2760_v42, %v2760_v42  ;;  %2110 = vrcp.f32 %v1074_v30  ;;  %v1075_v21 = vadd.f32 1.0, %v2099_v39  ;;  %v673_v4 = vpop.permute.xlu1 %672 }
 0x150   : > { %1241 = vst.msk [vmem:[%s2692_s12 + $0x10] sm:$0xf] %vm1236_vm0, %v1840_v8  ;;  %v1841_v17 = vpack.c.bf16 %v2769_v16, %v2769_v16  ;;  %v1295_v28 = vsel %vm1285_vm1, %v2769_v16, 0.0  ;;  %v1875_v3 = vunpack.c.h.bf16 %v2695_v20  ;;  %2112 = vrcp.f32 %v1072_v22 }
 0x151   : > { %v2101_v54 = vpop.eup %2100  ;;  %1244 = vst.msk [vmem:[%s2692_s12 + $0x1c] sm:$0xf] %vm1236_vm0, %v1843_v31  ;;  %v1296_v34 = vadd.f32 %v1295_v28, %v1294_v55  ;;  %v1297_v23 = vsel %vm1285_vm1, %v2747_v53, 0.0  ;;  %v929_v58 = vadd.f32 %v2642_v37, %v2603_v29  ;;  %2114 = vrcp.f32 %v1075_v21 }
 0x152   : > { %v2103_v15 = vpop.eup %2102  ;;  %1242 = vst.msk [vmem:[%s2692_s12 + $0x14] sm:$0xf] %vm1236_vm0, %v1841_v17  ;;  %v1118_v56 = vmul.f32 %v2101_v54, %v926_v32  ;;  %v921_v5 = vadd.f32 %v2647_v18, %v2599_v2  ;;  %v1871_v6 = vunpack.c.h.bf16 %v2682_v61  ;;  %v1299_v46 = vsel %vm1285_vm1, %v2760_v42, 0.0 }
 0x153   : > { %v2105_v33 = vpop.eup %2104  ;;  %v1298_v60 = vadd.f32 %v1297_v23, %v1296_v34  ;;  %v1116_v41 = vmul.f32 %v2103_v15, %v918_v14  ;;  %v1882_v63 = vunpack.c.l.bf16 %v2701_v9  ;;  %v934_v39 = vadd.f32 %v2664_v12, %v658_v40 }
 0x154   : > { %v2107_v20 = vpop.eup %2106  ;;  %v2799_v47 = vadd.f32 %v1874_v24, %v1118_v56  ;;  %v1119_v49 = vmul.f32 %v2105_v33, %v929_v58  ;;  %v942_v24 = vadd.f32 %v2661_v1, %v668_v27  ;;  %v1878_v8 = vunpack.c.l.bf16 %v2698_v45 }
 0x155   : > { %v2109_v29 = vpop.eup %2108  ;;  %v2801_v37 = vadd.f32 %v1870_v7, %v1116_v41  ;;  %v1300_v48 = vadd.f32 %v1299_v46, %v1298_v60  ;;  %v1117_v50 = vmul.f32 %v2107_v20, %v921_v5  ;;  %v945_v1 = vadd.f32 %v2668_v11, %v673_v4 }
 0x156   : > { %v1846_v2 = vpack.c.bf16 %v2799_v47, %v2799_v47  ;;  %v2805_v18 = vadd.f32 %v1875_v3, %v1119_v49  ;;  %v1073_v61 = vadd.f32 1.0, %v2109_v29  ;;  %v1305_v30 = vsel %vm1285_vm1, %v2799_v47, 0.0  ;;  %v2853_v49 = vpop.permute.xlu1 %1420 }
 0x157   : > { %v1844_v51 = vpack.c.bf16 %v2801_v37, %v2801_v37  ;;  %v1301_v62 = vsel %vm1285_vm1, %v2801_v37, 0.0  ;;  %v2811_v36 = vadd.f32 %v1871_v6, %v1117_v50  ;;  %v1883_v31 = vunpack.c.h.bf16 %v2701_v9 }
 0x158   : > { %1247 = vst.msk [vmem:[%s2692_s12 + $0x28] sm:$0xf] %vm1236_vm0, %v1846_v2  ;;  %v1302_v19 = vadd.f32 %v1301_v62, %v1300_v48  ;;  %v1847_v26 = vpack.c.bf16 %v2805_v18, %v2805_v18  ;;  %2116 = vrcp.f32 %v1073_v61  ;;  %v1307_v12 = vsel %vm1285_vm1, %v2805_v18, 0.0 }
 0x159   : > { %1245 = vst.msk [vmem:[%s2692_s12 + $0x20] sm:$0xf] %vm1236_vm0, %v1844_v51  ;;  %v1845_v59 = vpack.c.bf16 %v2811_v36, %v2811_v36  ;;  %v1303_v57 = vsel %vm1285_vm1, %v2811_v36, 0.0  ;;  %v2111_v0 = vpop.eup %2110  ;;  %v937_v23 = vadd.f32 %v2672_v43, %v663_v44  ;;  %v1879_v56 = vunpack.c.h.bf16 %v2698_v45  ;;  %v2851_v45 = vpop.permute.xlu0 %1415 }
 0x15a   : > { %1248 = vst.msk [vmem:[%s2692_s12 + $0x2c] sm:$0xf] %vm1236_vm0, %v1847_v26  ;;  %v1304_v7 = vadd.f32 %v1303_v57, %v1302_v19  ;;  %v2113_v10 = vpop.eup %2112  ;;  %v1122_v55 = vmul.f32 %v2111_v0, %v942_v24  ;;  %v2857_v61 = vpop.permute.xlu1 %1430 }
 0x15b   : > { %1246 = vst.msk [vmem:[%s2692_s12 + $0x24] sm:$0xf] %vm1236_vm0, %v1845_v59  ;;  %v2115_v32 = vpop.eup %2114  ;;  %v1120_v17 = vmul.f32 %v2113_v10, %v934_v39 }
 0x15c   : > { %v1306_v22 = vadd.f32 %v1305_v30, %v1304_v7  ;;  %v1170_v28 = vadd.f32 %v1882_v63, %v1122_v55  ;;  %v1123_v21 = vmul.f32 %v2115_v32, %v945_v1 }
 0x15d   : > { %v1168_v54 = vadd.f32 %v1878_v8, %v1120_v17  ;;  %v2855_v2 = vpop.permute.xlu0 %1425 }
 0x15e   : > { %v1308_v34 = vadd.f32 %v1307_v12, %v1306_v22  ;;  %v1850_v14 = vpack.c.bf16 %v1170_v28, %v1170_v28  ;;  %v1171_v3 = vadd.f32 %v1883_v31, %v1123_v21  ;;  %v1313_v20 = vsel %vm1285_vm1, %v1170_v28, 0.0  ;;  %v2861_v26 = vpop.permute.xlu1 %1440 }
 0x15f   : > { %v1848_v15 = vpack.c.bf16 %v1168_v54, %v1168_v54  ;;  %v1309_v11 = vsel %vm1285_vm1, %v1168_v54, 0.0 }
 0x160   : > { %1251 = vst.msk [vmem:[%s2692_s12 + $0x38] sm:$0xf] %vm1236_vm0, %v1850_v14  ;;  %v1310_v9 = vadd.f32 %v1309_v11, %v1308_v34  ;;  %v1851_v40 = vpack.c.bf16 %v1171_v3, %v1171_v3  ;;  %v1315_v43 = vsel %vm1285_vm1, %v1171_v3, 0.0 }
 0x161   : > { %1249 = vst.msk [vmem:[%s2692_s12 + $0x30] sm:$0xf] %vm1236_vm0, %v1848_v15  ;;  %v2859_v19 = vpop.permute.xlu0 %1435 }
 0x162   : > { %v2117_v58 = vpop.eup %2116  ;;  %1252 = vst.msk [vmem:[%s2692_s12 + $0x3c] sm:$0xf] %vm1236_vm0, %v1851_v40 }
 0x163   : > { %v1121_v33 = vmul.f32 %v2117_v58, %v937_v23 }
 0x165   : > { %v1169_v60 = vadd.f32 %v1879_v56, %v1121_v33  ;;  %v2907_v10 = vpop.permute.xlu0 %1445 }
 0x167   : > { %v1849_v41 = vpack.c.bf16 %v1169_v60, %v1169_v60  ;;  %v1311_v5 = vsel %vm1285_vm1, %v1169_v60, 0.0 }
 0x168   : > { %v1312_v6 = vadd.f32 %v1311_v5, %v1310_v9 }
 0x169   : > { %1250 = vst.msk [vmem:[%s2692_s12 + $0x34] sm:$0xf] %vm1236_vm0, %v1849_v41  ;;  %v2921_v32 = vpop.permute.xlu0 %1455 }
 0x16a   : > { %v1314_v46 = vadd.f32 %v1313_v20, %v1312_v6 }
 0x16c   : > { %v1316_v44 = vadd.f32 %v1315_v43, %v1314_v46 }
 0x16d   : > { %v2934_v11 = vpop.permute.xlu0 %1465 }
 0x16e   : > { %v1317_v29 = vrot.slane %v1316_v44, 4 }
 0x170   : > { %v1318_v48 = vadd.f32 %v1317_v29, %v1316_v44 }
 0x171   : > { %v2947_v20 = vpop.permute.xlu0 %1475 }
 0x172   : > { %v1319_v50 = vrot.slane %v1318_v48, 2 }
 0x174   : > { %v1320_v51 = vadd.f32 %v1319_v50, %v1318_v48 }
 0x176   : > { %v1321_v62 = vrot.slane %v1320_v51, 1 }
 0x178   : > { %v1322_v27 = vadd.f32 %v1321_v62, %v1320_v51 }
 0x17a   : > { %v1324_v59 = vmul.f32 0.0078125, %v1322_v27 }
 0x17c   : > { %v2864_v57 = vsub.f32 %v2705_v35, %v1324_v59  ;;  %v2867_v24 = vsub.f32 %v2721_v25, %v1324_v59  ;;  %v2870_v63 = vsub.f32 %v2684_v13, %v1324_v59  ;;  %v2873_v0 = vsub.f32 %v2713_v52, %v1324_v59 }
 0x17d   : > { %v2876_v4 = vsub.f32 %v2753_v38, %v1324_v59  ;;  %v2879_v7 = vsub.f32 %v2769_v16, %v1324_v59  ;;  %v2882_v39 = vsub.f32 %v2747_v53, %v1324_v59  ;;  %v2885_v35 = vsub.f32 %v2760_v42, %v1324_v59 }
 0x17e   : > { %v2888_v25 = vsub.f32 %v2801_v37, %v1324_v59  ;;  %v2891_v13 = vsub.f32 %v2811_v36, %v1324_v59  ;;  %v2894_v52 = vsub.f32 %v2799_v47, %v1324_v59  ;;  %v2897_v38 = vsub.f32 %v2805_v18, %v1324_v59  ;;  %v2909_v37 = vpop.permute.xlu1 %1450 }
 0x17f   : > { %v2899_v16 = vsub.f32 %v1168_v54, %v1324_v59  ;;  %v2901_v8 = vsub.f32 %v1169_v60, %v1324_v59  ;;  %v2903_v53 = vsub.f32 %v1170_v28, %v1324_v59  ;;  %v2905_v42 = vsub.f32 %v1171_v3, %v1324_v59 }
 0x180   : > { %v1341_v36 = vmul.f32 %v2864_v57, %v2864_v57  ;;  %v1342_v47 = vmul.f32 %v2867_v24, %v2867_v24  ;;  %v1343_v18 = vmul.f32 %v2870_v63, %v2870_v63  ;;  %v1344_v30 = vmul.f32 %v2873_v0, %v2873_v0 }
 0x181   : > { %v1345_v17 = vmul.f32 %v2876_v4, %v2876_v4  ;;  %v1346_v21 = vmul.f32 %v2879_v7, %v2879_v7  ;;  %v1347_v14 = vmul.f32 %v2882_v39, %v2882_v39  ;;  %v1348_v40 = vmul.f32 %v2885_v35, %v2885_v35 }
 0x182   : > { %v1357_v55 = vsel %vm1285_vm1, %v1341_v36, 0.0  ;;  %v1358_v1 = vsel %vm1285_vm1, %v1342_v47, 0.0  ;;  %v2923_v22 = vpop.permute.xlu1 %1460  ;;  %v1360_v12 = vsel %vm1285_vm1, %v1343_v18, 0.0  ;;  %v1362_v54 = vsel %vm1285_vm1, %v1344_v30, 0.0  ;;  %v2960_v36 = vpop.permute.xlu0 %1485 }
 0x183   : > { %v1359_v31 = vadd.f32 %v1358_v1, %v1357_v55  ;;  %v1364_v3 = vsel %vm1285_vm1, %v1345_v17, 0.0  ;;  %v1366_v23 = vsel %vm1285_vm1, %v1346_v21, 0.0  ;;  %v1349_v58 = vmul.f32 %v2888_v25, %v2888_v25 }
 0x184   : > { %v1368_v33 = vsel %vm1285_vm1, %v1347_v14, 0.0  ;;  %v1350_v41 = vmul.f32 %v2891_v13, %v2891_v13  ;;  %v1370_v5 = vsel %vm1285_vm1, %v1348_v40, 0.0  ;;  %v1351_v43 = vmul.f32 %v2894_v52, %v2894_v52 }
 0x185   : > { %v1361_v28 = vadd.f32 %v1360_v12, %v1359_v31  ;;  %v1372_v44 = vsel %vm1285_vm1, %v1349_v58, 0.0  ;;  %v1352_v48 = vmul.f32 %v2897_v38, %v2897_v38  ;;  %v1353_v62 = vmul.f32 %v2899_v16, %v2899_v16 }
 0x186   : > { %v2936_v9 = vpop.permute.xlu1 %1470  ;;  %v1374_v50 = vsel %vm1285_vm1, %v1350_v41, 0.0  ;;  %v1376_v27 = vsel %vm1285_vm1, %v1351_v43, 0.0  ;;  %v1354_v18 = vmul.f32 %v2901_v8, %v2901_v8  ;;  %v1355_v1 = vmul.f32 %v2903_v53, %v2903_v53 }
 0x187   : > { %v1363_v34 = vadd.f32 %v1362_v54, %v1361_v28  ;;  %v1378_v30 = vsel %vm1285_vm1, %v1352_v48, 0.0  ;;  %v1380_v31 = vsel %vm1285_vm1, %v1353_v62, 0.0  ;;  %v1356_v12 = vmul.f32 %v2905_v42, %v2905_v42  ;;  %v1512_v54 = vpop.permute.xlu0 %1511 }
 0x188   : > { %v1382_v28 = vsel %vm1285_vm1, %v1354_v18, 0.0  ;;  %v1384_v14 = vsel %vm1285_vm1, %v1355_v1, 0.0 }
 0x189   : > { %v1365_v15 = vadd.f32 %v1364_v3, %v1363_v34 }
 0x18a   : > { %v2949_v46 = vpop.permute.xlu1 %1480 }
 0x18b   : > { %v1367_v56 = vadd.f32 %v1366_v23, %v1365_v15  ;;  %v1386_v15 = vsel %vm1285_vm1, %v1356_v12, 0.0 }
 0x18d   : > { %v1369_v60 = vadd.f32 %v1368_v33, %v1367_v56  ;;  %v1522_v56 = vpop.permute.xlu0 %1521 }
 0x18e   : > { %v2962_v47 = vpop.permute.xlu1 %1490 }
 0x18f   : > { %v1371_v6 = vadd.f32 %v1370_v5, %v1369_v60 }
 0x191   : > { %v1373_v29 = vadd.f32 %v1372_v44, %v1371_v6  ;;  %v1532_v5 = vpop.permute.xlu0 %1531 }
 0x192   : > { %v1517_v34 = vpop.permute.xlu1 %1516 }
 0x193   : > { %v1375_v51 = vadd.f32 %v1374_v50, %v1373_v29 }
 0x195   : > { %v1377_v59 = vadd.f32 %v1376_v27, %v1375_v51  ;;  %v1542_v48 = vpop.permute.xlu0 %1541 }
 0x196   : > { %v1527_v58 = vpop.permute.xlu1 %1526 }
 0x197   : > { %v1379_v55 = vadd.f32 %v1378_v30, %v1377_v59 }
 0x199   : > { %v1381_v17 = vadd.f32 %v1380_v31, %v1379_v55  ;;  %v1552_v62 = vpop.permute.xlu0 %1551 }
 0x19a   : > { %v1537_v6 = vpop.permute.xlu1 %1536 }
 0x19b   : > { %v1383_v21 = vadd.f32 %v1382_v28, %v1381_v17 }
 0x19d   : > { %v1385_v3 = vadd.f32 %v1384_v14, %v1383_v21  ;;  %v1562_v59 = vpop.permute.xlu0 %1561 }
 0x19e   : > { %v1547_v50 = vpop.permute.xlu1 %1546 }
 0x19f   : > { %v1387_v40 = vadd.f32 %v1386_v15, %v1385_v3 }
 0x1a1   : > { %v1388_v23 = vrot.slane %v1387_v40, 4 }
 0x1a2   : > { %v1557_v27 = vpop.permute.xlu1 %1556 }
 0x1a3   : > { %v1389_v33 = vadd.f32 %v1388_v23, %v1387_v40 }
 0x1a5   : > { %v1390_v60 = vrot.slane %v1389_v33, 2 }
 0x1a6   : > { %v1567_v18 = vpop.permute.xlu1 %1566 }
 0x1a7   : > { %v1391_v41 = vadd.f32 %v1390_v60, %v1389_v33 }
 0x1a9   : > { %v1392_v43 = vrot.slane %v1391_v41, 1 }
 0x1aa   : > { %v1577_v40 = vpop.permute.xlu1 %1576 }
 0x1ab   : > { %v1393_v44 = vadd.f32 %v1392_v43, %v1391_v41 }
 0x1ad   : > { %v1394_v29 = vmul.f32 0.0078125, %v1393_v44 }
 0x1af   : > { %v1395_v51 = vadd.f32 1e-05, %v1394_v29 }
 0x1b1   : > { %2118 = vrsqrt.f32 %v1395_v51 }
 0x1bb   : > { %v2119_v30 = vpop.eup %2118 }
 0x1bc   : > { %v1397_v55 = vmul.f32 %v2119_v30, %v2864_v57  ;;  %v1398_v1 = vmul.f32 %v2119_v30, %v2867_v24  ;;  %v1399_v31 = vmul.f32 %v2119_v30, %v2870_v63  ;;  %v1400_v17 = vmul.f32 %v2119_v30, %v2873_v0 }
 0x1bd   : > { %v1401_v12 = vmul.f32 %v2119_v30, %v2876_v4  ;;  %v1402_v28 = vmul.f32 %v2119_v30, %v2879_v7  ;;  %v1403_v21 = vmul.f32 %v2119_v30, %v2882_v39  ;;  %v1404_v14 = vmul.f32 %v2119_v30, %v2885_v35  ;;  %v1572_v39 = vpop.permute.xlu0 %1571 }
 0x1be   : > { %v1405_v3 = vmul.f32 %v2119_v30, %v2888_v25  ;;  %v1406_v15 = vmul.f32 %v2119_v30, %v2891_v13  ;;  %v1407_v57 = vmul.f32 %v2119_v30, %v2894_v52  ;;  %v1408_v24 = vmul.f32 %v2119_v30, %v2897_v38 }
 0x1bf   : > { %v1409_v63 = vmul.f32 %v2119_v30, %v2899_v16  ;;  %v1410_v0 = vmul.f32 %v2119_v30, %v2901_v8  ;;  %v1411_v4 = vmul.f32 %v2119_v30, %v2903_v53  ;;  %v1412_v7 = vmul.f32 %v2119_v30, %v2905_v42 }
 0x1c0   : > { %v1493_v35 = vmul.f32 %v2851_v45, %v1397_v55  ;;  %v1494_v25 = vmul.f32 %v2853_v49, %v1398_v1  ;;  %v1495_v13 = vmul.f32 %v2855_v2, %v1399_v31  ;;  %v1496_v52 = vmul.f32 %v2857_v61, %v1400_v17 }
 0x1c1   : > { %v1497_v38 = vmul.f32 %v2859_v19, %v1401_v12  ;;  %v1498_v16 = vmul.f32 %v2861_v26, %v1402_v28  ;;  %v1499_v8 = vmul.f32 %v2907_v10, %v1403_v21  ;;  %v1500_v53 = vmul.f32 %v2909_v37, %v1404_v14 }
 0x1c2   : > { %v1501_v42 = vmul.f32 %v2921_v32, %v1405_v3  ;;  %v1502_v23 = vmul.f32 %v2923_v22, %v1406_v15  ;;  %v1503_v45 = vmul.f32 %v2934_v11, %v1407_v57  ;;  %v1504_v49 = vmul.f32 %v2936_v9, %v1408_v24 }
 0x1c3   : > { %v1505_v2 = vmul.f32 %v2947_v20, %v1409_v63  ;;  %v1506_v61 = vmul.f32 %v2949_v46, %v1410_v0  ;;  %v1507_v19 = vmul.f32 %v2960_v36, %v1411_v4  ;;  %v1508_v26 = vmul.f32 %v2962_v47, %v1412_v7  ;;  %v1582_v20 = vpop.permute.xlu0 %1581  ;;  %v1587_v46 = vpop.permute.xlu1 %1586 }
 0x1c4   : > { %v1589_v10 = vadd.f32 %v1512_v54, %v1493_v35  ;;  %v1590_v37 = vadd.f32 %v1517_v34, %v1494_v25  ;;  %v1591_v32 = vadd.f32 %v1522_v56, %v1495_v13  ;;  %v1592_v22 = vadd.f32 %v1527_v58, %v1496_v52 }
 0x1c5   : > { %v1593_v11 = vadd.f32 %v1532_v5, %v1497_v38  ;;  %v1594_v9 = vadd.f32 %v1537_v6, %v1498_v16  ;;  %v1595_v33 = vadd.f32 %v1542_v48, %v1499_v8  ;;  %v1596_v60 = vadd.f32 %v1547_v50, %v1500_v53 }
 0x1c6   : > { %v1597_v36 = vadd.f32 %v1552_v62, %v1501_v42  ;;  %v1598_v47 = vadd.f32 %v1557_v27, %v1502_v23  ;;  %v1599_v54 = vadd.f32 %v1562_v59, %v1503_v45  ;;  %v1600_v34 = vadd.f32 %v1567_v18, %v1504_v49  ;;  %1605 = vst.msk [vmem:[%s3008_s17] sm:$0xff] %vm1285_vm1, %v1589_v10 }
 0x1c7   : > { %1606 = vst.msk [vmem:[%s3008_s17 + $0x8] sm:$0xff] %vm1285_vm1, %v1590_v37  ;;  %1607 = vst.msk [vmem:[%s3008_s17 + $0x10] sm:$0xff] %vm1285_vm1, %v1591_v32  ;;  %v1601_v56 = vadd.f32 %v1572_v39, %v1505_v2  ;;  %v1602_v58 = vadd.f32 %v1577_v40, %v1506_v61  ;;  %v1603_v41 = vadd.f32 %v1582_v20, %v1507_v19 }
 0x1c8   : > { %1608 = vst.msk [vmem:[%s3008_s17 + $0x18] sm:$0xff] %vm1285_vm1, %v1592_v22  ;;  %v1604_v5 = vadd.f32 %v1587_v46, %v1508_v26  ;;  %1609 = vst.msk [vmem:[%s3008_s17 + $0x20] sm:$0xff] %vm1285_vm1, %v1593_v11 }
 0x1c9   : > { %1610 = vst.msk [vmem:[%s3008_s17 + $0x28] sm:$0xff] %vm1285_vm1, %v1594_v9  ;;  %1611 = vst.msk [vmem:[%s3008_s17 + $0x30] sm:$0xff] %vm1285_vm1, %v1595_v33 }
 0x1ca   : > { %1612 = vst.msk [vmem:[%s3008_s17 + $0x38] sm:$0xff] %vm1285_vm1, %v1596_v60  ;;  %1613 = vst.msk [vmem:[%s3008_s17 + $0x40] sm:$0xff] %vm1285_vm1, %v1597_v36 }
 0x1cb   : > { %1614 = vst.msk [vmem:[%s3008_s17 + $0x48] sm:$0xff] %vm1285_vm1, %v1598_v47  ;;  %1615 = vst.msk [vmem:[%s3008_s17 + $0x50] sm:$0xff] %vm1285_vm1, %v1599_v54 }
 0x1cc   : > { %1616 = vst.msk [vmem:[%s3008_s17 + $0x58] sm:$0xff] %vm1285_vm1, %v1600_v34  ;;  %1617 = vst.msk [vmem:[%s3008_s17 + $0x60] sm:$0xff] %vm1285_vm1, %v1601_v56 }
 0x1cd   : > { %1618 = vst.msk [vmem:[%s3008_s17 + $0x68] sm:$0xff] %vm1285_vm1, %v1602_v58  ;;  %1619 = vst.msk [vmem:[%s3008_s17 + $0x70] sm:$0xff] %vm1285_vm1, %v1603_v41 }
 0x1ce   : > { %1620 = vst.msk [vmem:[%s3008_s17 + $0x78] sm:$0xff] %vm1285_vm1, %v1604_v5 }
 0x1cf PF: > { %s18_s26 = sadd.s32 1, %s2142_s26   ;;  %s3063_s24 = smov %s2138_s25 }
 0x1d0   : > { %p15_p5 = scmp.ge.s32.totalorder %s18_s26, 4   ;;  %s3064_s25 = smov %s3066_s27 }
 0x1d2   :  { %17 = sbr.rel (!%p15_p5) target bundleno = 2 (0x2), region = 89 }

</bundles_post_ra>
